<compile_context>
chip_gen: v5e
topology: v5e:2x2
jax: 0.10.0
libtpu: 0.0.40
codegen_flags: <defaults>
</compile_context>

<pallas_src>
import functools

import jax
import jax.numpy as jnp
from jax.experimental import pallas as pl
from jax.experimental.pallas import tpu as pltpu

# ----------------------------- small config (consistent with the module) -----------------------
B = 2                 # batch
H = W = 32            # padded image size
HIDDEN = 32           # cfg.MODEL.TRANSFORMER.HIDDEN_DIM
NUM_QUERIES = 8       # proposals per image
NUM_CTRL = 8          # detection_transformer.num_points
NUM_CLASSES = 1       # text / no-text
VOC = 8               # cfg.MODEL.TRANSFORMER.VOC_SIZE
TEXT_DIM = VOC + 1    # text logits dim (last channel = "blank")
SCORE_TH = 0.4        # cfg.MODEL.TRANSFORMER.INFERENCE_TH_TEST
HEAD_OUT = NUM_CLASSES + 2 + TEXT_DIM + 4   # [cls | ctrl xy | text | boundary xyxy] = 16
M = B * NUM_QUERIES * NUM_CTRL              # 128 rows through the head
BN = B * NUM_QUERIES                        # 16 queries total
POINT_LANES = NUM_CTRL * HEAD_OUT           # 128 -> lane-dense point slab
QUERY_LANES = 128                           # padded per-query row (score | label | keep | 0...)

# packed head-column order: [text(9) | ctrl(2) | bd(4) | cls(1)]; original module order is
# [cls | ctrl | text | bd].  Permutation applied OFFLINE to head_w / head_b columns.
HEAD_PERM = (
    tuple(range(NUM_CLASSES + 2, NUM_CLASSES + 2 + TEXT_DIM))   # text
    + tuple(range(NUM_CLASSES, NUM_CLASSES + 2))                # ctrl xy
    + tuple(range(NUM_CLASSES + 2 + TEXT_DIM, HEAD_OUT))        # boundary xyxy
    + tuple(range(NUM_CLASSES))                                 # cls
)
C_CTRL = TEXT_DIM          # 9  : ctrl x,y columns in packed layout
C_BD = TEXT_DIM + 2        # 11 : boundary columns in packed layout
C_CLS = HEAD_OUT - 1       # 15 : cls logit column (overwritten by recs in the output slab)

_vmem_spec = functools.partial(pl.BlockSpec, memory_space=pltpu.MemorySpace.VMEM)


# ------------------- the ONE fused kernel: preprocess + stand-in features + heads + inference ---
def fused_detector_kernel(img_ref, nscale_ref, nbias_ref, projt_ref, qemb_ref,
                          w_ref, b_ref, cscale_ref, point_ref, query_ref):
    # ---- preprocess_image folded into GAP: mean((x-m)/s) == sum(x)*inv_std/HW - m*inv_std ----
    gap = jnp.sum(img_ref[...], axis=-1, keepdims=True) * nscale_ref[...] + nbias_ref[...]  # (B*3, 1)

    # ---- backbone + DETECTION_TRANSFORMER stand-in: per-image projection + query embedding ----
    feats = (gap * projt_ref[...]).reshape(B, 3, HIDDEN).sum(axis=1)          # (B, HIDDEN)
    x3 = feats[:, None, :] + qemb_ref[...][None, :, :]                        # (B, Q*P, HIDDEN)
    x2d = x3.reshape(M, HIDDEN)                                               # (128, 32)

    # ---- prediction heads: single ungridded MXU pass; columns already packed [text|ctrl|bd|cls] ----
    head = jnp.dot(x2d, w_ref[...], preferred_element_type=jnp.float32) + b_ref[...]
    head3 = head.reshape(BN, NUM_CTRL, HEAD_OUT)                              # (16, 8, 16)

    c = jax.lax.broadcasted_iota(jnp.int32, head3.shape, 2)
    is_text = c < TEXT_DIM
    is_voc = c < VOC
    neg = jnp.float32(-1e30)

    # ctrl_point_prob = softmax(text logits, dim=-1): masked, in place (no lane concatenate)
    t = jnp.where(is_text, head3, neg)
    tmax = jnp.max(t, axis=-1, keepdims=True)
    e = jnp.exp(t - tmax)                               # non-text channels -> exp(-huge) == 0
    denom = jnp.sum(e, axis=-1, keepdims=True)
    prob_text = e * pl.reciprocal(denom, approx=False)  # exact: rows sum to 1

    # recs = first-argmax over prob_text[..., :VOC]  (torch.max semantics)
    pv = jnp.where(is_voc, prob_text, neg)
    mx = jnp.max(pv, axis=-1, keepdims=True)
    rec = jnp.min(jnp.where(is_voc & (pv == mx), c, VOC), axis=-1, keepdims=True)
    rec_f = rec.astype(jnp.float32)                     # small ints (< 2**24): exact in f32

    # ctrl/bd get sigmoid; text channels get softmax probs; cls slot carries recs in the slab
    sig = jax.nn.sigmoid(head3)
    packed = jnp.where(is_text, prob_text, jnp.where(c < C_CLS, sig, rec_f))  # (16, 8, 16)

    # lane-dense pack (BN, P*HEAD_OUT) = (16, 128) + per-batch coordinate scale, full-vreg store
    packed128 = jnp.concatenate([packed[:, p, :] for p in range(NUM_CTRL)], axis=-1)
    point_ref[...] = packed128 * cscale_ref[...]

    # classification branch: prob = sigmoid(mean over ctrl points of cls logits)
    prob = jax.nn.sigmoid(jnp.mean(head3[..., C_CLS:], axis=1))               # (BN, K=1)
    score = jnp.max(prob, axis=-1, keepdims=True)                             # (BN, 1)
    kidx = jax.lax.broadcasted_iota(jnp.int32, prob.shape, 1)
    label = jnp.min(jnp.where(prob == score, kidx, NUM_CLASSES),
                    axis=-1, keepdims=True).astype(jnp.float32)               # first-max index
    keep = (score >= SCORE_TH).astype(jnp.float32)

    # per-query row padded to 128 lanes: [score | label | keep | 0 ...] -> unmasked store
    qc = jax.lax.broadcasted_iota(jnp.int32, (BN, QUERY_LANES), 1)
    query_ref[...] = jnp.where(qc == 0, score,
                               jnp.where(qc == 1, label,
                                         jnp.where(qc == 2, keep, 0.0)))


def run_fused_detector(img2d, nscale, nbias, projt, qemb, w_packed, b_packed, cscale):
    # Gridless single invocation: total live data < 200 KiB, everything fits one VMEM block.
    return pl.pallas_call(
        fused_detector_kernel,
        out_shape=(
            jax.ShapeDtypeStruct((BN, POINT_LANES), jnp.float32),   # packed per-point slab
            jax.ShapeDtypeStruct((BN, QUERY_LANES), jnp.float32),   # score | label | keep | pad
        ),
        in_specs=[_vmem_spec()] * 8,
        out_specs=(_vmem_spec(), _vmem_spec()),
    )(img2d, nscale, nbias, projt, qemb, w_packed, b_packed, cscale)


# ----------------------------- full forward (inference path) -----------------------------------
@jax.jit
def transformer_pure_detector_forward(batched_images, image_sizes, kparams):
    """batched_images: (B, 3, H, W) f32 NCHW; image_sizes: (B, 2) [h, w] int32;
    kparams: output of pack_params (kernel-ready parameter slabs)."""
    img2d = batched_images.reshape(B * 3, H * W)                    # lane-dense raw-pixel view

    # per-batch coordinate-scale slab in the packed lane-dense layout (BN, P*HEAD_OUT):
    # per point: [1 x TEXT_DIM | W H | W H W H | 1]
    sizes_f = image_sizes.astype(jnp.float32)                       # (B, 2) = [h, w]
    h_col = sizes_f[:, 0:1]
    w_col = sizes_f[:, 1:2]
    per_point = jnp.concatenate(
        [jnp.ones((B, TEXT_DIM), jnp.float32),
         w_col, h_col,
         w_col, h_col, w_col, h_col,
         jnp.ones((B, 1), jnp.float32)], axis=-1)                   # (B, HEAD_OUT)
    per_row = jnp.tile(per_point, (1, NUM_CTRL))                    # (B, 128)
    cscale = jnp.broadcast_to(per_row[:, None, :],
                              (B, NUM_QUERIES, POINT_LANES)).reshape(BN, POINT_LANES)

    point_out, query_out = run_fused_detector(
        img2d, kparams["nscale_rows"], kparams["nbias_rows"], kparams["proj_tiled"],
        kparams["query_embed"], kparams["head_w_packed"], kparams["head_b_packed"], cscale)

    # unpack the lane-dense slabs (post-kernel output formatting only)
    point = point_out.reshape(B, NUM_QUERIES, NUM_CTRL, HEAD_OUT)
    rec_scores = point[..., :TEXT_DIM]                              # (B,N,P,9) softmax probs
    ctrl_points = point[..., C_CTRL:C_CTRL + 2].reshape(
        B, NUM_QUERIES, NUM_CTRL * 2)                               # scaled by [W, H]
    bd = point[..., C_BD:C_BD + 4]                                  # scaled by [W, H, W, H]
    recs = point[..., C_CLS].astype(jnp.int32)                      # (B,N,P)
    q = query_out[:, :3].reshape(B, NUM_QUERIES, 3)
    scores = q[..., 0]
    labels = q[..., 1].astype(jnp.int32)
    keep = (q[..., 2] >= 0.5).astype(jnp.int32)

    # detector_postprocess: output size defaults to the image size -> scale_x == scale_y == 1.0,
    # so ctrl_points / bd are already in output coordinates.
    # TODO(synk): fold custom output_height/width (and the ViTAE min/max-size resize path) into
    #             the cscale slab if they are ever exposed.
    return {
        "scores": scores,            # (B, N)
        "pred_classes": labels,      # (B, N)
        "rec_scores": rec_scores,    # (B, N, P, TEXT_DIM)
        "recs": recs,                # (B, N, P)
        "ctrl_points": ctrl_points,  # (B, N, P*2) in image coords
        "bd": bd,                    # (B, N, P, 4) in image coords
        "keep": keep,                # (B, N) threshold mask (stand-in for dynamic selection)
    }


# ----------------------------- deterministic parameter init + offline packing ------------------
def init_params(key):
    k1, k2, k3, k4 = jax.random.split(key, 4)
    return {
        "pixel_mean": jnp.array([123.675, 116.28, 103.53], jnp.float32).reshape(1, 3, 1, 1),
        "pixel_std": jnp.array([58.395, 57.12, 57.375], jnp.float32).reshape(1, 3, 1, 1),
        "proj": 0.02 * jax.random.normal(k1, (3, HIDDEN), jnp.float32),
        "query_embed": 0.02 * jax.random.normal(k2, (NUM_QUERIES * NUM_CTRL, HIDDEN), jnp.float32),
        # head columns in the module's order: [cls | ctrl xy | text | boundary xyxy]
        "head_w": 0.05 * jax.random.normal(k3, (HIDDEN, HEAD_OUT), jnp.float32),
        "head_b": 0.05 * jax.random.normal(k4, (1, HEAD_OUT), jnp.float32),
    }


def pack_params(params):
    """One-time, offline re-layout of module parameters into kernel-friendly slabs."""
    mean = params["pixel_mean"].reshape(3)
    inv_std = 1.0 / params["pixel_std"].reshape(3)
    perm = jnp.array(HEAD_PERM, jnp.int32)
    return {
        # fold 1/(H*W) into the normalize scale: gap_norm = sum(x) * inv_std/HW - mean*inv_std
        "nscale_rows": jnp.tile(inv_std / float(H * W), B).reshape(B * 3, 1),
        "nbias_rows": jnp.tile(-mean * inv_std, B).reshape(B * 3, 1),
        "proj_tiled": jnp.tile(params["proj"], (B, 1)),              # (B*3, HIDDEN)
        "query_embed": params["query_embed"],                        # (Q*P, HIDDEN)
        "head_w_packed": jnp.take(params["head_w"], perm, axis=1),   # columns -> [text|ctrl|bd|cls]
        "head_b_packed": jnp.take(params["head_b"], perm, axis=1),
    }


if __name__ == "__main__":
    key = jax.random.PRNGKey(0)
    k_img, k_par = jax.random.split(key)
    images = jax.random.uniform(k_img, (B, 3, H, W), jnp.float32, 0.0, 255.0)
    image_sizes = jnp.array([[H, W], [H, W]], jnp.int32)
    params = init_params(k_par)
    kparams = pack_params(params)   # offline parameter re-layout (outside the jitted hot path)

    results = transformer_pure_detector_forward(images, image_sizes, kparams)
    jax.block_until_ready(results)
    print("KERNEL_OK")
</pallas_src>

<mosaic_0001>
module attributes {stable_mosaic.version = 11 : i64} {
  func.func @fused_detector_kernel(%arg0: memref<6x1024xf32, #tpu.memory_space<vmem>>, %arg1: memref<6x1xf32, #tpu.memory_space<vmem>>, %arg2: memref<6x1xf32, #tpu.memory_space<vmem>>, %arg3: memref<6x32xf32, #tpu.memory_space<vmem>>, %arg4: memref<64x32xf32, #tpu.memory_space<vmem>>, %arg5: memref<32x16xf32, #tpu.memory_space<vmem>>, %arg6: memref<1x16xf32, #tpu.memory_space<vmem>>, %arg7: memref<16x128xf32, #tpu.memory_space<vmem>>, %arg8: memref<16x128xf32, #tpu.memory_space<vmem>>, %arg9: memref<16x128xf32, #tpu.memory_space<vmem>>) attributes {dimension_semantics = [], scalar_prefetch = 0 : i64, scratch_operands = 0 : i64, tpu.core_type = #tpu.core_type<tc>} {
    %c0 = arith.constant 0 : index
    %c0_0 = arith.constant 0 : index
    %0 = vector.load %arg0[%c0, %c0_0] : memref<6x1024xf32, #tpu.memory_space<vmem>>, vector<6x1024xf32>
    %cst = arith.constant dense<0.000000e+00> : vector<6xf32>
    %1 = vector.multi_reduction <add>, %0, %cst [1] : vector<6x1024xf32> to vector<6xf32>
    %2 = vector.shape_cast %1 : vector<6xf32> to vector<6x1xf32>
    %c0_1 = arith.constant 0 : index
    %c0_2 = arith.constant 0 : index
    %3 = vector.load %arg1[%c0_1, %c0_2] : memref<6x1xf32, #tpu.memory_space<vmem>>, vector<6x1xf32>
    %4 = arith.mulf %2, %3 : vector<6x1xf32>
    %c0_3 = arith.constant 0 : index
    %c0_4 = arith.constant 0 : index
    %5 = vector.load %arg2[%c0_3, %c0_4] : memref<6x1xf32, #tpu.memory_space<vmem>>, vector<6x1xf32>
    %6 = arith.addf %4, %5 : vector<6x1xf32>
    %c0_5 = arith.constant 0 : index
    %c0_6 = arith.constant 0 : index
    %7 = vector.load %arg3[%c0_5, %c0_6] : memref<6x32xf32, #tpu.memory_space<vmem>>, vector<6x32xf32>
    %8 = vector.broadcast %6 : vector<6x1xf32> to vector<6x32xf32>
    %9 = arith.mulf %8, %7 : vector<6x32xf32>
    %10 = vector.shape_cast %9 : vector<6x32xf32> to vector<2x3x32xf32>
    %cst_7 = arith.constant dense<0.000000e+00> : vector<2x32xf32>
    %11 = vector.multi_reduction <add>, %10, %cst_7 [1] : vector<2x3x32xf32> to vector<2x32xf32>
    %12 = vector.shape_cast %11 : vector<2x32xf32> to vector<2x1x32xf32>
    %c0_8 = arith.constant 0 : index
    %c0_9 = arith.constant 0 : index
    %13 = vector.load %arg4[%c0_8, %c0_9] : memref<64x32xf32, #tpu.memory_space<vmem>>, vector<64x32xf32>
    %14 = vector.shape_cast %13 : vector<64x32xf32> to vector<1x64x32xf32>
    %15 = vector.broadcast %12 : vector<2x1x32xf32> to vector<2x64x32xf32>
    %16 = vector.broadcast %14 : vector<1x64x32xf32> to vector<2x64x32xf32>
    %17 = arith.addf %15, %16 : vector<2x64x32xf32>
    %18 = vector.shape_cast %17 : vector<2x64x32xf32> to vector<128x32xf32>
    %c0_10 = arith.constant 0 : index
    %c0_11 = arith.constant 0 : index
    %19 = vector.load %arg5[%c0_10, %c0_11] : memref<32x16xf32, #tpu.memory_space<vmem>>, vector<32x16xf32>
    %cst_12 = arith.constant dense<0.000000e+00> : vector<128x16xf32>
    %20 = tpu.matmul %18, %19, %cst_12 {dimension_numbers = #tpu.dot_dimension_numbers<[1], [0], [0], [1], [0, 0, 1, 1], [], []>} : vector<128x32xf32>, vector<32x16xf32>, vector<128x16xf32> -> vector<128x16xf32>
    %c0_13 = arith.constant 0 : index
    %c0_14 = arith.constant 0 : index
    %21 = vector.load %arg6[%c0_13, %c0_14] : memref<1x16xf32, #tpu.memory_space<vmem>>, vector<1x16xf32>
    %22 = vector.broadcast %21 : vector<1x16xf32> to vector<128x16xf32>
    %23 = arith.addf %20, %22 : vector<128x16xf32>
    %24 = vector.shape_cast %23 : vector<128x16xf32> to vector<16x8x16xf32>
    %25 = tpu.iota {dimensions = array<i32: 2>} : vector<16x8x16xi32>
    %c9_i32 = arith.constant 9 : i32
    %26 = vector.broadcast %c9_i32 : i32 to vector<16x8x16xi32>
    %27 = arith.cmpi slt, %25, %26 : vector<16x8x16xi32>
    %c8_i32 = arith.constant 8 : i32
    %28 = vector.broadcast %c8_i32 : i32 to vector<16x8x16xi32>
    %29 = arith.cmpi slt, %25, %28 : vector<16x8x16xi32>
    %cst_15 = arith.constant -1.000000e+30 : f32
    %30 = vector.broadcast %cst_15 : f32 to vector<16x8x16xf32>
    %31 = arith.select %27, %24, %30 : vector<16x8x16xi1>, vector<16x8x16xf32>
    %cst_16 = arith.constant dense<0xFF800000> : vector<16x8xf32>
    %32 = vector.multi_reduction <maximumf>, %31, %cst_16 [2] : vector<16x8x16xf32> to vector<16x8xf32>
    %33 = vector.shape_cast %32 : vector<16x8xf32> to vector<16x8x1xf32>
    %34 = vector.broadcast %33 : vector<16x8x1xf32> to vector<16x8x16xf32>
    %35 = arith.subf %31, %34 : vector<16x8x16xf32>
    %36 = math.exp %35 : vector<16x8x16xf32>
    %cst_17 = arith.constant dense<0.000000e+00> : vector<16x8xf32>
    %37 = vector.multi_reduction <add>, %36, %cst_17 [2] : vector<16x8x16xf32> to vector<16x8xf32>
    %38 = vector.shape_cast %37 : vector<16x8xf32> to vector<16x8x1xf32>
    %39 = tpu.reciprocal %38 : vector<16x8x1xf32> -> vector<16x8x1xf32>
    %40 = vector.broadcast %39 : vector<16x8x1xf32> to vector<16x8x16xf32>
    %41 = arith.mulf %36, %40 : vector<16x8x16xf32>
    %cst_18 = arith.constant -1.000000e+30 : f32
    %42 = vector.broadcast %cst_18 : f32 to vector<16x8x16xf32>
    %43 = arith.select %29, %41, %42 : vector<16x8x16xi1>, vector<16x8x16xf32>
    %cst_19 = arith.constant dense<0xFF800000> : vector<16x8xf32>
    %44 = vector.multi_reduction <maximumf>, %43, %cst_19 [2] : vector<16x8x16xf32> to vector<16x8xf32>
    %45 = vector.shape_cast %44 : vector<16x8xf32> to vector<16x8x1xf32>
    %46 = vector.broadcast %45 : vector<16x8x1xf32> to vector<16x8x16xf32>
    %47 = arith.cmpf oeq, %43, %46 : vector<16x8x16xf32>
    %48 = arith.andi %29, %47 : vector<16x8x16xi1>
    %c8_i32_20 = arith.constant 8 : i32
    %49 = vector.broadcast %c8_i32_20 : i32 to vector<16x8x16xi32>
    %50 = arith.select %48, %25, %49 : vector<16x8x16xi1>, vector<16x8x16xi32>
    %cst_21 = arith.constant dense<2147483647> : vector<16x8xi32>
    %51 = vector.multi_reduction <minsi>, %50, %cst_21 [2] : vector<16x8x16xi32> to vector<16x8xi32>
    %52 = vector.shape_cast %51 : vector<16x8xi32> to vector<16x8x1xi32>
    %53 = arith.sitofp %52 : vector<16x8x1xi32> to vector<16x8x1xf32>
    %54 = arith.negf %24 : vector<16x8x16xf32>
    %55 = math.exp %54 : vector<16x8x16xf32>
    %cst_22 = arith.constant 1.000000e+00 : f32
    %56 = vector.broadcast %cst_22 : f32 to vector<16x8x16xf32>
    %57 = arith.addf %56, %55 : vector<16x8x16xf32>
    %58 = arith.divf %56, %57 : vector<16x8x16xf32>
    %c15_i32 = arith.constant 15 : i32
    %59 = vector.broadcast %c15_i32 : i32 to vector<16x8x16xi32>
    %60 = arith.cmpi slt, %25, %59 : vector<16x8x16xi32>
    %61 = vector.shape_cast %53 : vector<16x8x1xf32> to vector<16x8x1xf32>
    %62 = vector.broadcast %61 : vector<16x8x1xf32> to vector<16x8x16xf32>
    %63 = arith.select %60, %58, %62 : vector<16x8x16xi1>, vector<16x8x16xf32>
    %64 = arith.select %27, %41, %63 : vector<16x8x16xi1>, vector<16x8x16xf32>
    %65 = vector.extract_strided_slice %64 {offsets = [0, 0, 0], sizes = [16, 1, 16], strides = [1, 1, 1]} : vector<16x8x16xf32> to vector<16x1x16xf32>
    %66 = vector.shape_cast %65 : vector<16x1x16xf32> to vector<16x16xf32>
    %67 = vector.extract_strided_slice %64 {offsets = [0, 1, 0], sizes = [16, 1, 16], strides = [1, 1, 1]} : vector<16x8x16xf32> to vector<16x1x16xf32>
    %68 = vector.shape_cast %67 : vector<16x1x16xf32> to vector<16x16xf32>
    %69 = vector.extract_strided_slice %64 {offsets = [0, 2, 0], sizes = [16, 1, 16], strides = [1, 1, 1]} : vector<16x8x16xf32> to vector<16x1x16xf32>
    %70 = vector.shape_cast %69 : vector<16x1x16xf32> to vector<16x16xf32>
    %71 = vector.extract_strided_slice %64 {offsets = [0, 3, 0], sizes = [16, 1, 16], strides = [1, 1, 1]} : vector<16x8x16xf32> to vector<16x1x16xf32>
    %72 = vector.shape_cast %71 : vector<16x1x16xf32> to vector<16x16xf32>
    %73 = vector.extract_strided_slice %64 {offsets = [0, 4, 0], sizes = [16, 1, 16], strides = [1, 1, 1]} : vector<16x8x16xf32> to vector<16x1x16xf32>
    %74 = vector.shape_cast %73 : vector<16x1x16xf32> to vector<16x16xf32>
    %75 = vector.extract_strided_slice %64 {offsets = [0, 5, 0], sizes = [16, 1, 16], strides = [1, 1, 1]} : vector<16x8x16xf32> to vector<16x1x16xf32>
    %76 = vector.shape_cast %75 : vector<16x1x16xf32> to vector<16x16xf32>
    %77 = vector.extract_strided_slice %64 {offsets = [0, 6, 0], sizes = [16, 1, 16], strides = [1, 1, 1]} : vector<16x8x16xf32> to vector<16x1x16xf32>
    %78 = vector.shape_cast %77 : vector<16x1x16xf32> to vector<16x16xf32>
    %79 = vector.extract_strided_slice %64 {offsets = [0, 7, 0], sizes = [16, 1, 16], strides = [1, 1, 1]} : vector<16x8x16xf32> to vector<16x1x16xf32>
    %80 = vector.shape_cast %79 : vector<16x1x16xf32> to vector<16x16xf32>
    %81 = tpu.concatenate %66, %68, %70, %72, %74, %76, %78, %80 in 1 : vector<16x16xf32>, vector<16x16xf32>, vector<16x16xf32>, vector<16x16xf32>, vector<16x16xf32>, vector<16x16xf32>, vector<16x16xf32>, vector<16x16xf32> -> vector<16x128xf32>
    %c0_23 = arith.constant 0 : index
    %c0_24 = arith.constant 0 : index
    %82 = vector.load %arg7[%c0_23, %c0_24] : memref<16x128xf32, #tpu.memory_space<vmem>>, vector<16x128xf32>
    %83 = arith.mulf %81, %82 : vector<16x128xf32>
    %c0_25 = arith.constant 0 : index
    %c0_26 = arith.constant 0 : index
    %84 = vector.load %arg8[%c0_25, %c0_26] : memref<16x128xf32, #tpu.memory_space<vmem>>, vector<16x128xf32>
    tpu.vector_store %arg8[%c0_25, %c0_26], %83 {strides = array<i32>} : memref<16x128xf32, #tpu.memory_space<vmem>>, vector<16x128xf32>,
    %85 = vector.extract_strided_slice %24 {offsets = [0, 0, 15], sizes = [16, 8, 1], strides = [1, 1, 1]} : vector<16x8x16xf32> to vector<16x8x1xf32>
    %cst_27 = arith.constant dense<0.000000e+00> : vector<16x1xf32>
    %86 = vector.multi_reduction <add>, %85, %cst_27 [1] : vector<16x8x1xf32> to vector<16x1xf32>
    %cst_28 = arith.constant 8.000000e+00 : f32
    %87 = vector.broadcast %cst_28 : f32 to vector<16x1xf32>
    %88 = arith.divf %86, %87 : vector<16x1xf32>
    %89 = arith.negf %88 : vector<16x1xf32>
    %90 = math.exp %89 : vector<16x1xf32>
    %cst_29 = arith.constant 1.000000e+00 : f32
    %91 = vector.broadcast %cst_29 : f32 to vector<16x1xf32>
    %92 = arith.addf %91, %90 : vector<16x1xf32>
    %93 = arith.divf %91, %92 : vector<16x1xf32>
    %cst_30 = arith.constant dense<0xFF800000> : vector<16xf32>
    %94 = vector.multi_reduction <maximumf>, %93, %cst_30 [1] : vector<16x1xf32> to vector<16xf32>
    %95 = vector.shape_cast %94 : vector<16xf32> to vector<16x1xf32>
    %96 = tpu.iota {dimensions = array<i32: 1>} : vector<16x1xi32>
    %97 = arith.cmpf oeq, %93, %95 : vector<16x1xf32>
    %c1_i32 = arith.constant 1 : i32
    %98 = vector.broadcast %c1_i32 : i32 to vector<16x1xi32>
    %99 = arith.select %97, %96, %98 : vector<16x1xi1>, vector<16x1xi32>
    %cst_31 = arith.constant dense<2147483647> : vector<16xi32>
    %100 = vector.multi_reduction <minsi>, %99, %cst_31 [1] : vector<16x1xi32> to vector<16xi32>
    %101 = vector.shape_cast %100 : vector<16xi32> to vector<16x1xi32>
    %102 = arith.sitofp %101 : vector<16x1xi32> to vector<16x1xf32>
    %cst_32 = arith.constant 4.000000e-01 : f32
    %103 = vector.broadcast %cst_32 : f32 to vector<16x1xf32>
    %104 = arith.cmpf oge, %95, %103 : vector<16x1xf32>
    %105 = arith.extui %104 : vector<16x1xi1> to vector<16x1xi32>
    %106 = arith.sitofp %105 : vector<16x1xi32> to vector<16x1xf32>
    %107 = tpu.iota {dimensions = array<i32: 1>} : vector<16x128xi32>
    %c0_i32 = arith.constant 0 : i32
    %108 = vector.broadcast %c0_i32 : i32 to vector<16x128xi32>
    %109 = arith.cmpi eq, %107, %108 : vector<16x128xi32>
    %c1_i32_33 = arith.constant 1 : i32
    %110 = vector.broadcast %c1_i32_33 : i32 to vector<16x128xi32>
    %111 = arith.cmpi eq, %107, %110 : vector<16x128xi32>
    %c2_i32 = arith.constant 2 : i32
    %112 = vector.broadcast %c2_i32 : i32 to vector<16x128xi32>
    %113 = arith.cmpi eq, %107, %112 : vector<16x128xi32>
    %cst_34 = arith.constant 0.000000e+00 : f32
    %114 = vector.shape_cast %106 : vector<16x1xf32> to vector<16x1xf32>
    %115 = vector.broadcast %114 : vector<16x1xf32> to vector<16x128xf32>
    %116 = vector.broadcast %cst_34 : f32 to vector<16x128xf32>
    %117 = arith.select %113, %115, %116 : vector<16x128xi1>, vector<16x128xf32>
    %118 = vector.shape_cast %102 : vector<16x1xf32> to vector<16x1xf32>
    %119 = vector.broadcast %118 : vector<16x1xf32> to vector<16x128xf32>
    %120 = arith.select %111, %119, %117 : vector<16x128xi1>, vector<16x128xf32>
    %121 = vector.shape_cast %95 : vector<16x1xf32> to vector<16x1xf32>
    %122 = vector.broadcast %121 : vector<16x1xf32> to vector<16x128xf32>
    %123 = arith.select %109, %122, %120 : vector<16x128xi1>, vector<16x128xf32>
    %c0_35 = arith.constant 0 : index
    %c0_36 = arith.constant 0 : index
    %124 = vector.load %arg9[%c0_35, %c0_36] : memref<16x128xf32, #tpu.memory_space<vmem>>, vector<16x128xf32>
    tpu.vector_store %arg9[%c0_35, %c0_36], %123 {strides = array<i32>} : memref<16x128xf32, #tpu.memory_space<vmem>>, vector<16x128xf32>,
    return
  }
}

</mosaic_0001>

<bundles_post_ra>
// kernel: transformer_pure_detector_forward.1
= control target key start
LH: loop header
LB: loop body
LE: loop exit
PB: predicated region body
PF: predicated region fallthrough
CT: control target
= control target key end

     0   :  { %vm39_vm0 = vcmask 1045504   ;;  %v2811_v23 = vmov 0   ;;  %vm86_vm1 = vcmask 256000   ;;  %vm5587_vm2 = vcmask 261120   ;;  %s2812_s21 = smov 15   ;;  %s2816_s10 = smov 48   ;;  %s5565_s0 = inlined_call_operand.vmem [shape: f32[6,1024], index: 0, kind: input, shape index: {}]   ;;  %s5566_s1 = inlined_call_operand.vmem [shape: f32[6,1], index: 1, kind: input, shape index: {}]   ;;  %s5567_s2 = inlined_call_operand.vmem [shape: f32[6,1], index: 2, kind: input, shape index: {}]   ;;  %s5568_s6 = inlined_call_operand.vmem [shape: f32[1,16], index: 6, kind: input, shape index: {}]   ;;  %s5569_s5 = inlined_call_operand.vmem [shape: f32[32,16], index: 5, kind: input, shape index: {}]   ;;  %s5570_s3 = inlined_call_operand.vmem [shape: f32[6,32], index: 3, kind: input, shape index: {}]   ;;  %s5571_s4 = inlined_call_operand.vmem [shape: f32[64,32], index: 4, kind: input, shape index: {}]   ;;  %s5572_s9 = inlined_call_operand.vmem [shape: f32[16,128], index: 9, kind: output, shape index: {1}]   ;;  %s5573_s7 = inlined_call_operand.vmem [shape: f32[16,128], index: 7, kind: input, shape index: {}]   ;;  %s5574_s8 = inlined_call_operand.vmem [shape: f32[16,128], index: 8, kind: output, shape index: {0}]  }
   0x1   :  { %v31_v0 = vld [vmem:[%s5565_s0] sm:$0x3f]  ;;  %v32_v1 = vld [vmem:[%s5565_s0 + $0x8] sm:$0x3f]  ;;  %v33_v2 = vld [vmem:[%s5565_s0 + $0x10] sm:$0x3f]  ;;  %2572 = vset.pattern.permute.xlu0 %v2811_v23  ;;  %v247_v59 = vlaneseq }
   0x2   :  { %v34_v3 = vld [vmem:[%s5565_s0 + $0x18] sm:$0x3f]  ;;  %v40_v4 = vsel %vm39_vm0, %v31_v0, 0.0  ;;  %v41_v5 = vsel %vm39_vm0, %v32_v1, 0.0  ;;  %v35_v6 = vld [vmem:[%s5565_s0 + $0x20] sm:$0x3f] }
   0x3   :  { %v42_v7 = vadd.f32 %v41_v5, %v40_v4  ;;  %v43_v8 = vsel %vm39_vm0, %v33_v2, 0.0  ;;  %v45_v9 = vsel %vm39_vm0, %v34_v3, 0.0  ;;  %v36_v10 = vld [vmem:[%s5565_s0 + $0x28] sm:$0x3f]  ;;  %v47_v12 = vsel %vm39_vm0, %v35_v6, 0.0  ;;  %v128_v29 = vld [vmem:[%s5569_s5 + $0x18] sm:$0xff] }
   0x4   :  { %v37_v13 = vld [vmem:[%s5565_s0 + $0x30] sm:$0x3f]  ;;  %v49_v15 = vsel %vm39_vm0, %v36_v10, 0.0  ;;  %v38_v16 = vld [vmem:[%s5565_s0 + $0x38] sm:$0x3f]  ;;  %194 = vmatpush.msra.mxu0 %v128_v29  ;;  %2548 = vmatpush.msra.mxu1 %v128_v29  ;;  %v126_v31 = vld [vmem:[%s5569_s5 + $0x8] sm:$0xff] }
   0x5   :  { %v44_v11 = vadd.f32 %v43_v8, %v42_v7  ;;  %v51_v18 = vsel %vm39_vm0, %v37_v13, 0.0  ;;  %v53_v20 = vsel %vm39_vm0, %v38_v16, 0.0  ;;  %v57_v24 = vld [vmem:[%s5566_s1] sm:$0x3f]  ;;  %v127_v30 = vld [vmem:[%s5569_s5 + $0x10] sm:$0xff]  ;;  %2549 = vmatpush.msra.mxu2 %v128_v29  ;;  %2550 = vmatpush.msra.mxu3 %v128_v29  ;;  %v102_v60 = vld [vmem:[%s5571_s4 + $0x8] sm:$0xff] }
   0x6   :  { %v59_v25 = vld [vmem:[%s5567_s2] sm:$0x3f]  ;;  %195 = vmatpush.msra.mxu0 %v127_v30  ;;  %2551 = vmatpush.msra.mxu1 %v127_v30  ;;  %v106_v61 = vld [vmem:[%s5571_s4 + $0x28] sm:$0xff]  ;;  %v2942_v63 = vand.u32 127, %v247_v59  ;;  %v103_v5 = vld [vmem:[%s5571_s4 + $0x10] sm:$0xff]  ;;  %vm267_vm4 = vcmask 130048  }
   0x7   :  { %v46_v14 = vadd.f32 %v45_v9, %v44_v11  ;;  %2552 = vmatpush.msra.mxu2 %v127_v30  ;;  %2553 = vmatpush.msra.mxu3 %v127_v30  ;;  %v125_v32 = vld [vmem:[%s5569_s5] sm:$0xff]  ;;  %v107_v6 = vld [vmem:[%s5571_s4 + $0x30] sm:$0xff]  ;;  %v104_v11 = vld [vmem:[%s5571_s4 + $0x18] sm:$0xff]  ;;  %vm1673_vm5 = vcmask 130168   ;;  %s2817_s1 = smov 32   ;;  %s2818_s2 = smov 16  }
   0x8   :  { %196 = vmatpush.msra.mxu0 %v126_v31  ;;  %2554 = vmatpush.msra.mxu1 %v126_v31  ;;  %v61_v33 = vld [vmem:[%s5570_s3] sm:$0x3f]  ;;  %vm5591_vm3 = vcmp.lt.s32.totalorder %v2942_v63, 9  ;;  %s2819_s11 = smov 96   ;;  %s2820_s12 = smov 64  }
   0x9   :  { %v48_v17 = vadd.f32 %v47_v12, %v46_v14  ;;  %2555 = vmatpush.msra.mxu2 %v126_v31  ;;  %2556 = vmatpush.msra.mxu3 %v126_v31  ;;  %v101_v50 = vld [vmem:[%s5571_s4] sm:$0xff]  ;;  %v108_v12 = vld [vmem:[%s5571_s4 + $0x38] sm:$0xff]  ;;  %s2821_s13 = smov 80   ;;  %s2822_s14 = smov 112  }
   0xa   :  { %197 = vmatpush.msra.mxu0 %v125_v32  ;;  %2557 = vmatpush.msra.mxu1 %v125_v32  ;;  %v105_v51 = vld [vmem:[%s5571_s4 + $0x20] sm:$0xff] }
   0xb   :  { %v50_v19 = vadd.f32 %v49_v15, %v48_v17  ;;  %2558 = vmatpush.msra.mxu2 %v125_v32  ;;  %2559 = vmatpush.msra.mxu3 %v125_v32 }
   0xc   :  { %2129 = vrot.lane.b32.xlu1 %v2942_v63, %s2812_s21 }
   0xd   :  { %v52_v21 = vadd.f32 %v51_v18, %v50_v19  ;;  %v2974_v19 = vld [vmem:[%s5568_s6] ss:$0 sm:$0xff] }
   0xf   :  { %v54_v22 = vadd.f32 %v53_v20, %v52_v21 }
  0x11   :  { %55 = vadd.xlane.f32.xlu0 %v54_v22 }
  0x84   :  { %v56_v26 = vpop.xlane.xlu0 %55 }
  0x85   :  { %v58_v27 = vmul.f32 %v57_v24, %v56_v26 }
  0x87   :  { %v60_v28 = vadd.f32 %v59_v25, %v58_v27 }
  0x89   :  { %64 = vperm.xlu0 %2572, %v60_v28  }
  0xfb   :  { %v65_v34 = vpop.permute.xlu0 %64 }
  0xfc   :  { %v67_v35 = vmul.f32 %v65_v34, %v61_v33  ;;  %v2813_v34 = vmov 8.0  }
  0xfd   :  { %2617 = vrcp.f32 %v2813_v34 }
  0xfe   :  { %v69_v36 = vrot.slane %v67_v35, 1  ;;  %v70_v37 = vrot.slane %v67_v35, 2  ;;  %74 = vst [vmem:[#allocation1] ss:$9 sm:$0xff] %v67_v35  ;;  %v71_v38 = vrot.slane %v67_v35, 3  ;;  %v72_v39 = vrot.slane %v67_v35, 4 }
  0xff   :  { %v73_v41 = vrot.slane %v67_v35, 5 }
 0x100   :  { %76 = vst [vmem:[#allocation1 + $0x1] ss:$9 sm:$0xff] %v69_v36 }
 0x101   :  { %78 = vst [vmem:[#allocation1 + $0x2] ss:$9 sm:$0xff] %v70_v37 }
 0x108   :  { %v79_v40 = vld [vmem:[#allocation1] sm:$0xff] }
 0x109   :  { %80 = vst [vmem:[#allocation1] ss:$9 sm:$0xff] %v71_v38  ;;  %v87_v42 = vsel %vm86_vm1, %v79_v40, 0.0  ;;  %v2618_v40 = vpop.eup %2617 }
 0x10a   :  { %81 = vst [vmem:[#allocation1 + $0x1] ss:$9 sm:$0xff] %v72_v39  ;;  %v88_v43 = vrot.slane %v87_v42, 4  ;;  %vm1791_vm6 = vweird.f32 %v2618_v40 }
 0x10b   :  { %82 = vst [vmem:[#allocation1 + $0x2] ss:$9 sm:$0xff] %v73_v41 }
 0x10c   :  { %v89_v44 = vadd.f32 %v88_v43, %v87_v42 }
 0x10e   :  { %v90_v45 = vrot.slane %v89_v44, 2 }
 0x110   :  { %v91_v46 = vadd.f32 %v90_v45, %v89_v44 }
 0x112   :  { %v83_v47 = vld [vmem:[#allocation1] sm:$0xff]  ;;  %v92_v48 = vrot.slane %v91_v46, 1 }
 0x113   :  { %v94_v49 = vsel %vm86_vm1, %v83_v47, 0.0  ;;  %v1787_v47 = vmul.f32 8.0, %v2618_v40 }
 0x114   :  { %v93_v52 = vadd.f32 %v92_v48, %v91_v46  ;;  %v95_v53 = vrot.slane %v94_v49, 4 }
 0x116   :  { %v96_v54 = vadd.f32 %v95_v53, %v94_v49  ;;  %v109_v55 = vadd.f32 %v101_v50, %v93_v52  ;;  %v113_v56 = vadd.f32 %v105_v51, %v93_v52  ;;  %v110_v1 = vadd.f32 %v102_v60, %v93_v52 }
 0x117   :  { %v114_v2 = vadd.f32 %v106_v61, %v93_v52  ;;  %v111_v7 = vadd.f32 %v103_v5, %v93_v52  ;;  %v115_v8 = vadd.f32 %v107_v6, %v93_v52  ;;  %v112_v13 = vadd.f32 %v104_v11, %v93_v52 }
 0x118   :  { %v97_v57 = vrot.slane %v96_v54, 2  ;;  %2484 = vmatmul.msk.f32.vlgmr.msra.gmra.mxu0 %vm5587_vm2, %v109_v55  ;;  %2488 = vmatmul.msk.f32.vlgmr.msra.gmra.mxu1 %vm5587_vm2, %v113_v56  ;;  %v116_v14 = vadd.f32 %v108_v12, %v93_v52  ;;  %v1788_v56 = vsub.f32 1.0, %v1787_v47 }
 0x11a   :  { %v98_v58 = vadd.f32 %v97_v57, %v96_v54 }
 0x11c   :  { %v99_v62 = vrot.slane %v98_v58, 1 }
 0x11e   :  { %v100_v0 = vadd.f32 %v99_v62, %v98_v58 }
 0x120   :  { %2485 = vmatmul.msk.f32.gmra.mxu0 %vm5587_vm2, %v110_v1  ;;  %2489 = vmatmul.msk.f32.gmra.mxu1 %vm5587_vm2, %v114_v2  ;;  %v117_v3 = vadd.f32 %v101_v50, %v100_v0  ;;  %v121_v4 = vadd.f32 %v105_v51, %v100_v0  ;;  %v118_v9 = vadd.f32 %v102_v60, %v100_v0 }
 0x121   :  { %v122_v10 = vadd.f32 %v106_v61, %v100_v0  ;;  %v119_v15 = vadd.f32 %v103_v5, %v100_v0  ;;  %v123_v16 = vadd.f32 %v107_v6, %v100_v0  ;;  %v120_v17 = vadd.f32 %v104_v11, %v100_v0 }
 0x122   :  { %2492 = vmatmul.msk.f32.vlgmr.msra.gmra.mxu2 %vm5587_vm2, %v117_v3  ;;  %2496 = vmatmul.msk.f32.vlgmr.msra.gmra.mxu3 %vm5587_vm2, %v121_v4  ;;  %v124_v18 = vadd.f32 %v108_v12, %v100_v0  ;;  %v1789_v3 = vmul.f32 %v2618_v40, %v1788_v56 }
 0x128   :  { %2486 = vmatmul.msk.f32.gmra.mxu0 %vm5587_vm2, %v111_v7  ;;  %2490 = vmatmul.msk.f32.gmra.mxu1 %vm5587_vm2, %v115_v8 }
 0x12a   :  { %2493 = vmatmul.msk.f32.gmra.mxu2 %vm5587_vm2, %v118_v9  ;;  %2497 = vmatmul.msk.f32.gmra.mxu3 %vm5587_vm2, %v122_v10 }
 0x130   :  { %2487 = vmatmul.msk.f32.gmra.mxu0 %vm5587_vm2, %v112_v13  ;;  %2491 = vmatmul.msk.f32.gmra.mxu1 %vm5587_vm2, %v116_v14 }
 0x132   :  { %2494 = vmatmul.msk.f32.gmra.mxu2 %vm5587_vm2, %v119_v15  ;;  %2498 = vmatmul.msk.f32.gmra.mxu3 %vm5587_vm2, %v123_v16 }
 0x13a   :  { %2495 = vmatmul.msk.f32.gmra.mxu2 %vm5587_vm2, %v120_v17  ;;  %2499 = vmatmul.msk.f32.gmra.mxu3 %vm5587_vm2, %v124_v18  ;;  %v1790_v17 = vadd.f32 %v2618_v40, %v1789_v3 }
 0x195   :  { %v199_v20 = vpop.f32.mrf.mxu0  ;;  %v211_v21 = vpop.f32.mrf.mxu1 }
 0x196   :  { %v2977_v22 = vadd.f32 %v2974_v19, %v199_v20  ;;  %v2988_v25 = vadd.f32 %v2974_v19, %v211_v21 }
 0x198   :  { %v2983_v23 = vsel %vm5591_vm3, %v2977_v22, -1e+30  ;;  %v2996_v28 = vsel %vm5591_vm3, %v2988_v25, -1e+30  ;;  %v1674_v36 = vsel %vm1673_vm5, %v2977_v22, 0.0  ;;  %v1702_v37 = vsel %vm1673_vm5, %v2988_v25, 0.0 }
 0x199   :  { %v268_v24 = vsel %vm267_vm4, %v2983_v23, -inf  ;;  %v280_v31 = vsel %vm267_vm4, %v2996_v28, -inf  ;;  %v1675_v39 = vrot.slane %v1674_v36, 4  ;;  %v1703_v41 = vrot.slane %v1702_v37, 4 }
 0x19a   :  { %269 = vmax.xlane.f32.xlu1 %v268_v24 }
 0x19b   :  { %v1676_v46 = vadd.f32 %v1675_v39, %v1674_v36  ;;  %v1704_v50 = vadd.f32 %v1703_v41, %v1702_v37 }
 0x19d   :  { %v214_v26 = vpop.f32.mrf.mxu1  ;;  %v202_v29 = vpop.f32.mrf.mxu0  ;;  %v1677_v55 = vrot.slane %v1676_v46, 2  ;;  %v1705_v58 = vrot.slane %v1704_v50, 2 }
 0x19e   :  { %v2991_v27 = vadd.f32 %v2974_v19, %v214_v26  ;;  %v3006_v32 = vadd.f32 %v2974_v19, %v202_v29 }
 0x19f   :  { %v1678_v5 = vadd.f32 %v1677_v55, %v1676_v46  ;;  %v1706_v6 = vadd.f32 %v1705_v58, %v1704_v50 }
 0x1a0   :  { %v3001_v30 = vsel %vm5591_vm3, %v2991_v27, -1e+30  ;;  %v3013_v35 = vsel %vm5591_vm3, %v3006_v32, -1e+30  ;;  %v1681_v43 = vsel %vm1673_vm5, %v3006_v32, 0.0  ;;  %v1709_v44 = vsel %vm1673_vm5, %v2991_v27, 0.0 }
 0x1a1   :  { %v283_v33 = vsel %vm267_vm4, %v3001_v30, -inf  ;;  %v271_v38 = vsel %vm267_vm4, %v3013_v35, -inf  ;;  %v1682_v51 = vrot.slane %v1681_v43, 4  ;;  %v1710_v52 = vrot.slane %v1709_v44, 4 }
 0x1a2   :  { %281 = vmax.xlane.f32.xlu1 %v280_v31  ;;  %284 = vmax.xlane.f32.xlu2 %v283_v33  ;;  %v1679_v16 = vrot.slane %v1678_v5, 1  ;;  %v1707_v20 = vrot.slane %v1706_v6, 1 }
 0x1a3   :  { %v1683_v59 = vadd.f32 %v1682_v51, %v1681_v43  ;;  %v1711_v60 = vadd.f32 %v1710_v52, %v1709_v44 }
 0x1a4   :  { %v1680_v33 = vadd.f32 %v1679_v16, %v1678_v5  ;;  %v1708_v39 = vadd.f32 %v1707_v20, %v1706_v6 }
 0x1a5   :  { %v223_v42 = vpop.f32.mrf.mxu2  ;;  %v235_v45 = vpop.f32.mrf.mxu3  ;;  %v1684_v7 = vrot.slane %v1683_v59, 2  ;;  %v1712_v8 = vrot.slane %v1711_v60, 2 }
 0x1a6   :  { %v3026_v48 = vadd.f32 %v2974_v19, %v223_v42  ;;  %v205_v49 = vpop.f32.mrf.mxu0  ;;  %v3029_v53 = vadd.f32 %v2974_v19, %v235_v45  ;;  %v217_v1 = vpop.f32.mrf.mxu1 }
 0x1a7   :  { %v3032_v54 = vadd.f32 %v2974_v19, %v205_v49  ;;  %v3046_v10 = vadd.f32 %v2974_v19, %v217_v1  ;;  %v1685_v18 = vadd.f32 %v1684_v7, %v1683_v59  ;;  %v1713_v21 = vadd.f32 %v1712_v8, %v1711_v60 }
 0x1a8   :  { %v1730_v57 = vsel %vm1673_vm5, %v3026_v48, 0.0  ;;  %v1758_v61 = vsel %vm1673_vm5, %v3029_v53, 0.0  ;;  %v3043_v2 = vsel %vm5591_vm3, %v3029_v53, -1e+30 }
 0x1a9   :  { %5624 = vst [vmem:[#allocation2_spill] sm:$0xff] %v3032_v54  ;;  %v1731_v62 = vrot.slane %v1730_v57, 4  ;;  %v1688_v0 = vsel %vm1673_vm5, %v3032_v54, 0.0  ;;  %v1759_v4 = vrot.slane %v1758_v61, 4  ;;  %v304_v11 = vsel %vm267_vm4, %v3043_v2, -inf }
 0x1aa   :  { %272 = vmax.xlane.f32.xlu1 %v271_v38  ;;  %v1689_v9 = vrot.slane %v1688_v0, 4  ;;  %5625 = vst [vmem:[#allocation3_spill] sm:$0xff] %v3046_v10  ;;  %v3053_v12 = vsel %vm5591_vm3, %v3032_v54, -1e+30  ;;  %305 = vmax.xlane.f32.xlu0 %v304_v11  ;;  %v1716_v26 = vsel %vm1673_vm5, %v3046_v10, 0.0  ;;  %v1686_v34 = vrot.slane %v1685_v18, 1 }
 0x1ab   :  { %v1732_v13 = vadd.f32 %v1731_v62, %v1730_v57  ;;  %v274_v14 = vsel %vm267_vm4, %v3053_v12, -inf  ;;  %v1760_v15 = vadd.f32 %v1759_v4, %v1758_v61  ;;  %v1717_v36 = vrot.slane %v1716_v26, 4 }
 0x1ac   :  { %275 = vmax.xlane.f32.xlu2 %v274_v14  ;;  %v1690_v24 = vadd.f32 %v1689_v9, %v1688_v0  ;;  %v3059_v38 = vsel %vm1791_vm6, %v2618_v40, %v1790_v17  ;;  %v1714_v41 = vrot.slane %v1713_v21, 1  ;;  %v1687_v47 = vadd.f32 %v1686_v34, %v1685_v18 }
 0x1ad   :  { %v1733_v29 = vrot.slane %v1732_v13, 2  ;;  %v1761_v31 = vrot.slane %v1760_v15, 2  ;;  %v226_v37 = vpop.f32.mrf.mxu2  ;;  %v1793_v46 = vmul.f32 %v3059_v38, %v1680_v33  ;;  %v1718_v49 = vadd.f32 %v1717_v36, %v1716_v26  ;;  %v238_v57 = vpop.f32.mrf.mxu3 }
 0x1ae   :  { %v1691_v42 = vrot.slane %v1690_v24, 2  ;;  %v3062_v45 = vadd.f32 %v2974_v19, %v226_v37  ;;  %v1797_v50 = vmul.f32 %v3059_v38, %v1708_v39  ;;  %v1715_v51 = vadd.f32 %v1714_v41, %v1713_v21  ;;  %v208_v9 = vpop.f32.mrf.mxu0  ;;  %v220_v34 = vpop.f32.mrf.mxu1 }
 0x1af   :  { %v1734_v43 = vadd.f32 %v1733_v29, %v1732_v13  ;;  %v1762_v44 = vadd.f32 %v1761_v31, %v1760_v15  ;;  %v2516_v58 = vmul.f32 -1.442695, %v1793_v46  ;;  %v1794_v59 = vmul.f32 %v3059_v38, %v1687_v47 }
 0x1b0   :  { %5626 = vst [vmem:[#allocation4_spill] sm:$0xff] %v3062_v45  ;;  %v1692_v52 = vadd.f32 %v1691_v42, %v1690_v24  ;;  %v1737_v40 = vsel %vm1673_vm5, %v3062_v45, 0.0  ;;  %v1719_v60 = vrot.slane %v1718_v49, 2  ;;  %v2520_v61 = vmul.f32 -1.442695, %v1797_v50 }
 0x1b1   :  { %v1735_v55 = vrot.slane %v1734_v43, 1  ;;  %v1763_v56 = vrot.slane %v1762_v44, 1  ;;  %v1798_v62 = vmul.f32 %v3059_v38, %v1715_v51  ;;  %v1738_v3 = vrot.slane %v1737_v40, 4 }
 0x1b2   :  { %v1693_v0 = vrot.slane %v1692_v52, 1  ;;  %v3071_v4 = vadd.f32 %v2974_v19, %v238_v57  ;;  %v3076_v5 = vsel %vm5591_vm3, %v3062_v45, -1e+30  ;;  %2619 = vpow2.f32 %v2516_v58 }
 0x1b3   :  { %v1736_v1 = vadd.f32 %v1735_v55, %v1734_v43  ;;  %v1764_v6 = vadd.f32 %v1763_v56, %v1762_v44  ;;  %v2517_v7 = vmul.f32 -1.442695, %v1794_v59  ;;  %v1720_v8 = vadd.f32 %v1719_v60, %v1718_v49 }
 0x1b4   :  { %5627 = vst [vmem:[#allocation5_spill] sm:$0xff] %v3071_v4  ;;  %2621 = vpow2.f32 %v2520_v61  ;;  %v2521_v11 = vmul.f32 -1.442695, %v1798_v62  ;;  %v1694_v13 = vadd.f32 %v1693_v0, %v1692_v52  ;;  %v295_v14 = vsel %vm267_vm4, %v3076_v5, -inf }
 0x1b5   :  { %v1801_v15 = vmul.f32 %v3059_v38, %v1736_v1  ;;  %v1739_v16 = vadd.f32 %v1738_v3, %v1737_v40  ;;  %v1765_v17 = vsel %vm1673_vm5, %v3071_v4, 0.0  ;;  %296 = vmax.xlane.f32.xlu2 %v295_v14  ;;  %v3086_v18 = vsel %vm5591_vm3, %v3026_v48, -1e+30  ;;  %v229_v26 = vpop.f32.mrf.mxu2  ;;  %v241_v1 = vpop.f32.mrf.mxu3 }
 0x1b6   :  { %v1805_v20 = vmul.f32 %v3059_v38, %v1764_v6  ;;  %v3090_v21 = vadd.f32 %v2974_v19, %v208_v9  ;;  %v292_v24 = vsel %vm267_vm4, %v3086_v18, -inf  ;;  %2623 = vpow2.f32 %v2517_v7 }
 0x1b7   :  { %v1721_v29 = vrot.slane %v1720_v8, 1  ;;  %293 = vmax.xlane.f32.xlu1 %v292_v24  ;;  %v1795_v31 = vmul.f32 %v3059_v38, %v1694_v13  ;;  %v1766_v33 = vrot.slane %v1765_v17, 4  ;;  %2625 = vpow2.f32 %v2521_v11 }
 0x1b8   :  { %5628 = vst [vmem:[#allocation6_spill] sm:$0xff] %v3090_v21  ;;  %v2620_v36 = vpop.eup %2619  ;;  %v2524_v37 = vmul.f32 -1.442695, %v1801_v15  ;;  %v1740_v39 = vrot.slane %v1739_v16, 2  ;;  %v2528_v42 = vmul.f32 -1.442695, %v1805_v20  ;;  %v3098_v46 = vadd.f32 %v2974_v19, %v220_v34 }
 0x1b9   :  { %v1695_v43 = vsel %vm1673_vm5, %v3090_v21, 0.0  ;;  %v1722_v44 = vadd.f32 %v1721_v29, %v1720_v8  ;;  %v2518_v47 = vmul.f32 -1.442695, %v1795_v31  ;;  %v1767_v49 = vadd.f32 %v1766_v33, %v1765_v17 }
 0x1ba   :  { %v2622_v41 = vpop.eup %2621  ;;  %5629 = vst [vmem:[#allocation7_spill] sm:$0xff] %v3098_v46  ;;  %v3103_v50 = vsel %vm5591_vm3, %v3090_v21, -1e+30  ;;  %2627 = vpow2.f32 %v2524_v37  ;;  %v1741_v52 = vadd.f32 %v1740_v39, %v1739_v16  ;;  %v1696_v55 = vrot.slane %v1695_v43, 4 }
 0x1bb   :  { %v3105_v56 = vadd.f32 1.0, %v2620_v36  ;;  %v3107_v40 = vadd.f32 1.0, %v2622_v41  ;;  %2629 = vpow2.f32 %v2528_v42  ;;  %v1799_v58 = vmul.f32 %v3059_v38, %v1722_v44 }
 0x1bc   :  { %v2624_v51 = vpop.eup %2623  ;;  %v1723_v59 = vsel %vm1673_vm5, %v3098_v46, 0.0  ;;  %v277_v60 = vsel %vm267_vm4, %v3103_v50, -inf  ;;  %v3117_v61 = vsel %vm5591_vm3, %v3046_v10, -1e+30  ;;  %2631 = vpow2.f32 %v2518_v47 }
 0x1bd   :  { %v2626_v57 = vpop.eup %2625  ;;  %v3119_v62 = vadd.f32 1.0, %v2624_v51  ;;  %v1768_v0 = vrot.slane %v1767_v49, 2  ;;  %278 = vmax.xlane.f32.xlu2 %v277_v60  ;;  %v286_v3 = vsel %vm267_vm4, %v3117_v61, -inf  ;;  %v232_v6 = vpop.f32.mrf.mxu2  ;;  %v1742_v7 = vrot.slane %v1741_v52, 1 }
 0x1be   :  { %v1697_v8 = vadd.f32 %v1696_v55, %v1695_v43  ;;  %v3124_v9 = vadd.f32 %v2974_v19, %v229_v26  ;;  %2633 = vrcp.f32 %v3105_v56  ;;  %v3127_v11 = vadd.f32 1.0, %v2626_v57  ;;  %v244_v60 = vpop.f32.mrf.mxu3 }
 0x1bf   :  { %287 = vmax.xlane.f32.xlu1 %v286_v3  ;;  %v1724_v13 = vrot.slane %v1723_v59, 4  ;;  %2635 = vrcp.f32 %v3107_v40  ;;  %v2522_v15 = vmul.f32 -1.442695, %v1799_v58  ;;  %v3131_v16 = vadd.f32 %v2974_v19, %v232_v6 }
 0x1c0   :  { %5630 = vst [vmem:[#allocation8_spill] sm:$0xff] %v3124_v9  ;;  %v2628_v14 = vpop.eup %2627  ;;  %2637 = vrcp.f32 %v3119_v62  ;;  %v1769_v20 = vadd.f32 %v1768_v0, %v1767_v49  ;;  %v1743_v24 = vadd.f32 %v1742_v7, %v1741_v52  ;;  %v1698_v26 = vrot.slane %v1697_v8, 2 }
 0x1c1   :  { %5631 = vst [vmem:[#allocation9_spill] sm:$0xff] %v3131_v16  ;;  %v2630_v17 = vpop.eup %2629  ;;  %v1744_v29 = vsel %vm1673_vm5, %v3124_v9, 0.0  ;;  %v3139_v31 = vsel %vm5591_vm3, %v3098_v46, -1e+30  ;;  %2639 = vrcp.f32 %v3127_v11  ;;  %v1725_v34 = vadd.f32 %v1724_v13, %v1723_v59 }
 0x1c2   :  { %v2632_v33 = vpop.eup %2631  ;;  %v3142_v36 = vadd.f32 1.0, %v2628_v14  ;;  %2641 = vpow2.f32 %v2522_v15  ;;  %v1751_v37 = vsel %vm1673_vm5, %v3131_v16, 0.0  ;;  %v3148_v41 = vadd.f32 1.0, %v2630_v17 }
 0x1c3   :  { %v1770_v42 = vrot.slane %v1769_v20, 1  ;;  %v1745_v43 = vrot.slane %v1744_v29, 4  ;;  %v289_v44 = vsel %vm267_vm4, %v3139_v31, -inf  ;;  %v3154_v49 = vadd.f32 1.0, %v2632_v33 }
 0x1c4   :  { %v3146_v39 = vpop.eup %2633  ;;  %v1802_v51 = vmul.f32 %v3059_v38, %v1743_v24  ;;  %v1699_v52 = vadd.f32 %v1698_v26, %v1697_v8  ;;  %v3160_v55 = vsel %vm5591_vm3, %v3071_v4, -1e+30  ;;  %v1726_v58 = vrot.slane %v1725_v34, 2 }
 0x1c5   :  { %v3152_v47 = vpop.eup %2635  ;;  %290 = vmax.xlane.f32.xlu2 %v289_v44  ;;  %v1752_v59 = vrot.slane %v1751_v37, 4  ;;  %v307_v0 = vsel %vm267_vm4, %v3160_v55, -inf  ;;  %2643 = vrcp.f32 %v3142_v36  ;;  %v2814_v3 = vmov 15  }
 0x1c6   :  { %v3162_v57 = vpop.eup %2637  ;;  %2575 = vset.pattern.permute.xlu0 %v2814_v3  ;;  %v1874_v6 = vmul.f32 %v3146_v39, %v3105_v56  ;;  %2645 = vrcp.f32 %v3148_v41  ;;  %v1771_v8 = vadd.f32 %v1770_v42, %v1769_v20  ;;  %v1746_v13 = vadd.f32 %v1745_v43, %v1744_v29  ;;  %2573 = vset.pattern.permute.xlu2 %v2814_v3 }
 0x1c7   :  { %308 = vmax.xlane.f32.xlu1 %v307_v0  ;;  %v3169_v7 = vpop.eup %2639  ;;  %v3173_v14 = vadd.f32 %v2974_v19, %v241_v1  ;;  %2647 = vrcp.f32 %v3154_v49  ;;  %v3177_v17 = vadd.f32 %v2974_v19, %v244_v60  ;;  %v2525_v26 = vmul.f32 -1.442695, %v1802_v51 }
 0x1c8   :  { %2574 = vset.pattern.permute.xlu1 %v2814_v3  ;;  %v2642_v15 = vpop.eup %2641  ;;  %v1875_v24 = vsub.f32 1.0, %v1874_v6  ;;  %v1700_v33 = vrot.slane %v1699_v52, 1  ;;  %v1727_v44 = vadd.f32 %v1726_v58, %v1725_v34  ;;  %v1753_v0 = vadd.f32 %v1752_v59, %v1751_v37 }
 0x1c9   :  { %5632 = vst [vmem:[#allocation10_spill] sm:$0xff] %v3173_v14  ;;  %vm1879_vm7 = vweird.f32 %v3146_v39  ;;  %v1882_v1 = vand.u32 2147483647, %v3105_v56  ;;  %v1884_v20 = vand.u32 2147483648, %v3105_v56  ;;  %v3183_v29 = vadd.f32 1.0, %v2642_v15 }
 0x1ca   :  { %5633 = vst [vmem:[#allocation11_spill] sm:$0xff] %v3177_v17  ;;  %v1876_v46 = vmul.f32 %v3146_v39, %v1875_v24  ;;  %v1806_v42 = vmul.f32 %v3059_v38, %v1771_v8  ;;  %v1747_v43 = vrot.slane %v1746_v13, 2  ;;  %v1772_v19 = vsel %vm1673_vm5, %v3173_v14, 0.0 }
 0x1cb   :  { %v3188_v51 = vpop.eup %2643  ;;  %v1779_v34 = vsel %vm1673_vm5, %v3177_v17, 0.0  ;;  %vm1878_vm8 = vweird.f32 %v3105_v56  ;;  %v3197_v58 = vsel %vm5591_vm3, %v3173_v14, -1e+30  ;;  %v1701_v60 = vadd.f32 %v1700_v33, %v1699_v52 }
 0x1cc   :  { %v1877_v37 = vadd.f32 %v3146_v39, %v1876_v46  ;;  %v3199_v59 = vpop.eup %2645  ;;  %v1754_v3 = vrot.slane %v1753_v0, 2  ;;  %vm1880_vm9 = vmor %vm1878_vm8, %vm1879_vm7  ;;  %v1885_v6 = vor.u32 1.1754944e-38, %v1884_v20  ;;  %v310_v8 = vsel %vm267_vm4, %v3197_v58, -inf  ;;  %v3207_v46 = vpop.permute.xlu1 %2129 }
 0x1cd   :  { %v3205_v15 = vpop.eup %2647  ;;  %vm1883_vm10 = vcmp.eq.f32.partialorder %v1882_v1, 8.507059e+37  ;;  %311 = vmax.xlane.f32.xlu2 %v310_v8  ;;  %v3213_v52 = vsel %vm5591_vm3, %v3124_v9, -1e+30  ;;  %v1949_v24 = vmul.f32 %v3169_v7, %v3127_v11  ;;  %v1728_v33 = vrot.slane %v1727_v44, 1 }
 0x1ce   :  { %v1881_v56 = vsel %vm1880_vm9, %v3146_v39, %v1877_v37  ;;  %v1773_v20 = vrot.slane %v1772_v19, 4  ;;  %v1780_v14 = vrot.slane %v1779_v34, 4  ;;  %v1748_v4 = vadd.f32 %v1747_v43, %v1746_v13 }
 0x1cf   :  { %v3217_v21 = vsel %vm1883_vm10, %v1885_v6, %v1881_v56  ;;  %v298_v39 = vsel %vm267_vm4, %v3213_v52, -inf  ;;  %v1950_v1 = vsub.f32 1.0, %v1949_v24  ;;  %2649 = vpow2.f32 %v2525_v26 }
 0x1d0   :  { %vm2113_vm11 = vcmp.eq.f32.partialorder %v3217_v21, %v3217_v21  ;;  %v1755_v37 = vadd.f32 %v1754_v3, %v1753_v0  ;;  %299 = vmax.xlane.f32.xlu1 %v298_v39  ;;  %v2529_v9 = vmul.f32 -1.442695, %v1806_v42  ;;  %v1796_v45 = vmul.f32 %v3059_v38, %v1701_v60 }
 0x1d1   :  { %v2131_v8 = vsel %vm2113_vm11, %v3207_v46, 1  ;;  %v1951_v6 = vmul.f32 %v3169_v7, %v1950_v1  ;;  %v1729_v56 = vadd.f32 %v1728_v33, %v1727_v44  ;;  %v1774_v13 = vadd.f32 %v1773_v20, %v1772_v19 }
 0x1d2   :  { %v2147_v10 = vcvt.s32.f32 %v2131_v8  ;;  %v1781_v43 = vadd.f32 %v1780_v14, %v1779_v34  ;;  %v3229_v54 = vsel %vm5591_vm3, %v3131_v16, -1e+30  ;;  %2651 = vrcp.f32 %v3183_v29 }
 0x1d3   :  { %v1749_v26 = vrot.slane %v1748_v4, 1  ;;  %v1952_v0 = vadd.f32 %v3169_v7, %v1951_v6  ;;  %vm1954_vm12 = vweird.f32 %v3169_v7  ;;  %v1756_v42 = vrot.slane %v1755_v37, 1 }
 0x1d4   :  { %2298 = vperm.xlu0 %2575, %v2147_v10   ;;  %v1959_v60 = vand.u32 2147483648, %v3127_v11  ;;  %v301_v44 = vsel %vm267_vm4, %v3229_v54, -inf  ;;  %v3240_v14 = vsel %vm5591_vm3, %v3177_v17, -1e+30  ;;  %2653 = vpow2.f32 %v2529_v9 }
 0x1d5   :  { %vm1953_vm13 = vweird.f32 %v3127_v11  ;;  %v1957_v10 = vand.u32 2147483647, %v3127_v11  ;;  %302 = vmax.xlane.f32.xlu2 %v301_v44  ;;  %v1889_v19 = vmul.f32 %v3162_v57, %v3119_v62  ;;  %v2650_v34 = vpop.eup %2649  ;;  %v2519_v3 = vmul.f32 -1.442695, %v1796_v45 }
 0x1d6   :  { %v1800_v24 = vmul.f32 %v3059_v38, %v1729_v56  ;;  %v1775_v33 = vrot.slane %v1774_v13, 2  ;;  %v1782_v20 = vrot.slane %v1781_v43, 2  ;;  %vm3249_vm14 = vmor %vm1953_vm13, %vm1954_vm12  ;;  %v1750_v9 = vadd.f32 %v1749_v26, %v1748_v4 }
 0x1d7   :  { %v1956_v11 = vsel %vm3249_vm14, %v3169_v7, %v1952_v0  ;;  %v313_v1 = vsel %vm267_vm4, %v3240_v14, -inf  ;;  %v1890_v8 = vsub.f32 1.0, %v1889_v19  ;;  %v1757_v45 = vadd.f32 %v1756_v42, %v1755_v37 }
 0x1d8   :  { %v1960_v6 = vor.u32 1.1754944e-38, %v1959_v60  ;;  %314 = vmax.xlane.f32.xlu1 %v313_v1  ;;  %v1899_v56 = vand.u32 2147483648, %v3119_v62  ;;  %v1994_v44 = vmul.f32 %v3188_v51, %v3142_v36  ;;  %v3261_v17 = vpop.eup %2651  ;;  %vm1958_vm15 = vcmp.eq.f32.partialorder %v1957_v10, 8.507059e+37 }
 0x1d9   :  { %v1891_v4 = vmul.f32 %v3162_v57, %v1890_v8  ;;  %vm1894_vm0 = vweird.f32 %v3162_v57  ;;  %v1897_v7 = vand.u32 2147483647, %v3119_v62  ;;  %2655 = vpow2.f32 %v2519_v3 }
 0x1da   :  { %v2523_v26 = vmul.f32 -1.442695, %v1800_v24  ;;  %v1783_v0 = vadd.f32 %v1782_v20, %v1781_v43  ;;  %v3266_v37 = vsel %vm1958_vm15, %v1960_v6, %v1956_v11  ;;  %v2654_v42 = vpop.eup %2653  ;;  %v3268_v60 = vadd.f32 1.0, %v2650_v34 }
 0x1db   :  { %v1892_v19 = vadd.f32 %v3162_v57, %v1891_v4  ;;  %vm1893_vm1 = vweird.f32 %v3119_v62  ;;  %v1995_v10 = vsub.f32 1.0, %v1994_v44  ;;  %v1803_v39 = vmul.f32 %v3059_v38, %v1750_v9 }
 0x1dc   :  { %2414 = vperm.xlu0 %2575, %v3266_v37   ;;  %v1776_v1 = vadd.f32 %v1775_v33, %v1774_v13  ;;  %v1804_v8 = vmul.f32 %v3059_v38, %v1757_v45  ;;  %vm1895_vm5 = vmor %vm1893_vm1, %vm1894_vm0  ;;  %v1900_v43 = vor.u32 1.1754944e-38, %v1899_v56  ;;  %vm1898_vm6 = vcmp.eq.f32.partialorder %v1897_v7, 8.507059e+37 }
 0x1dd   :  { %v1896_v3 = vsel %vm1895_vm5, %v3162_v57, %v1892_v19  ;;  %vm2163_vm7 = vcmp.ge.f32.partialorder %v3217_v21, 0.4  ;;  %2657 = vpow2.f32 %v2523_v26  ;;  %v1784_v34 = vrot.slane %v1783_v0, 1 }
 0x1de   :  { %v3279_v24 = vsel %vm1898_vm6, %v1900_v43, %v1896_v3  ;;  %v1934_v62 = vmul.f32 %v3152_v47, %v3107_v40  ;;  %2659 = vrcp.f32 %v3268_v60  ;;  %v1996_v13 = vmul.f32 %v3188_v51, %v1995_v10 }
 0x1df   :  { %vm2164_vm8 = vcmp.ge.f32.partialorder %v3279_v24, 0.4  ;;  %v1904_v33 = vmul.f32 %v3205_v15, %v3154_v49  ;;  %v2656_v57 = vpop.eup %2655  ;;  %v3288_v20 = vadd.f32 1.0, %v2654_v42  ;;  %v5584_v9 = vmov 0.0  }
 0x1e0   :  { %v2532_v11 = vsel %vm2163_vm7, 1.0, %v5584_v9  ;;  %v2533_v45 = vsel %vm2164_vm8, 1.0, %v5584_v9  ;;  %v1935_v6 = vsub.f32 1.0, %v1934_v62  ;;  %v2526_v56 = vmul.f32 -1.442695, %v1803_v39 }
 0x1e1   :  { %v1777_v44 = vrot.slane %v1776_v1, 1  ;;  %v2527_v4 = vmul.f32 -1.442695, %v1804_v8  ;;  %v2576_v7 = vpack.i.bf16 %v2533_v45, %v2532_v11  ;;  %v1785_v26 = vadd.f32 %v1784_v34, %v1783_v0 }
 0x1e2   :  { %vm1998_vm9 = vweird.f32 %v3142_v36  ;;  %vm1999_vm10 = vweird.f32 %v3188_v51  ;;  %v1936_v19 = vmul.f32 %v3152_v47, %v1935_v6  ;;  %v1997_v42 = vadd.f32 %v3188_v51, %v1996_v13 }
 0x1e3   :  { %v1905_v10 = vsub.f32 1.0, %v1904_v33  ;;  %vm1939_vm11 = vweird.f32 %v3152_v47  ;;  %v2054_v43 = vmul.f32 %v3199_v59, %v3148_v41  ;;  %v3299_v39 = vpop.eup %2657  ;;  %v2002_v8 = vand.u32 2147483647, %v3142_v36  ;;  %vm3309_vm12 = vmor %vm1998_vm9, %vm1999_vm10 }
 0x1e4   :  { %2577 = vperm.xlu0 %2575, %v2576_v7   ;;  %v2004_v0 = vand.u32 2147483648, %v3142_v36  ;;  %v1937_v3 = vadd.f32 %v3152_v47, %v1936_v19  ;;  %v1944_v34 = vand.u32 2147483648, %v3107_v40  ;;  %v3305_v62 = vpop.eup %2659  ;;  %2661 = vpow2.f32 %v2527_v4 }
 0x1e5   :  { %vm1938_vm13 = vweird.f32 %v3107_v40  ;;  %v1942_v33 = vand.u32 2147483647, %v3107_v40  ;;  %v2055_v11 = vsub.f32 1.0, %v2054_v43  ;;  %v3315_v45 = vadd.f32 1.0, %v2656_v57 }
 0x1e6   :  { %2663 = vpow2.f32 %v2526_v56  ;;  %v1808_v6 = vmul.f32 %v3059_v38, %v1785_v26  ;;  %vm3320_vm14 = vmor %vm1938_vm13, %vm1939_vm11  ;;  %v1964_v36 = vmul.f32 %v3261_v17, %v3183_v29  ;;  %v2001_v7 = vsel %vm3309_vm12, %v3188_v51, %v1997_v42 }
 0x1e7   :  { %v1906_v40 = vmul.f32 %v3205_v15, %v1905_v10  ;;  %v1941_v57 = vsel %vm3320_vm14, %v3152_v47, %v1937_v3  ;;  %v2056_v56 = vmul.f32 %v3199_v59, %v2055_v11  ;;  %v1778_v26 = vadd.f32 %v1777_v44, %v1776_v1 }
 0x1e8   :  { %vm2003_vm15 = vcmp.eq.f32.partialorder %v2002_v8, 8.507059e+37  ;;  %v2005_v19 = vor.u32 1.1754944e-38, %v2004_v0  ;;  %v1945_v43 = vor.u32 1.1754944e-38, %v1944_v34  ;;  %vm1943_vm0 = vcmp.eq.f32.partialorder %v1942_v33, 8.507059e+37 }
 0x1e9   :  { %v2057_v9 = vadd.f32 %v3199_v59, %v2056_v56  ;;  %vm2059_vm1 = vweird.f32 %v3199_v59  ;;  %v1965_v16 = vsub.f32 1.0, %v1964_v36  ;;  %v2531_v13 = vmul.f32 -1.442695, %v1808_v6 }
 0x1ea   :  { %v3336_v51 = vsel %vm2003_vm15, %v2005_v19, %v2001_v7  ;;  %v3338_v42 = vsel %vm1943_vm0, %v1945_v43, %v1941_v57  ;;  %v2064_v10 = vand.u32 2147483648, %v3148_v41  ;;  %v2662_v47 = vpop.eup %2661  ;;  %v1907_v1 = vadd.f32 %v3205_v15, %v1906_v40 }
 0x1eb   :  { %vm1909_vm5 = vweird.f32 %v3205_v15  ;;  %vm2058_vm6 = vweird.f32 %v3148_v41  ;;  %v2062_v44 = vand.u32 2147483647, %v3148_v41  ;;  %2665 = vrcp.f32 %v3315_v45 }
 0x1ec   :  { %2426 = vperm.xlu0 %2575, %v3336_v51   ;;  %v2664_v8 = vpop.eup %2663  ;;  %vm1908_vm7 = vweird.f32 %v3154_v49  ;;  %v1912_v0 = vand.u32 2147483647, %v3154_v49  ;;  %v1914_v3 = vand.u32 2147483648, %v3154_v49  ;;  %vm3352_vm8 = vmor %vm2058_vm6, %vm2059_vm1  ;;  %vm2117_vm9 = vcmp.eq.f32.partialorder %v3338_v42, %v3338_v42 }
 0x1ed   :  { %2394 = vperm.xlu2 %2573, %v3217_v21   ;;  %v2061_v41 = vsel %vm3352_vm8, %v3199_v59, %v2057_v9  ;;  %v1966_v33 = vmul.f32 %v3261_v17, %v1965_v16  ;;  %v2009_v49 = vmul.f32 %v3305_v62, %v3268_v60  ;;  %2667 = vrcp.f32 %v3288_v20  ;;  %vm3371_vm10 = vmor %vm1908_vm7, %vm1909_vm5 }
 0x1ee   :  { %v1807_v11 = vmul.f32 %v3059_v38, %v1778_v26  ;;  %v3367_v6 = vadd.f32 1.0, %v2662_v47  ;;  %v2065_v4 = vor.u32 1.1754944e-38, %v2064_v10  ;;  %2669 = vpow2.f32 %v2531_v13 }
 0x1ef   :  { %v1911_v16 = vsel %vm3371_vm10, %v3205_v15, %v1907_v1  ;;  %vm2063_vm11 = vcmp.eq.f32.partialorder %v2062_v44, 8.507059e+37  ;;  %v3378_v59 = vadd.f32 1.0, %v2664_v8  ;;  %v1915_v9 = vor.u32 1.1754944e-38, %v1914_v3 }
 0x1f0   :  { %v3380_v36 = vsel %vm2063_vm11, %v2065_v4, %v2061_v41  ;;  %v2135_v38 = vsel %vm2117_vm9, %v3207_v46, 1  ;;  %vm1913_vm12 = vcmp.eq.f32.partialorder %v1912_v0, 8.507059e+37  ;;  %v1967_v7 = vadd.f32 %v3261_v17, %v1966_v33 }
 0x1f1   :  { %2410 = vperm.xlu1 %2574, %v3338_v42   ;;  %vm1969_vm13 = vweird.f32 %v3261_v17  ;;  %v2010_v40 = vsub.f32 1.0, %v2009_v49  ;;  %v3386_v57 = vpop.eup %2665  ;;  %v2530_v56 = vmul.f32 -1.442695, %v1807_v11  ;;  %2671 = vrcp.f32 %v3367_v6 }
 0x1f2   :  { %v3389_v15 = vsel %vm1913_vm12, %v1915_v9, %v1911_v16  ;;  %v1974_v26 = vand.u32 2147483648, %v3183_v29  ;;  %vm2125_vm14 = vcmp.eq.f32.partialorder %v3380_v36, %v3380_v36  ;;  %v2151_v19 = vcvt.s32.f32 %v2135_v38 }
 0x1f3   :  { %vm1968_vm15 = vweird.f32 %v3183_v29  ;;  %v1972_v43 = vand.u32 2147483647, %v3183_v29  ;;  %v3397_v13 = vpop.eup %2667  ;;  %2673 = vrcp.f32 %v3378_v59  ;;  %vm2114_vm1 = vcmp.eq.f32.partialorder %v3279_v24, %v3279_v24 }
 0x1f4   :  { %2402 = vperm.xlu0 %2575, %v3389_v15   ;;  %vm1970_vm0 = vmor %vm1968_vm15, %vm1969_vm13  ;;  %v2670_v10 = vpop.eup %2669  ;;  %v2011_v1 = vmul.f32 %v3305_v62, %v2010_v40  ;;  %v1919_v44 = vmul.f32 %v3386_v57, %v3315_v45  ;;  %v2143_v8 = vsel %vm2125_vm14, %v3207_v46, 1  ;;  %v1975_v29 = vor.u32 1.1754944e-38, %v1974_v26 }
 0x1f5   :  { %2314 = vperm.xlu2 %2573, %v2151_v19   ;;  %v1971_v47 = vsel %vm1970_vm0, %v3261_v17, %v1967_v7  ;;  %2675 = vpow2.f32 %v2530_v56  ;;  %vm1973_vm5 = vcmp.eq.f32.partialorder %v1972_v43, 8.507059e+37  ;;  %v3409_v3 = vadd.f32 1.0, %v2670_v10 }
 0x1f6   :  { %vm2168_vm6 = vcmp.ge.f32.partialorder %v3266_v37, 0.4  ;;  %v3412_v17 = vsel %vm1973_vm5, %v1975_v29, %v1971_v47  ;;  %v2132_v34 = vsel %vm2114_vm1, %v3207_v46, 1  ;;  %v2159_v41 = vcvt.s32.f32 %v2143_v8 }
 0x1f7   :  { %v3407_v0 = vpop.eup %2671  ;;  %v2012_v33 = vadd.f32 %v3305_v62, %v2011_v1  ;;  %vm2014_vm7 = vweird.f32 %v3305_v62  ;;  %v1920_v49 = vsub.f32 1.0, %v1919_v44  ;;  %vm2167_vm8 = vcmp.ge.f32.partialorder %v3338_v42, 0.4 }
 0x1f8   :  { %v2019_v21 = vand.u32 2147483648, %v3268_v60  ;;  %vm2119_vm9 = vcmp.eq.f32.partialorder %v3412_v17, %v3412_v17  ;;  %v2148_v4 = vcvt.s32.f32 %v2132_v34  ;;  %vm2013_vm10 = vweird.f32 %v3268_v60 }
 0x1f9   :  { %2398 = vperm.xlu1 %2574, %v3279_v24   ;;  %v3418_v11 = vpop.eup %2673  ;;  %v2017_v24 = vand.u32 2147483647, %v3268_v60  ;;  %2677 = vrcp.f32 %v3409_v3  ;;  %v5644_v16 = vmov 0.0   ;;  %vm3430_vm11 = vmor %vm2013_vm10, %vm2014_vm7  ;;  %v2039_v7 = vmul.f32 %v3407_v0, %v3367_v6 }
 0x1fa   :  { %v2537_v9 = vsel %vm2168_vm6, 1.0, %v5644_v16  ;;  %v3437_v56 = vadd.f32 1.0, %v3299_v39  ;;  %v2016_v60 = vsel %vm3430_vm11, %v3305_v62, %v2012_v33  ;;  %v1921_v26 = vmul.f32 %v3386_v57, %v1920_v49 }
 0x1fb   :  { %v2676_v40 = vpop.eup %2675  ;;  %v2069_v19 = vmul.f32 %v3397_v13, %v3288_v20  ;;  %v2137_v43 = vsel %vm2119_vm9, %v3207_v46, 1  ;;  %v2536_v10 = vsel %vm2167_vm8, 1.0, %v5644_v16  ;;  %v2020_v47 = vor.u32 1.1754944e-38, %v2019_v21 }
 0x1fc   :  { %2346 = vperm.xlu0 %2575, %v2159_v41   ;;  %v2024_v39 = vmul.f32 %v3418_v11, %v3378_v59  ;;  %v2581_v1 = vpack.i.bf16 %v2537_v9, %v2536_v10  ;;  %vm2018_vm12 = vcmp.eq.f32.partialorder %v2017_v24, 8.507059e+37  ;;  %v3451_v8 = vadd.f32 1.0, %v2676_v40 }
 0x1fd   :  { %2302 = vperm.xlu2 %2573, %v2148_v4   ;;  %v2070_v44 = vsub.f32 1.0, %v2069_v19  ;;  %vm2118_vm13 = vcmp.eq.f32.partialorder %v3266_v37, %v3266_v37  ;;  %v3455_v62 = vsel %vm2018_vm12, %v2020_v47, %v2016_v60  ;;  %v2040_v29 = vsub.f32 1.0, %v2039_v7 }
 0x1fe   :  { %v2153_v34 = vcvt.s32.f32 %v2137_v43  ;;  %v1922_v42 = vadd.f32 %v3386_v57, %v1921_v26  ;;  %vm1924_vm14 = vweird.f32 %v3386_v57  ;;  %2679 = vrcp.f32 %v3437_v56 }
 0x1ff   :  { %v2071_v41 = vmul.f32 %v3397_v13, %v2070_v44  ;;  %v3460_v33 = vpop.eup %2677  ;;  %vm1923_vm15 = vweird.f32 %v3315_v45  ;;  %v1929_v49 = vand.u32 2147483648, %v3315_v45  ;;  %v2025_v21 = vsub.f32 1.0, %v2024_v39 }
 0x200   :  { %vm2122_vm0 = vcmp.eq.f32.partialorder %v3455_v62, %v3455_v62  ;;  %v1927_v4 = vand.u32 2147483647, %v3315_v45  ;;  %vm2074_vm1 = vweird.f32 %v3397_v13  ;;  %2681 = vrcp.f32 %v3451_v8  ;;  %vm3475_vm5 = vmor %vm1923_vm15, %vm1924_vm14 }
 0x201   :  { %2582 = vperm.xlu1 %2574, %v2581_v1   ;;  %v2072_v24 = vadd.f32 %v3397_v13, %v2071_v41  ;;  %v2136_v9 = vsel %vm2118_vm13, %v3207_v46, 1  ;;  %v2041_v7 = vmul.f32 %v3407_v0, %v2040_v29  ;;  %v2079_v40 = vand.u32 2147483648, %v3288_v20 }
 0x202   :  { %v1926_v45 = vsel %vm3475_vm5, %v3386_v57, %v1922_v42  ;;  %vm2073_vm6 = vweird.f32 %v3288_v20  ;;  %v2077_v60 = vand.u32 2147483647, %v3288_v20  ;;  %v2099_v37 = vmul.f32 %v3460_v33, %v3409_v3 }
 0x203   :  { %vm2121_vm7 = vcmp.eq.f32.partialorder %v3336_v51, %v3336_v51  ;;  %v2140_v26 = vsel %vm2122_vm0, %v3207_v46, 1  ;;  %v1930_v19 = vor.u32 1.1754944e-38, %v1929_v49  ;;  %v2026_v43 = vmul.f32 %v3418_v11, %v2025_v21  ;;  %vm3495_vm8 = vmor %vm2073_vm6, %vm2074_vm1 }
 0x204   :  { %2322 = vperm.xlu0 %2575, %v2153_v34   ;;  %v2152_v57 = vcvt.s32.f32 %v2136_v9  ;;  %vm1928_vm9 = vcmp.eq.f32.partialorder %v1927_v4, 8.507059e+37  ;;  %vm2029_vm10 = vweird.f32 %v3418_v11  ;;  %v2076_v20 = vsel %vm3495_vm8, %v3397_v13, %v2072_v24  ;;  %v3503_v47 = vpop.eup %2679 }
 0x205   :  { %2418 = vperm.xlu2 %2573, %v3412_v17   ;;  %v3505_v39 = vsel %vm1928_vm9, %v1930_v19, %v1926_v45  ;;  %v2042_v1 = vadd.f32 %v3407_v0, %v2041_v7  ;;  %vm2044_vm11 = vweird.f32 %v3407_v0  ;;  %v2080_v44 = vor.u32 1.1754944e-38, %v2079_v40 }
 0x206   :  { %v2156_v29 = vcvt.s32.f32 %v2140_v26  ;;  %v2049_v34 = vand.u32 2147483648, %v3367_v6  ;;  %vm2078_vm12 = vcmp.eq.f32.partialorder %v2077_v60, 8.507059e+37  ;;  %v2100_v42 = vsub.f32 1.0, %v2099_v37  ;;  %v3510_v41 = vpop.eup %2681 }
 0x207   :  { %v2027_v49 = vadd.f32 %v3418_v11, %v2026_v43  ;;  %vm2043_vm13 = vweird.f32 %v3367_v6  ;;  %v2047_v13 = vand.u32 2147483647, %v3367_v6  ;;  %v3515_v21 = vsel %vm2078_vm12, %v2080_v44, %v2076_v20 }
 0x208   :  { %5651 = vst [vmem:[#allocation12_spill] sm:$0xff] %v3515_v21  ;;  %vm2116_vm14 = vcmp.eq.f32.partialorder %v3505_v39, %v3505_v39  ;;  %v2139_v4 = vsel %vm2121_vm7, %v3207_v46, 1  ;;  %v2034_v24 = vand.u32 2147483648, %v3378_v59  ;;  %vm2045_vm15 = vmor %vm2043_vm13, %vm2044_vm11  ;;  %vm2028_vm0 = vweird.f32 %v3378_v59 }
 0x209   :  { %2318 = vperm.xlu1 %2574, %v2152_v57   ;;  %v2032_v6 = vand.u32 2147483647, %v3378_v59  ;;  %v2046_v9 = vsel %vm2045_vm15, %v3407_v0, %v2042_v1  ;;  %vm3532_vm1 = vmor %vm2028_vm0, %vm2029_vm10  ;;  %v2050_v7 = vor.u32 1.1754944e-38, %v2049_v34  ;;  %vm2176_vm5 = vcmp.ge.f32.partialorder %v3515_v21, 0.4 }
 0x20a   :  { %v2101_v40 = vmul.f32 %v3460_v33, %v2100_v42  ;;  %v2134_v45 = vsel %vm2116_vm14, %v3207_v46, 1  ;;  %v2155_v60 = vcvt.s32.f32 %v2139_v4  ;;  %v2031_v59 = vsel %vm3532_vm1, %v3418_v11, %v2027_v49 }
 0x20b   :  { %vm2048_vm6 = vcmp.eq.f32.partialorder %v2047_v13, 8.507059e+37  ;;  %v2035_v0 = vor.u32 1.1754944e-38, %v2034_v24  ;;  %vm2175_vm7 = vcmp.ge.f32.partialorder %v3380_v36, 0.4  ;;  %v1979_v19 = vmul.f32 %v3503_v47, %v3437_v56 }
 0x20c   :  { %2334 = vperm.xlu0 %2575, %v2156_v29   ;;  %v3542_v37 = vsel %vm2048_vm6, %v2050_v7, %v2046_v9  ;;  %vm2115_vm8 = vcmp.eq.f32.partialorder %v3389_v15, %v3389_v15  ;;  %vm2033_vm9 = vcmp.eq.f32.partialorder %v2032_v6, 8.507059e+37  ;;  %v2545_v43 = vsel %vm2176_vm5, 1.0, %v5644_v16 }
 0x20d   :  { %2430 = vperm.xlu2 %2573, %v3455_v62   ;;  %v2150_v10 = vcvt.s32.f32 %v2134_v45  ;;  %v3552_v11 = vsel %vm2033_vm9, %v2035_v0, %v2031_v59  ;;  %v2102_v57 = vadd.f32 %v3460_v33, %v2101_v40  ;;  %vm2104_vm10 = vweird.f32 %v3460_v33  ;;  %v3567_v13 = vpop.xlane.xlu1 %269 }
 0x20e   :  { %vm2174_vm11 = vcmp.ge.f32.partialorder %v3542_v37, 0.4  ;;  %v2544_v20 = vsel %vm2175_vm7, 1.0, %v5644_v16  ;;  %vm2103_vm12 = vweird.f32 %v3409_v3  ;;  %v2109_v1 = vand.u32 2147483648, %v3409_v3 }
 0x20f   :  { %v2591_v44 = vpack.i.bf16 %v2545_v43, %v2544_v20  ;;  %v2107_v29 = vand.u32 2147483647, %v3409_v3  ;;  %v1980_v34 = vsub.f32 1.0, %v1979_v19  ;;  %v2084_v42 = vmul.f32 %v3510_v41, %v3451_v8  ;;  %vm2105_vm13 = vmor %vm2103_vm12, %vm2104_vm10 }
 0x210   :  { %v2133_v49 = vsel %vm2115_vm8, %v3207_v46, 1  ;;  %vm2173_vm14 = vcmp.ge.f32.partialorder %v3552_v11, 0.4  ;;  %v2106_v4 = vsel %vm2105_vm13, %v3460_v33, %v2102_v57  ;;  %v2543_v24 = vsel %vm2174_vm11, 1.0, %v5644_v16 }
 0x211   :  { %2330 = vperm.xlu1 %2574, %v2155_v60   ;;  %v2110_v3 = vor.u32 1.1754944e-38, %v2109_v1  ;;  %v2149_v6 = vcvt.s32.f32 %v2133_v49  ;;  %vm2108_vm15 = vcmp.eq.f32.partialorder %v2107_v29, 8.507059e+37  ;;  %v1981_v9 = vmul.f32 %v3503_v47, %v1980_v34 }
 0x212   :  { %v2085_v38 = vsub.f32 1.0, %v2084_v42  ;;  %v2542_v7 = vsel %vm2173_vm14, 1.0, %v5644_v16  ;;  %vm2172_vm0 = vcmp.ge.f32.partialorder %v3455_v62, 0.4  ;;  %vm2171_vm1 = vcmp.ge.f32.partialorder %v3336_v51, 0.4 }
 0x213   :  { %v3574_v40 = vsel %vm2108_vm15, %v2110_v3, %v2106_v4  ;;  %v2606_v45 = vpack.i.bf16 %v2543_v24, %v2542_v7  ;;  %v1982_v33 = vadd.f32 %v3503_v47, %v1981_v9  ;;  %vm1984_vm6 = vweird.f32 %v3503_v47 }
 0x214   :  { %2310 = vperm.xlu0 %2575, %v2150_v10   ;;  %5654 = vst [vmem:[#allocation13_spill] sm:$0xff] %v3574_v40  ;;  %vm2128_vm5 = vcmp.eq.f32.partialorder %v3574_v40, %v3574_v40  ;;  %v2086_v59 = vmul.f32 %v3510_v41, %v2085_v38  ;;  %v2541_v0 = vsel %vm2172_vm0, 1.0, %v5644_v16  ;;  %v1989_v19 = vand.u32 2147483648, %v3437_v56 }
 0x215   :  { %v3545_v26 = vpop.xlane.xlu2 %284  ;;  %2592 = vperm.xlu2 %2573, %v2591_v44   ;;  %vm2166_vm7 = vcmp.ge.f32.partialorder %v3505_v39, 0.4  ;;  %vm1983_vm8 = vweird.f32 %v3437_v56  ;;  %v1987_v51 = vand.u32 2147483647, %v3437_v56  ;;  %vm2165_vm9 = vcmp.ge.f32.partialorder %v3389_v15, 0.4  ;;  %v3598_v57 = vpop.xlane.xlu1 %281 }
 0x216   :  { %v2146_v62 = vsel %vm2128_vm5, %v3207_v46, 1  ;;  %v2540_v43 = vsel %vm2171_vm1, 1.0, %v5644_v16  ;;  %vm3594_vm10 = vmor %vm1983_vm8, %vm1984_vm6  ;;  %v2087_v1 = vadd.f32 %v3510_v41, %v2086_v59  ;;  %vm2089_vm11 = vweird.f32 %v3510_v41 }
 0x217   :  { %v2586_v20 = vpack.i.bf16 %v2541_v0, %v2540_v43  ;;  %v2535_v56 = vsel %vm2166_vm7, 1.0, %v5644_v16  ;;  %v1990_v44 = vor.u32 1.1754944e-38, %v1989_v19  ;;  %v2094_v29 = vand.u32 2147483648, %v3451_v8 }
 0x218   :  { %v2162_v34 = vcvt.s32.f32 %v2146_v62  ;;  %vm1988_vm12 = vcmp.eq.f32.partialorder %v1987_v51, 8.507059e+37  ;;  %vm2088_vm13 = vweird.f32 %v3451_v8  ;;  %v2092_v42 = vand.u32 2147483647, %v3451_v8 }
 0x219   :  { %2306 = vperm.xlu1 %2574, %v2149_v6   ;;  %vm2090_vm14 = vmor %vm2088_vm13, %vm2089_vm11  ;;  %v2095_v6 = vor.u32 1.1754944e-38, %v2094_v29  ;;  %vm2169_vm1 = vcmp.ge.f32.partialorder %v3412_v17, 0.4  ;;  %vm2126_vm6 = vcmp.eq.f32.partialorder %v3515_v21, %v3515_v21  ;;  %vm2178_vm7 = vcmp.ge.f32.partialorder %v3574_v40, 0.4 }
 0x21a   :  { %v2091_v3 = vsel %vm2090_vm14, %v3510_v41, %v2087_v1  ;;  %vm2093_vm0 = vcmp.eq.f32.partialorder %v2092_v42, 8.507059e+37  ;;  %v2538_v15 = vsel %vm2169_vm1, 1.0, %v5644_v16  ;;  %v2144_v17 = vsel %vm2126_vm6, %v3207_v46, 1 }
 0x21b   :  { %v3613_v9 = vsel %vm2093_vm0, %v2095_v6, %v2091_v3  ;;  %v2160_v0 = vcvt.s32.f32 %v2144_v17  ;;  %v2547_v19 = vsel %vm2178_vm7, 1.0, %v5644_v16  ;;  %vm2123_vm11 = vcmp.eq.f32.partialorder %v3552_v11, %v3552_v11 }
 0x21c   :  { %2607 = vperm.xlu0 %2575, %v2606_v45   ;;  %5657 = vst [vmem:[#allocation14_spill] sm:$0xff] %v3613_v9  ;;  %vm2127_vm5 = vcmp.eq.f32.partialorder %v3613_v9, %v3613_v9  ;;  %vm2177_vm8 = vcmp.ge.f32.partialorder %v3613_v9, 0.4  ;;  %v2141_v42 = vsel %vm2123_vm11, %v3207_v46, 1  ;;  %vm1377_vm13 = vcmask 1042434  }
 0x21d   :  { %2406 = vperm.xlu2 %2573, %v3505_v39   ;;  %v1986_v39 = vsel %vm3594_vm10, %v3503_v47, %v1982_v33  ;;  %v2534_v47 = vsel %vm2165_vm9, 1.0, %v5644_v16  ;;  %v273_v38 = vpop.xlane.xlu1 %272  ;;  %v2145_v41 = vsel %vm2127_vm5, %v3207_v46, 1  ;;  %v2546_v51 = vsel %vm2177_vm8, 1.0, %v5644_v16  ;;  %v306_v10 = vpop.xlane.xlu0 %305 }
 0x21e   :  { %v1991_v49 = vsel %vm1988_vm12, %v1990_v44, %v1986_v39  ;;  %v2596_v4 = vpack.i.bf16 %v2535_v56, %v2534_v47  ;;  %v2161_v33 = vcvt.s32.f32 %v2145_v41  ;;  %v2611_v43 = vpack.i.bf16 %v2547_v19, %v2546_v51 }
 0x21f   :  { %v3577_v60 = vpop.xlane.xlu2 %275  ;;  %vm2170_vm15 = vcmp.ge.f32.partialorder %v1991_v49, 0.4  ;;  %vm2120_vm9 = vcmp.eq.f32.partialorder %v1991_v49, %v1991_v49  ;;  %vm2124_vm10 = vcmp.eq.f32.partialorder %v3542_v37, %v3542_v37  ;;  %v328_v39 = vsub.f32 %v3043_v2, %v306_v10 }
 0x220   :  { %v2539_v8 = vsel %vm2170_vm15, 1.0, %v5644_v16  ;;  %v2142_v56 = vsel %vm2124_vm10, %v3207_v46, 1  ;;  %v2157_v2 = vcvt.s32.f32 %v2141_v42  ;;  %v316_v51 = vsub.f32 %v2983_v23, %v3567_v13 }
 0x221   :  { %2587 = vperm.xlu1 %2574, %v2586_v20   ;;  %v2601_v7 = vpack.i.bf16 %v2539_v8, %v2538_v15  ;;  %v2138_v20 = vsel %vm2120_vm9, %v3207_v46, 1  ;;  %v356_v16 = vmul.f32 1.442695, %v328_v39  ;;  %v2158_v29 = vcvt.s32.f32 %v2142_v56 }
 0x222   :  { %v2154_v1 = vcvt.s32.f32 %v2138_v20  ;;  %v332_v20 = vmul.f32 1.442695, %v316_v51  ;;  %vm5590_vm12 = vcmask 1041409   ;;  %vm1380_vm14 = vcmask 1043459  }
 0x223   :  { %2683 = vpow2.f32 %v356_v16  ;;  %vm5592_vm15 = vcmask 1044484   ;;  %vm5589_vm0 = vcmask 1045509   ;;  %vm5588_vm1 = vcmask 1046534  }
 0x224   :  { %2358 = vperm.xlu0 %2575, %v2162_v34   ;;  %vm1392_vm5 = vcmask 1047559   ;;  %vm2213_vm6 = vcmp.eq.s32.totalorder %v2942_v63, 2  ;;  %vm2212_vm7 = vcmp.eq.s32.totalorder %v2942_v63, 1 }
 0x225   :  { %2597 = vperm.xlu2 %2573, %v2596_v4  }
 0x228   :  { %v297_v24 = vpop.xlane.xlu2 %296 }
 0x229   :  { %2422 = vperm.xlu1 %2574, %v1991_v49   ;;  %v325_v47 = vsub.f32 %v3076_v5, %v297_v24  ;;  %v3649_v8 = vpop.eup %2683 }
 0x22a   :  { %v3627_v59 = vpop.xlane.xlu1 %293  ;;  %v400_v15 = vsel %vm267_vm4, %v3649_v8, 0.0 }
 0x22b   :  { %v350_v4 = vmul.f32 1.442695, %v325_v47 }
 0x22d   :  { %2602 = vperm.xlu2 %2573, %v2601_v7   ;;  %2685 = vpow2.f32 %v350_v4 }
 0x230   :  { %v3621_v45 = vpop.xlane.xlu2 %278 }
 0x231   :  { %2354 = vperm.xlu1 %2574, %v2161_v33   ;;  %v319_v51 = vsub.f32 %v3103_v50, %v3621_v45 }
 0x232   :  { %v3639_v44 = vpop.xlane.xlu1 %287 }
 0x233   :  { %v3655_v41 = vpop.eup %2685 }
 0x234   :  { %v391_v24 = vsel %vm267_vm4, %v3655_v41, 0.0 }
 0x235   :  { %2350 = vperm.xlu2 %2573, %v2160_v0   ;;  %v317_v0 = vsub.f32 %v3013_v35, %v273_v38  ;;  %v320_v35 = vsub.f32 %v2996_v28, %v3598_v57  ;;  %v324_v57 = vsub.f32 %v3086_v18, %v3627_v59 }
 0x237   :  { %v340_v42 = vmul.f32 1.442695, %v320_v35 }
 0x238   :  { %v3632_v62 = vpop.xlane.xlu2 %290 }
 0x239   :  { %2612 = vperm.xlu1 %2574, %v2611_v43   ;;  %v334_v43 = vmul.f32 1.442695, %v317_v0  ;;  %v323_v35 = vsub.f32 %v3139_v31, %v3632_v62 }
 0x23a   :  { %v309_v3 = vpop.xlane.xlu1 %308 }
 0x23b   :  { %2687 = vpow2.f32 %v334_v43 }
 0x23c   :  { %2689 = vpow2.f32 %v332_v20  ;;  %v318_v20 = vsub.f32 %v3053_v12, %v3577_v60 }
 0x23d   :  { %2326 = vperm.xlu2 %2573, %v2154_v1   ;;  %v321_v1 = vsub.f32 %v3001_v30, %v3545_v26  ;;  %v329_v30 = vsub.f32 %v3160_v55, %v309_v3 }
 0x23f   :  { %v342_v23 = vmul.f32 1.442695, %v321_v1  ;;  %v358_v4 = vmul.f32 1.442695, %v329_v30 }
 0x240   :  { %v3643_v34 = vpop.xlane.xlu2 %311 }
 0x241   :  { %2342 = vperm.xlu1 %2574, %v2158_v29   ;;  %v3679_v38 = vpop.eup %2687  ;;  %2691 = vpow2.f32 %v342_v23 }
 0x242   :  { %v3685_v26 = vpop.eup %2689  ;;  %2693 = vpow2.f32 %v340_v42  ;;  %v346_v42 = vmul.f32 1.442695, %v323_v35 }
 0x243   :  { %v3657_v5 = vpop.xlane.xlu1 %299  ;;  %v364_v55 = vsel %vm267_vm4, %v3685_v26, 0.0  ;;  %2695 = vpow2.f32 %v358_v4 }
 0x245   :  { %2338 = vperm.xlu2 %2573, %v2157_v2   ;;  %v367_v2 = vsel %vm267_vm4, %v3679_v38, 0.0 }
 0x246   :  { %v2299_v49 = vpop.permute.xlu0 %2298 }
 0x247   :  { %v3697_v3 = vpop.eup %2691 }
 0x248   :  { %v3647_v6 = vpop.xlane.xlu2 %302  ;;  %v3704_v59 = vpop.eup %2693 }
 0x249   :  { %v376_v50 = vsel %vm267_vm4, %v3704_v59, 0.0  ;;  %v3716_v45 = vpop.eup %2695 }
 0x24a   :  { %v403_v12 = vsel %vm267_vm4, %v3716_v45, 0.0 }
 0x24b   :  { %v3666_v19 = vpop.xlane.xlu1 %314 }
 0x24e   :  { %v3653_v7 = vpop.permute.xlu0 %2414  ;;  %401 = vadd.xlane.f32.xlu0 %v400_v15 }
 0x250   :  { %v2395_v46 = vpop.permute.xlu2 %2394 }
 0x256   :  { %v3661_v33 = vpop.permute.xlu0 %2577  ;;  %392 = vadd.xlane.f32.xlu0 %v391_v24  ;;  %v348_v24 = vmul.f32 1.442695, %v324_v57 }
 0x258   :  { %v3663_v17 = vpop.permute.xlu2 %2314  ;;  %2697 = vpow2.f32 %v348_v24 }
 0x25e   :  { %v2427_v10 = vpop.permute.xlu0 %2426  ;;  %v3722_v23 = vpop.eup %2697 }
 0x25f   :  { %v388_v30 = vsel %vm267_vm4, %v3722_v23, 0.0 }
 0x260   :  { %v2303_v39 = vpop.permute.xlu2 %2302 }
 0x261   :  { %v2360_v56 = vrot.slane %v2303_v39, 7  ;;  %v338_v39 = vmul.f32 1.442695, %v319_v51 }
 0x263   :  { %v3673_v16 = vsel %vm5590_vm12, %v2360_v56, %v2299_v49  ;;  %v3675_v29 = vpop.permute.xlu1 %2410  ;;  %2699 = vpow2.f32 %v338_v39 }
 0x266   :  { %v2403_v13 = vpop.permute.xlu0 %2402 }
 0x268   :  { %v3681_v47 = vpop.permute.xlu2 %2418 }
 0x269   :  { %v3732_v31 = vpop.eup %2699 }
 0x26a   :  { %2438 = vperm.xlu0 %2575, %v3542_v37   ;;  %v373_v24 = vsel %vm267_vm4, %v3732_v31, 0.0 }
 0x26b   :  { %368 = vadd.xlane.f32.xlu1 %v367_v2  ;;  %v2399_v28 = vpop.permute.xlu1 %2398 }
 0x26c   :  { %v2456_v49 = vsel %vm5590_vm12, %v2399_v28, %v2395_v46  ;;  %v379_v46 = vsel %vm267_vm4, %v3697_v3, 0.0  ;;  %v326_v28 = vsub.f32 %v3213_v52, %v3657_v5  ;;  %v330_v52 = vsub.f32 %v3197_v58, %v3643_v34 }
 0x26d   :  { %v2457_v37 = vsel %vm1377_vm13, %v2403_v13, %v2456_v49  ;;  %v322_v13 = vsub.f32 %v3117_v61, %v3639_v44  ;;  %v331_v61 = vsub.f32 %v3240_v14, %v3666_v19  ;;  %v2580_v58 = vunpack.i.h.bf16 %v3661_v33 }
 0x26e   :  { %v3692_v15 = vpop.permute.xlu0 %2346  ;;  %365 = vadd.xlane.f32.xlu2 %v364_v55  ;;  %v352_v19 = vmul.f32 1.442695, %v326_v28  ;;  %v2579_v34 = vunpack.i.l.bf16 %v3661_v33 }
 0x26f   :  { %v344_v62 = vmul.f32 1.442695, %v322_v13 }
 0x270   :  { %v2431_v0 = vpop.permute.xlu2 %2430  ;;  %v2278_v35 = vsel %vm5590_vm12, %v2580_v58, %v2579_v34 }
 0x271   :  { %v3702_v18 = vsel %vm5590_vm12, %v2431_v0, %v2427_v10  ;;  %v336_v10 = vmul.f32 1.442695, %v318_v20 }
 0x273   :  { %380 = vadd.xlane.f32.xlu1 %v379_v46  ;;  %v3708_v43 = vpop.permute.xlu1 %2582  ;;  %2701 = vpow2.f32 %v336_v10 }
 0x274   :  { %2703 = vpow2.f32 %v346_v42  ;;  %v2584_v33 = vunpack.i.l.bf16 %v3708_v43 }
 0x275   :  { %2705 = vpow2.f32 %v344_v62 }
 0x276   :  { %v3712_v1 = vpop.permute.xlu0 %2322  ;;  %377 = vadd.xlane.f32.xlu2 %v376_v50  ;;  %2707 = vpow2.f32 %v352_v19 }
 0x278   :  { %v3718_v56 = vpop.permute.xlu2 %2592 }
 0x279   :  { %v3739_v49 = vpop.eup %2701 }
 0x27a   :  { %v370_v51 = vsel %vm267_vm4, %v3739_v49, 0.0  ;;  %v3760_v46 = vpop.eup %2703 }
 0x27b   :  { %404 = vadd.xlane.f32.xlu1 %v403_v12  ;;  %v3726_v60 = vpop.permute.xlu1 %2318  ;;  %v385_v12 = vsel %vm267_vm4, %v3760_v46, 0.0 }
 0x27e   :  { %v2335_v2 = vpop.permute.xlu0 %2334  ;;  %389 = vadd.xlane.f32.xlu2 %v388_v30  ;;  %v327_v30 = vsub.f32 %v3229_v54, %v3647_v6 }
 0x27f   :  { %v2374_v4 = vrot.slane %v2335_v2, 7  ;;  %v2585_v2 = vunpack.i.h.bf16 %v3708_v43  ;;  %v2368_v43 = vrot.slane %v3726_v60, 3 }
 0x280   :  { %v2407_v57 = vpop.permute.xlu2 %2406 }
 0x281   :  { %v2458_v44 = vsel %vm1380_vm14, %v2407_v57, %v2457_v37 }
 0x282   :  { %v2459_v55 = vsel %vm5592_vm15, %v3675_v29, %v2458_v44  ;;  %v362_v29 = vmul.f32 1.442695, %v331_v61 }
 0x283   :  { %374 = vadd.xlane.f32.xlu1 %v373_v24  ;;  %v2331_v5 = vpop.permute.xlu1 %2330  ;;  %v2460_v14 = vsel %vm5589_vm0, %v3653_v7, %v2459_v55  ;;  %v360_v7 = vmul.f32 1.442695, %v330_v52  ;;  %v2366_v55 = vrot.slane %v3663_v17, 4 }
 0x284   :  { %v3750_v37 = vsel %vm5590_vm12, %v2374_v4, %v2331_v5  ;;  %v3754_v0 = vsel %vm5588_vm1, %v3681_v47, %v2460_v14  ;;  %2709 = vpow2.f32 %v362_v29  ;;  %v3762_v47 = vpop.eup %2705  ;;  %v354_v5 = vmul.f32 1.442695, %v327_v30 }
 0x285   :  { %2711 = vpow2.f32 %v360_v7  ;;  %v382_v44 = vsel %vm267_vm4, %v3762_v47, 0.0  ;;  %v3776_v4 = vpop.eup %2707  ;;  %v2370_v14 = vrot.slane %v3712_v1, 2  ;;  %v2594_v30 = vunpack.i.l.bf16 %v3718_v56 }
 0x286   :  { %371 = vadd.xlane.f32.xlu2 %v370_v51  ;;  %v2311_v20 = vpop.permute.xlu0 %2310  ;;  %v394_v60 = vsel %vm267_vm4, %v3776_v4, 0.0  ;;  %2713 = vpow2.f32 %v354_v5 }
 0x287   :  { %v2364_v57 = vrot.slane %v2311_v20, 5 }
 0x288   :  { %v2598_v39 = vpop.permute.xlu2 %2597 }
 0x289   :  { %v2600_v50 = vunpack.i.h.bf16 %v2598_v39  ;;  %v2599_v10 = vunpack.i.l.bf16 %v2598_v39 }
 0x28a   :  { %v3782_v6 = vpop.eup %2709 }
 0x28b   :  { %v2279_v13 = vsel %vm1377_vm13, %v2599_v10, %v2278_v35  ;;  %386 = vadd.xlane.f32.xlu1 %v385_v12  ;;  %v2307_v42 = vpop.permute.xlu1 %2306  ;;  %v3788_v51 = vpop.eup %2711  ;;  %v409_v7 = vsel %vm267_vm4, %v3782_v6, 0.0 }
 0x28c   :  { %v2280_v62 = vsel %vm1380_vm14, %v2600_v50, %v2279_v13  ;;  %v2362_v28 = vrot.slane %v2307_v42, 6 }
 0x28d   :  { %v2281_v61 = vsel %vm5592_vm15, %v2584_v33, %v2280_v62  ;;  %v406_v33 = vsel %vm267_vm4, %v3788_v51, 0.0  ;;  %v2595_v62 = vunpack.i.h.bf16 %v3718_v56 }
 0x28e   :  { %v2363_v24 = vsel %vm1377_vm13, %v2362_v28, %v3673_v16  ;;  %383 = vadd.xlane.f32.xlu2 %v382_v44  ;;  %v2282_v54 = vsel %vm5589_vm0, %v2585_v2, %v2281_v61  ;;  %v2608_v34 = vpop.permute.xlu0 %2607  ;;  %v3806_v44 = vpop.eup %2713 }
 0x28f   :  { %v2365_v52 = vsel %vm1380_vm14, %v2364_v57, %v2363_v24  ;;  %v2609_v12 = vunpack.i.l.bf16 %v2608_v34  ;;  %v2610_v13 = vunpack.i.h.bf16 %v2608_v34 }
 0x290   :  { %v2367_v19 = vsel %vm5592_vm15, %v2366_v55, %v2365_v52  ;;  %v2603_v29 = vpop.permute.xlu2 %2602 }
 0x291   :  { %v2605_v17 = vunpack.i.h.bf16 %v2603_v29  ;;  %v2604_v16 = vunpack.i.l.bf16 %v2603_v29  ;;  %v2369_v58 = vsel %vm5589_vm0, %v2368_v43, %v2367_v19  ;;  %v397_v43 = vsel %vm267_vm4, %v3806_v44, 0.0 }
 0x292   :  { %v2371_v20 = vsel %vm5588_vm1, %v2370_v14, %v2369_v58 }
 0x293   :  { %v2283_v1 = vsel %vm5588_vm1, %v2604_v16, %v2282_v54  ;;  %395 = vadd.xlane.f32.xlu1 %v394_v60  ;;  %v2588_v39 = vpop.permute.xlu1 %2587 }
 0x294   :  { %410 = vadd.xlane.f32.xlu0 %v409_v7  ;;  %v2284_v50 = vsel %vm1392_vm5, %v2605_v17, %v2283_v1  ;;  %v2590_v10 = vunpack.i.h.bf16 %v2588_v39  ;;  %v2589_v35 = vunpack.i.l.bf16 %v2588_v39 }
 0x295   :  { %v2294_v5 = vsel %vm2213_vm6, %v2284_v50, 0.0 }
 0x296   :  { %v2285_v42 = vsel %vm5590_vm12, %v2590_v10, %v2589_v35  ;;  %407 = vadd.xlane.f32.xlu2 %v406_v33  ;;  %v2380_v10 = vrot.slane %v3692_v15, 4 }
 0x297   :  { %v2286_v2 = vsel %vm1377_vm13, %v2609_v12, %v2285_v42  ;;  %v3841_v42 = vpop.permute.xlu0 %2358 }
 0x298   :  { %v2287_v28 = vsel %vm1380_vm14, %v2610_v13, %v2286_v2  ;;  %v2351_v57 = vpop.permute.xlu2 %2350 }
 0x299   :  { %v2288_v61 = vsel %vm5592_vm15, %v2594_v30, %v2287_v28  ;;  %v2382_v35 = vrot.slane %v2351_v57, 3 }
 0x29a   :  { %v2289_v55 = vsel %vm5589_vm0, %v2595_v62, %v2288_v61 }
 0x29b   :  { %v2423_v24 = vpop.permute.xlu1 %2422 }
 0x29c   :  { %v3811_v54 = vsel %vm1392_vm5, %v2423_v24, %v3754_v0 }
 0x29e   :  { %398 = vadd.xlane.f32.xlu2 %v397_v43 }
 0x2a0   :  { %v2327_v56 = vpop.permute.xlu2 %2326 }
 0x2a1   :  { %v2372_v52 = vrot.slane %v2327_v56, 1 }
 0x2a3   :  { %v2373_v14 = vsel %vm1392_vm5, %v2372_v52, %v2371_v20  ;;  %v2355_v19 = vpop.permute.xlu1 %2354 }
 0x2a4   :  { %v3822_v0 = vsel %vm2212_vm7, %v2373_v14, %v2294_v5  ;;  %v2384_v12 = vrot.slane %v2355_v19, 2 }
 0x2a8   :  { %v2339_v29 = vpop.permute.xlu2 %2338 }
 0x2a9   :  { %v2376_v17 = vrot.slane %v2339_v29, 6 }
 0x2ab   :  { %v2377_v16 = vsel %vm1377_vm13, %v2376_v17, %v3750_v37  ;;  %v2613_v58 = vpop.permute.xlu1 %2612 }
 0x2ac   :  { %v2615_v34 = vunpack.i.h.bf16 %v2613_v58  ;;  %v2614_v7 = vunpack.i.l.bf16 %v2613_v58  ;;  %2434 = vperm.xlu1 %2574, %v3552_v11  }
 0x2ae   :  { %v2290_v60 = vsel %vm5588_vm1, %v2614_v7, %v2289_v55 }
 0x2af   :  { %v2291_v1 = vsel %vm1392_vm5, %v2615_v34, %v2290_v60 }
 0x2b0   :  { %v3831_v20 = vsel %vm2213_vm6, %v2291_v1, 0.0 }
 0x2b3   :  { %v2343_v39 = vpop.permute.xlu1 %2342 }
 0x2b4   :  { %v2378_v50 = vrot.slane %v2343_v39, 5 }
 0x2b6   :  { %v2379_v37 = vsel %vm1380_vm14, %v2378_v50, %v2377_v16  ;;  %2442 = vperm.xlu2 %2573, %v3380_v36  }
 0x2b7   :  { %v2381_v11 = vsel %vm5592_vm15, %v2380_v10, %v2379_v37 }
 0x2b8   :  { %v2383_v33 = vsel %vm5589_vm0, %v2382_v35, %v2381_v11 }
 0x2b9   :  { %v3839_v13 = vsel %vm5588_vm1, %v2384_v12, %v2383_v33 }
 0x2c1   :  { %v402_v30 = vpop.xlane.xlu0 %401 }
 0x2c2   :  { %2715 = vrcp.f32 %v402_v30  ;;  %v589_v14 = vand.u32 2147483647, %v402_v30  ;;  %v591_v19 = vand.u32 2147483648, %v402_v30  ;;  %vm585_vm9 = vweird.f32 %v402_v30 }
 0x2c4   :  { %vm590_vm11 = vcmp.eq.f32.partialorder %v589_v14, 8.507059e+37  ;;  %v592_v12 = vor.u32 1.1754944e-38, %v591_v19 }
 0x2c8   :  { %v2716_v15 = vpop.eup %2715 }
 0x2c9   :  { %v3843_v2 = vpop.xlane.xlu0 %392  ;;  %v581_v62 = vmul.f32 %v2716_v15, %v402_v30  ;;  %vm586_vm8 = vweird.f32 %v2716_v15 }
 0x2ca   :  { %2717 = vrcp.f32 %v3843_v2  ;;  %v549_v34 = vand.u32 2147483648, %v3843_v2  ;;  %vm3865_vm10 = vmor %vm585_vm9, %vm586_vm8  ;;  %v547_v30 = vand.u32 2147483647, %v3843_v2  ;;  %vm543_vm2 = vweird.f32 %v3843_v2 }
 0x2cb   :  { %v582_v36 = vsub.f32 1.0, %v581_v62 }
 0x2cc   :  { %v3881_v14 = vor.u32 1.1754944e-38, %v549_v34 }
 0x2cd   :  { %v583_v24 = vmul.f32 %v2716_v15, %v582_v36 }
 0x2cf   :  { %v584_v5 = vadd.f32 %v2716_v15, %v583_v24 }
 0x2d0   :  { %v3846_v28 = vpop.eup %2717 }
 0x2d1   :  { %v539_v61 = vmul.f32 %v3846_v28, %v3843_v2  ;;  %v588_v50 = vsel %vm3865_vm10, %v2716_v15, %v584_v5  ;;  %vm250_vm10 = vcmp.lt.s32.totalorder %v2942_v63, 8  ;;  %vm544_vm12 = vweird.f32 %v3846_v28 }
 0x2d2   :  { %v593_v24 = vsel %vm590_vm11, %v592_v12, %v588_v50 }
 0x2d3   :  { %v540_v56 = vsub.f32 1.0, %v539_v61  ;;  %v3896_v34 = vmul.f32 %v3649_v8, %v593_v24 }
 0x2d5   :  { %v541_v58 = vmul.f32 %v3846_v28, %v540_v56  ;;  %5662 = vst [vmem:[#allocation15_spill] sm:$0xff] %v3896_v34 }
 0x2de   :  { %v3848_v57 = vpop.xlane.xlu1 %368 }
 0x2df   :  { %2719 = vrcp.f32 %v3848_v57  ;;  %vm431_vm9 = vweird.f32 %v3848_v57 }
 0x2e1   :  { %v366_v55 = vpop.xlane.xlu2 %365 }
 0x2e2   :  { %2721 = vrcp.f32 %v366_v55  ;;  %v423_v39 = vand.u32 2147483648, %v366_v55  ;;  %v421_v37 = vand.u32 2147483647, %v366_v55  ;;  %vm417_vm6 = vweird.f32 %v366_v55 }
 0x2e4   :  { %v424_v5 = vor.u32 1.1754944e-38, %v423_v39  ;;  %vm3886_vm0 = vcmp.eq.f32.partialorder %v421_v37, 8.507059e+37 }
 0x2e5   :  { %v3853_v43 = vpop.eup %2719 }
 0x2e6   :  { %v3855_v52 = vpop.xlane.xlu1 %380  ;;  %v427_v17 = vmul.f32 %v3853_v43, %v3848_v57 }
 0x2e7   :  { %2723 = vrcp.f32 %v3855_v52  ;;  %v493_v33 = vand.u32 2147483648, %v3855_v52  ;;  %v491_v61 = vand.u32 2147483647, %v3855_v52  ;;  %vm487_vm1 = vweird.f32 %v3855_v52 }
 0x2e8   :  { %v2722_v29 = vpop.eup %2721  ;;  %v428_v11 = vsub.f32 1.0, %v427_v17 }
 0x2e9   :  { %v413_v7 = vmul.f32 %v2722_v29, %v366_v55  ;;  %v3863_v60 = vpop.xlane.xlu2 %377  ;;  %vm418_vm8 = vweird.f32 %v2722_v29  ;;  %vm3903_vm3 = vcmp.eq.f32.partialorder %v491_v61, 8.507059e+37 }
 0x2ea   :  { %2725 = vrcp.f32 %v3863_v60  ;;  %v429_v1 = vmul.f32 %v3853_v43, %v428_v11  ;;  %vm419_vm11 = vmor %vm417_vm6, %vm418_vm8  ;;  %v494_v11 = vor.u32 1.1754944e-38, %v493_v33  ;;  %vm473_vm15 = vweird.f32 %v3863_v60 }
 0x2eb   :  { %v414_v35 = vsub.f32 1.0, %v413_v7  ;;  %v479_v55 = vand.u32 2147483648, %v3863_v60  ;;  %v3919_v33 = vsel %vm250_vm10, %v3896_v34, -1e+30  ;;  %vm432_vm8 = vweird.f32 %v3853_v43 }
 0x2ed   :  { %v2724_v62 = vpop.eup %2723  ;;  %v415_v36 = vmul.f32 %v2722_v29, %v414_v35  ;;  %v480_v2 = vor.u32 1.1754944e-38, %v479_v55 }
 0x2ee   :  { %v483_v15 = vmul.f32 %v2724_v62, %v3855_v52  ;;  %v3878_v56 = vpop.xlane.xlu1 %404  ;;  %vm488_vm6 = vweird.f32 %v2724_v62 }
 0x2ef   :  { %2727 = vrcp.f32 %v3878_v56  ;;  %v416_v19 = vadd.f32 %v2722_v29, %v415_v36 }
 0x2f0   :  { %v3890_v7 = vpop.eup %2725  ;;  %v484_v50 = vsub.f32 1.0, %v483_v15  ;;  %v542_v15 = vadd.f32 %v3846_v28, %v541_v58 }
 0x2f1   :  { %v469_v39 = vmul.f32 %v3890_v7, %v3863_v60  ;;  %v3901_v35 = vpop.xlane.xlu2 %389  ;;  %v420_v37 = vsel %vm419_vm11, %v2722_v29, %v416_v19  ;;  %v430_v19 = vadd.f32 %v3853_v43, %v429_v1  ;;  %vm3934_vm11 = vcmp.eq.f32.partialorder %v547_v30, 8.507059e+37 }
 0x2f2   :  { %v485_v36 = vmul.f32 %v2724_v62, %v484_v50  ;;  %2729 = vrcp.f32 %v3901_v35  ;;  %v425_v24 = vsel %vm3886_vm0, %v424_v5, %v420_v37  ;;  %vm3928_vm0 = vmor %vm487_vm1, %vm488_vm6  ;;  %vm474_vm1 = vweird.f32 %v3890_v7 }
 0x2f3   :  { %v470_v8 = vsub.f32 1.0, %v469_v39  ;;  %v3914_v29 = vmul.f32 %v3685_v26, %v425_v24  ;;  %v477_v26 = vand.u32 2147483647, %v3863_v60  ;;  %v704_v24 = vsel %vm267_vm4, %v3919_v33, -inf  ;;  %vm3958_vm6 = vmor %vm431_vm9, %vm432_vm8 }
 0x2f4   :  { %v486_v61 = vadd.f32 %v2724_v62, %v485_v36  ;;  %v434_v10 = vsel %vm3958_vm6, %v3853_v43, %v430_v19  ;;  %vm3974_vm9 = vmor %vm543_vm2, %vm544_vm12  ;;  %v535_v19 = vand.u32 2147483648, %v3901_v35 }
 0x2f5   :  { %5665 = vst [vmem:[#allocation16_spill] sm:$0xff] %v3914_v29  ;;  %v3922_v50 = vpop.eup %2727  ;;  %v471_v39 = vmul.f32 %v3890_v7, %v470_v8  ;;  %v3945_v52 = vsel %vm250_vm10, %v3914_v29, -1e+30  ;;  %v435_v8 = vand.u32 2147483647, %v3848_v57  ;;  %v546_v43 = vsel %vm3974_vm9, %v3846_v28, %v542_v15  ;;  %vm475_vm2 = vmor %vm473_vm15, %vm474_vm1 }
 0x2f6   :  { %v595_v1 = vmul.f32 %v3922_v50, %v3878_v56  ;;  %v3940_v37 = vpop.xlane.xlu1 %374  ;;  %v490_v36 = vsel %vm3928_vm0, %v2724_v62, %v486_v61  ;;  %v668_v30 = vsel %vm267_vm4, %v3945_v52, -inf  ;;  %vm599_vm0 = vweird.f32 %v3878_v56 }
 0x2f7   :  { %2731 = vrcp.f32 %v3940_v37  ;;  %669 = vmax.xlane.f32.xlu1 %v668_v30  ;;  %v495_v61 = vsel %vm3903_vm3, %v494_v11, %v490_v36  ;;  %v472_v17 = vadd.f32 %v3890_v7, %v471_v39  ;;  %v5675_v11 = vand.u32 2147483648, %v3848_v57 }
 0x2f8   :  { %v3962_v58 = vpop.eup %2729  ;;  %v596_v62 = vsub.f32 1.0, %v595_v1  ;;  %v3983_v12 = vmul.f32 %v3697_v3, %v495_v61  ;;  %vm478_vm3 = vcmp.eq.f32.partialorder %v477_v26, 8.507059e+37  ;;  %vm436_vm12 = vcmp.eq.f32.partialorder %v435_v8, 8.507059e+37 }
 0x2f9   :  { %v525_v1 = vmul.f32 %v3962_v58, %v3901_v35  ;;  %v3980_v30 = vpop.xlane.xlu2 %371  ;;  %v438_v16 = vor.u32 1.1754944e-38, %v5675_v11  ;;  %v476_v9 = vsel %vm475_vm2, %v3890_v7, %v472_v17  ;;  %v4016_v7 = vpop.permute.xlu0 %2438  ;;  %vm529_vm15 = vweird.f32 %v3901_v35 }
 0x2fa   :  { %5674 = vst [vmem:[#allocation17_spill] sm:$0xff] %v3983_v12  ;;  %2733 = vrcp.f32 %v3980_v30  ;;  %v3999_v57 = vsel %vm250_vm10, %v3983_v12, -1e+30  ;;  %v597_v15 = vmul.f32 %v3922_v50, %v596_v62  ;;  %v481_v55 = vsel %vm478_vm3, %v480_v2, %v476_v9 }
 0x2fb   :  { %v526_v3 = vsub.f32 1.0, %v525_v1  ;;  %v439_v28 = vsel %vm436_vm12, %v438_v16, %v434_v10  ;;  %v683_v60 = vsel %vm267_vm4, %v3999_v57, -inf  ;;  %v4010_v36 = vmul.f32 %v3704_v59, %v481_v55 }
 0x2fc   :  { %684 = vmax.xlane.f32.xlu0 %v683_v60  ;;  %v4013_v8 = vmul.f32 %v3679_v38, %v439_v28  ;;  %v533_v10 = vand.u32 2147483647, %v3901_v35  ;;  %v451_v62 = vand.u32 2147483648, %v3980_v30  ;;  %v4027_v59 = vsel %vm3934_vm11, %v3881_v14, %v546_v43 }
 0x2fd   :  { %v4006_v39 = vpop.eup %2731  ;;  %v527_v26 = vmul.f32 %v3962_v58, %v526_v3  ;;  %5676 = vst [vmem:[#allocation18_spill] sm:$0xff] %v4010_v36  ;;  %v4034_v1 = vsel %vm250_vm10, %v4010_v36, -1e+30  ;;  %vm530_vm8 = vweird.f32 %v3962_v58  ;;  %v536_v5 = vor.u32 1.1754944e-38, %v535_v19 }
 0x2fe   :  { %5677 = vst [vmem:[#allocation19_spill] sm:$0xff] %v4013_v8  ;;  %v455_v17 = vmul.f32 %v4006_v39, %v3940_v37  ;;  %v4022_v61 = vpop.xlane.xlu1 %386  ;;  %v680_v16 = vsel %vm267_vm4, %v4034_v1, -inf  ;;  %v449_v43 = vand.u32 2147483647, %v3980_v30  ;;  %vm445_vm11 = vweird.f32 %v3980_v30  ;;  %vm531_vm6 = vmor %vm529_vm15, %vm530_vm8 }
 0x2ff   :  { %2735 = vrcp.f32 %v4022_v61  ;;  %705 = vmax.xlane.f32.xlu1 %v704_v24  ;;  %v528_v14 = vadd.f32 %v3962_v58, %v527_v26  ;;  %681 = vmax.xlane.f32.xlu2 %v680_v16  ;;  %v4051_v9 = vsel %vm250_vm10, %v4013_v8, -1e+30  ;;  %vm534_vm1 = vcmp.eq.f32.partialorder %v533_v10, 8.507059e+37 }
 0x300   :  { %v4037_v11 = vpop.eup %2733  ;;  %v598_v24 = vadd.f32 %v3922_v50, %v597_v15  ;;  %v456_v28 = vsub.f32 1.0, %v455_v17  ;;  %v521_v19 = vand.u32 2147483648, %v4022_v61  ;;  %v452_v60 = vor.u32 1.1754944e-38, %v451_v62 }
 0x301   :  { %v441_v2 = vmul.f32 %v4037_v11, %v3980_v30  ;;  %v4046_v3 = vpop.xlane.xlu2 %383  ;;  %v532_v26 = vsel %vm531_vm6, %v3962_v58, %v528_v14  ;;  %vm600_vm9 = vweird.f32 %v3922_v50  ;;  %v603_v10 = vand.u32 2147483647, %v3878_v56 }
 0x302   :  { %2737 = vrcp.f32 %v4046_v3  ;;  %vm515_vm2 = vweird.f32 %v4022_v61  ;;  %v507_v15 = vand.u32 2147483648, %v4046_v3  ;;  %v671_v17 = vsel %vm267_vm4, %v4051_v9, -inf  ;;  %vm601_vm3 = vmor %vm599_vm0, %vm600_vm9 }
 0x303   :  { %v442_v55 = vsub.f32 1.0, %v441_v2  ;;  %v537_v16 = vsel %vm534_vm1, %v536_v5, %v532_v26  ;;  %v5678_v35 = vand.u32 2147483648, %v3878_v56  ;;  %v602_v38 = vsel %vm601_vm3, %v3922_v50, %v598_v24 }
 0x304   :  { %v4073_v14 = vmul.f32 %v3722_v23, %v537_v16  ;;  %vm604_vm12 = vcmp.eq.f32.partialorder %v603_v10, 8.507059e+37  ;;  %vm446_vm0 = vweird.f32 %v4037_v11  ;;  %v505_v56 = vand.u32 2147483647, %v4046_v3 }
 0x305   :  { %v606_v62 = vor.u32 1.1754944e-38, %v5678_v35  ;;  %v2736_v2 = vpop.eup %2735  ;;  %v443_v58 = vmul.f32 %v4037_v11, %v442_v55  ;;  %v4084_v35 = vmul.f32 %v4006_v39, %v456_v28  ;;  %vm501_vm15 = vweird.f32 %v4046_v3  ;;  %vm447_vm1 = vmor %vm445_vm11, %vm446_vm0 }
 0x306   :  { %5679 = vst [vmem:[#allocation20_spill] sm:$0xff] %v4073_v14  ;;  %v511_v40 = vmul.f32 %v2736_v2, %v4022_v61  ;;  %v4079_v5 = vpop.xlane.xlu1 %395  ;;  %vm4088_vm8 = vcmp.eq.f32.partialorder %v449_v43, 8.507059e+37  ;;  %v508_v55 = vor.u32 1.1754944e-38, %v507_v15  ;;  %vm4112_vm6 = vcmp.eq.f32.partialorder %v505_v56, 8.507059e+37 }
 0x307   :  { %v4077_v21 = vpop.xlane.xlu0 %410  ;;  %v607_v26 = vsel %vm604_vm12, %v606_v62, %v602_v38  ;;  %v4096_v38 = vsel %vm250_vm10, %v4073_v14, -1e+30  ;;  %672 = vmax.xlane.f32.xlu2 %v671_v17  ;;  %v444_v16 = vadd.f32 %v4037_v11, %v443_v58  ;;  %vm516_vm9 = vweird.f32 %v2736_v2 }
 0x308   :  { %2739 = vrcp.f32 %v4077_v21  ;;  %v2738_v50 = vpop.eup %2737  ;;  %v512_v24 = vsub.f32 1.0, %v511_v40  ;;  %v692_v10 = vsel %vm267_vm4, %v4096_v38, -inf  ;;  %v4105_v40 = vmul.f32 %v3716_v45, %v607_v26  ;;  %vm517_vm11 = vmor %vm515_vm2, %vm516_vm9 }
 0x309   :  { %2741 = vrcp.f32 %v4079_v5  ;;  %v497_v28 = vmul.f32 %v2738_v50, %v4046_v3  ;;  %v4101_v43 = vpop.xlane.xlu2 %407  ;;  %693 = vmax.xlane.f32.xlu0 %v692_v10  ;;  %v448_v45 = vsel %vm447_vm1, %v4037_v11, %v444_v16  ;;  %vm502_vm3 = vweird.f32 %v2738_v50 }
 0x30a   :  { %5682 = vst [vmem:[#allocation21_spill] sm:$0xff] %v4105_v40  ;;  %v513_v62 = vmul.f32 %v2736_v2, %v512_v24  ;;  %2743 = vrcp.f32 %v4101_v43  ;;  %v4121_v26 = vsel %vm250_vm10, %v4105_v40, -1e+30  ;;  %v453_v24 = vsel %vm4088_vm8, %v452_v60, %v448_v45  ;;  %vm4155_vm8 = vmor %vm501_vm15, %vm502_vm3 }
 0x30b   :  { %v498_v58 = vsub.f32 1.0, %v497_v28  ;;  %v519_v56 = vand.u32 2147483647, %v4022_v61  ;;  %v4129_v17 = vmul.f32 %v3739_v49, %v453_v24  ;;  %v522_v11 = vor.u32 1.1754944e-38, %v521_v19 }
 0x30c   :  { %v514_v30 = vadd.f32 %v2736_v2, %v513_v62  ;;  %v4135_v28 = vmul.f32 %v3655_v41, %v4027_v59  ;;  %vm557_vm12 = vweird.f32 %v4079_v5  ;;  %v563_v60 = vand.u32 2147483648, %v4079_v5 }
 0x30d   :  { %v499_v14 = vmul.f32 %v2738_v50, %v498_v58  ;;  %5685 = vst [vmem:[#allocation22_spill] sm:$0xff] %v4129_v17  ;;  %vm520_vm0 = vcmp.eq.f32.partialorder %v519_v56, 8.507059e+37  ;;  %v4143_v49 = vsel %vm250_vm10, %v4129_v17, -1e+30  ;;  %vm459_vm2 = vweird.f32 %v3940_v37 }
 0x30e   :  { %v4126_v10 = vpop.eup %2739  ;;  %5686 = vst [vmem:[#allocation23_spill] sm:$0xff] %v4135_v28  ;;  %v518_v16 = vsel %vm517_vm11, %v2736_v2, %v514_v30  ;;  %v674_v59 = vsel %vm267_vm4, %v4143_v49, -inf  ;;  %v707_v2 = vsel %vm267_vm4, %v4121_v26, -inf  ;;  %v4170_v3 = vsel %vm250_vm10, %v4135_v28, -1e+30 }
 0x30f   :  { %v2742_v23 = vpop.eup %2741  ;;  %v500_v61 = vadd.f32 %v2738_v50, %v499_v14  ;;  %v523_v19 = vsel %vm520_vm0, %v522_v11, %v518_v16  ;;  %v623_v41 = vmul.f32 %v4126_v10, %v4077_v21  ;;  %708 = vmax.xlane.f32.xlu2 %v707_v2  ;;  %vm613_vm15 = vweird.f32 %v4101_v43 }
 0x310   :  { %v553_v62 = vmul.f32 %v2742_v23, %v4079_v5  ;;  %v2744_v58 = vpop.eup %2743  ;;  %v4160_v14 = vmul.f32 %v3760_v46, %v523_v19  ;;  %v619_v16 = vand.u32 2147483648, %v4101_v43  ;;  %v617_v46 = vand.u32 2147483647, %v4101_v43 }
 0x311   :  { %v609_v30 = vmul.f32 %v2744_v58, %v4101_v43  ;;  %v4163_v56 = vpop.xlane.xlu2 %398  ;;  %v504_v11 = vsel %vm4155_vm8, %v2738_v50, %v500_v61  ;;  %675 = vmax.xlane.f32.xlu0 %v674_v59  ;;  %v624_v61 = vsub.f32 1.0, %v623_v41  ;;  %v695_v59 = vsel %vm267_vm4, %v4170_v3, -inf }
 0x312   :  { %5689 = vst [vmem:[#allocation24_spill] sm:$0xff] %v4160_v14  ;;  %v554_v24 = vsub.f32 1.0, %v553_v62  ;;  %2745 = vrcp.f32 %v4163_v56  ;;  %v509_v2 = vsel %vm4112_vm6, %v508_v55, %v504_v11  ;;  %v4181_v50 = vsel %vm250_vm10, %v4160_v14, -1e+30 }
 0x313   :  { %v610_v19 = vsub.f32 1.0, %v609_v30  ;;  %v577_v45 = vand.u32 2147483648, %v4163_v56  ;;  %v4185_v28 = vmul.f32 %v3762_v47, %v509_v2  ;;  %vm614_vm1 = vweird.f32 %v2744_v58 }
 0x314   :  { %v555_v62 = vmul.f32 %v2742_v23, %v554_v24  ;;  %vm558_vm9 = vweird.f32 %v2742_v23  ;;  %v689_v15 = vsel %vm267_vm4, %v4181_v50, -inf  ;;  %v620_v41 = vor.u32 1.1754944e-38, %v619_v16  ;;  %vm615_vm11 = vmor %vm613_vm15, %vm614_vm1 }
 0x315   :  { %5690 = vst [vmem:[#allocation25_spill] sm:$0xff] %v4185_v28  ;;  %v611_v17 = vmul.f32 %v2744_v58, %v610_v19  ;;  %v4192_v55 = vsel %vm250_vm10, %v4185_v28, -1e+30  ;;  %vm4198_vm6 = vmor %vm557_vm12, %vm558_vm9  ;;  %v561_v30 = vand.u32 2147483647, %v4079_v5  ;;  %v564_v2 = vor.u32 1.1754944e-38, %v563_v60 }
 0x316   :  { %v556_v24 = vadd.f32 %v2742_v23, %v555_v62  ;;  %v686_v11 = vsel %vm267_vm4, %v4192_v55, -inf  ;;  %vm627_vm3 = vweird.f32 %v4077_v21  ;;  %v458_v5 = vadd.f32 %v4006_v39, %v4084_v35 }
 0x317   :  { %v612_v62 = vadd.f32 %v2744_v58, %v611_v17  ;;  %687 = vmax.xlane.f32.xlu1 %v686_v11  ;;  %vm562_vm12 = vcmp.eq.f32.partialorder %v561_v30, 8.507059e+37  ;;  %vm460_vm0 = vweird.f32 %v4006_v39  ;;  %v463_v17 = vand.u32 2147483647, %v3940_v37  ;;  %690 = vmax.xlane.f32.xlu2 %v689_v15 }
 0x318   :  { %v560_v19 = vsel %vm4198_vm6, %v2742_v23, %v556_v24  ;;  %v2746_v14 = vpop.eup %2745  ;;  %vm618_vm8 = vcmp.eq.f32.partialorder %v617_v46, 8.507059e+37  ;;  %vm4218_vm9 = vmor %vm459_vm2, %vm460_vm0  ;;  %v625_v43 = vmul.f32 %v4126_v10, %v624_v61  ;;  %vm571_vm15 = vweird.f32 %v4163_v56 }
 0x319   :  { %v567_v16 = vmul.f32 %v2746_v14, %v4163_v56  ;;  %v616_v23 = vsel %vm615_vm11, %v2744_v58, %v612_v62  ;;  %v565_v60 = vsel %vm562_vm12, %v564_v2, %v560_v19  ;;  %v462_v30 = vsel %vm4218_vm9, %v4006_v39, %v458_v5 }
 0x31a   :  { %v621_v47 = vsel %vm618_vm8, %v620_v41, %v616_v23  ;;  %v4224_v35 = vmul.f32 %v3776_v4, %v565_v60  ;;  %v5697_v46 = vand.u32 2147483648, %v3940_v37  ;;  %v575_v4 = vand.u32 2147483647, %v4163_v56 }
 0x31b   :  { %v568_v15 = vsub.f32 1.0, %v567_v16  ;;  %v4231_v58 = vmul.f32 %v3788_v51, %v621_v47  ;;  %v578_v41 = vor.u32 1.1754944e-38, %v577_v45  ;;  %vm464_vm2 = vcmp.eq.f32.partialorder %v463_v17, 8.507059e+37 }
 0x31c   :  { %5695 = vst [vmem:[#allocation26_spill] sm:$0xff] %v4224_v35  ;;  %v466_v11 = vor.u32 1.1754944e-38, %v5697_v46  ;;  %v4238_v61 = vsel %vm250_vm10, %v4224_v35, -1e+30  ;;  %vm572_vm1 = vweird.f32 %v2746_v14  ;;  %v626_v2 = vadd.f32 %v4126_v10, %v625_v43  ;;  %v2443_v46 = vpop.permute.xlu2 %2442 }
 0x31d   :  { %5696 = vst [vmem:[#allocation27_spill] sm:$0xff] %v4231_v58  ;;  %v569_v62 = vmul.f32 %v2746_v14, %v568_v15  ;;  %v4244_v39 = vsel %vm250_vm10, %v4231_v58, -1e+30  ;;  %vm628_vm6 = vweird.f32 %v4126_v10  ;;  %v631_v5 = vand.u32 2147483647, %v4077_v21  ;;  %vm573_vm12 = vmor %vm571_vm15, %vm572_vm1 }
 0x31e   :  { %v467_v51 = vsel %vm464_vm2, %v466_v11, %v462_v30  ;;  %v2435_v19 = vpop.permute.xlu1 %2434  ;;  %v710_v37 = vsel %vm267_vm4, %v4244_v39, -inf  ;;  %v698_v17 = vsel %vm267_vm4, %v4238_v61, -inf  ;;  %vm2211_vm11 = vcmp.eq.s32.totalorder %v2942_v63, 0  ;;  %vm629_vm8 = vmor %vm627_vm3, %vm628_vm6 }
 0x31f   :  { %v2464_v45 = vsel %vm1377_vm13, %v2435_v19, %v3702_v18  ;;  %711 = vmax.xlane.f32.xlu0 %v710_v37  ;;  %v570_v16 = vadd.f32 %v2746_v14, %v569_v62  ;;  %696 = vmax.xlane.f32.xlu1 %v695_v59  ;;  %v4264_v60 = vmul.f32 %v3732_v31, %v467_v51  ;;  %v5699_v18 = vrot.slane %v3841_v42, 1 }
 0x320   :  { %v4258_v23 = vsel %vm1380_vm14, %v4016_v7, %v2464_v45  ;;  %v2472_v43 = vsel %vm2211_vm11, %v3811_v54, %v3822_v0  ;;  %699 = vmax.xlane.f32.xlu2 %v698_v17  ;;  %vm576_vm0 = vcmp.eq.f32.partialorder %v575_v4, 8.507059e+37  ;;  %v630_v54 = vsel %vm629_vm8, %v4126_v10, %v626_v2 }
 0x321   :  { %5698 = vst [vmem:[#allocation28_spill] sm:$0xff] %v4264_v60  ;;  %v2387_v24 = vsel %vm1392_vm5, %v5699_v18, %v3839_v13  ;;  %v574_v7 = vsel %vm573_vm12, %v2746_v14, %v570_v16  ;;  %v5702_v42 = vand.u32 2147483648, %v4077_v21  ;;  %v4295_v56 = vsel %vm250_vm10, %v4264_v60, -1e+30 }
 0x322   :  { %v4281_v31 = vsel %vm2212_vm7, %v2387_v24, %v3831_v20  ;;  %2474 = vst [vmem:[%s5572_s9] sm:$0xff] %v2472_v43  ;;  %v579_v13 = vsel %vm576_vm0, %v578_v41, %v574_v7  ;;  %vm632_vm7 = vcmp.eq.f32.partialorder %v631_v5, 8.507059e+37  ;;  %v677_v21 = vsel %vm267_vm4, %v4295_v56, -inf }
 0x323   :  { %5700 = vst [vmem:[#allocation29_spill] sm:$0xff] %v4281_v31  ;;  %v4288_v0 = vmul.f32 %v3806_v44, %v579_v13  ;;  %v634_v14 = vor.u32 1.1754944e-38, %v5702_v42 }
 0x325   :  { %5701 = vst [vmem:[#allocation30_spill] sm:$0xff] %v4288_v0  ;;  %v4300_v20 = vsel %vm250_vm10, %v4288_v0, -1e+30  ;;  %v635_v59 = vsel %vm632_vm7, %v634_v14, %v630_v54 }
 0x326   :  { %v701_v10 = vsel %vm267_vm4, %v4300_v20, -inf  ;;  %v4307_v44 = vmul.f32 %v3782_v6, %v635_v59 }
 0x327   :  { %702 = vmax.xlane.f32.xlu0 %v701_v10  ;;  %678 = vmax.xlane.f32.xlu1 %v677_v21 }
 0x328   :  { %5703 = vst [vmem:[#allocation31_spill] sm:$0xff] %v4307_v44  ;;  %v4312_v47 = vsel %vm250_vm10, %v4307_v44, -1e+30 }
 0x329   :  { %v713_v30 = vsel %vm267_vm4, %v4312_v47, -inf }
 0x32f   :  { %714 = vmax.xlane.f32.xlu1 %v713_v30 }
 0x36a   :  { %v670_v15 = vpop.xlane.xlu1 %669 }
 0x36b   :  { %vm716_vm3 = vcmp.eq.f32.partialorder %v3945_v52, %v670_v15 }
 0x36c   :  { %vm732_vm9 = vmand %vm250_vm10, %vm716_vm3 }
 0x36d   :  { %v748_v11 = vsel %vm732_vm9, %v2942_v63, 8 }
 0x36e   :  { %v4321_v6 = vsel %vm267_vm4, %v748_v11, 2147483647 }
 0x36f   :  { %v685_v4 = vpop.xlane.xlu0 %684  ;;  %v766_v41 = vshra.s32 %v4321_v6, 16 }
 0x370   :  { %vm721_vm15 = vcmp.eq.f32.partialorder %v3999_v57, %v685_v4 }
 0x371   :  { %vm737_vm2 = vmand %vm250_vm10, %vm721_vm15  ;;  %v4327_v62 = vcvt.s32.f32 %v766_v41  ;;  %vm5704_vm15 = vcmask 1044484  }
 0x372   :  { %v753_v52 = vsel %vm737_vm2, %v2942_v63, 8  ;;  %v706_v51 = vpop.xlane.xlu1 %705  ;;  %v682_v19 = vpop.xlane.xlu2 %681  ;;  %v4377_v59 = vsel %vm5704_vm15, %v2443_v46, %v4258_v23 }
 0x373   :  { %vm728_vm1 = vcmp.eq.f32.partialorder %v3919_v33, %v706_v51  ;;  %769 = vmin.xlane.f32.xlu2 %v4327_v62  ;;  %v4333_v37 = vsel %vm267_vm4, %v753_v52, 2147483647  ;;  %vm720_vm6 = vcmp.eq.f32.partialorder %v4034_v1, %v682_v19  ;;  %5705 = vst [vmem:[#allocation32_spill] sm:$0xff] %v4377_v59 }
 0x374   :  { %vm744_vm12 = vmand %vm250_vm10, %vm728_vm1  ;;  %v841_v57 = vshra.s32 %v4333_v37, 16 }
 0x375   :  { %vm736_vm0 = vmand %vm250_vm10, %vm720_vm6  ;;  %v760_v2 = vsel %vm744_vm12, %v2942_v63, 8 }
 0x376   :  { %v752_v5 = vsel %vm736_vm0, %v2942_v63, 8  ;;  %v4343_v33 = vcvt.s32.f32 %v841_v57  ;;  %v4346_v45 = vsel %vm267_vm4, %v760_v2, 2147483647 }
 0x377   :  { %v4349_v17 = vsel %vm267_vm4, %v752_v5, 2147483647  ;;  %v946_v1 = vshra.s32 %v4346_v45, 16 }
 0x378   :  { %844 = vmin.xlane.f32.xlu0 %v4343_v33  ;;  %v826_v16 = vshra.s32 %v4349_v17, 16 }
 0x379   :  { %v4354_v18 = vcvt.s32.f32 %v946_v1 }
 0x37a   :  { %v4356_v24 = vcvt.s32.f32 %v826_v16  ;;  %v673_v43 = vpop.xlane.xlu2 %672 }
 0x37b   :  { %949 = vmin.xlane.f32.xlu2 %v4354_v18  ;;  %vm717_vm8 = vcmp.eq.f32.partialorder %v4051_v9, %v673_v43 }
 0x37c   :  { %v694_v7 = vpop.xlane.xlu0 %693  ;;  %829 = vmin.xlane.f32.xlu1 %v4356_v24  ;;  %vm733_vm7 = vmand %vm250_vm10, %vm717_vm8 }
 0x37d   :  { %vm724_vm3 = vcmp.eq.f32.partialorder %v4096_v38, %v694_v7  ;;  %v749_v13 = vsel %vm733_vm7, %v2942_v63, 8 }
 0x37e   :  { %vm740_vm9 = vmand %vm250_vm10, %vm724_vm3  ;;  %v4369_v42 = vsel %vm267_vm4, %v749_v13, 2147483647 }
 0x37f   :  { %v756_v54 = vsel %vm740_vm9, %v2942_v63, 8  ;;  %v781_v14 = vshra.s32 %v4369_v42, 16 }
 0x380   :  { %v4372_v9 = vsel %vm267_vm4, %v756_v54, 2147483647 }
 0x381   :  { %v886_v38 = vshra.s32 %v4372_v9, 16  ;;  %v4380_v10 = vcvt.s32.f32 %v781_v14 }
 0x382   :  { %v709_v21 = vpop.xlane.xlu2 %708 }
 0x383   :  { %v4382_v30 = vcvt.s32.f32 %v886_v38  ;;  %vm729_vm2 = vcmp.eq.f32.partialorder %v4121_v26, %v709_v21 }
 0x384   :  { %v676_v15 = vpop.xlane.xlu0 %675  ;;  %784 = vmin.xlane.f32.xlu1 %v4380_v10  ;;  %vm745_vm6 = vmand %vm250_vm10, %vm729_vm2 }
 0x385   :  { %vm718_vm1 = vcmp.eq.f32.partialorder %v4143_v49, %v676_v15  ;;  %889 = vmin.xlane.f32.xlu0 %v4382_v30  ;;  %v761_v23 = vsel %vm745_vm6, %v2942_v63, 8 }
 0x386   :  { %vm734_vm12 = vmand %vm250_vm10, %vm718_vm1  ;;  %v4395_v11 = vsel %vm267_vm4, %v761_v23, 2147483647 }
 0x387   :  { %v750_v46 = vsel %vm734_vm12, %v2942_v63, 8  ;;  %v961_v49 = vshra.s32 %v4395_v11, 16 }
 0x388   :  { %v4398_v26 = vsel %vm267_vm4, %v750_v46, 2147483647 }
 0x389   :  { %v796_v4 = vshra.s32 %v4398_v26, 16  ;;  %v4402_v52 = vcvt.s32.f32 %v961_v49 }
 0x38a   :  { %v688_v41 = vpop.xlane.xlu1 %687  ;;  %v691_v51 = vpop.xlane.xlu2 %690 }
 0x38b   :  { %vm722_vm0 = vcmp.eq.f32.partialorder %v4192_v55, %v688_v41  ;;  %v4405_v19 = vcvt.s32.f32 %v796_v4  ;;  %vm723_vm8 = vcmp.eq.f32.partialorder %v4181_v50, %v691_v51 }
 0x38c   :  { %vm738_vm7 = vmand %vm250_vm10, %vm722_vm0  ;;  %964 = vmin.xlane.f32.xlu1 %v4402_v52 }
 0x38d   :  { %vm739_vm3 = vmand %vm250_vm10, %vm723_vm8  ;;  %v754_v57 = vsel %vm738_vm7, %v2942_v63, 8  ;;  %799 = vmin.xlane.f32.xlu0 %v4405_v19 }
 0x38e   :  { %v755_v2 = vsel %vm739_vm3, %v2942_v63, 8  ;;  %v4417_v55 = vsel %vm267_vm4, %v754_v57, 2147483647 }
 0x38f   :  { %v4420_v5 = vsel %vm267_vm4, %v755_v2, 2147483647  ;;  %v856_v50 = vshra.s32 %v4417_v55, 16 }
 0x390   :  { %v871_v1 = vshra.s32 %v4420_v5, 16 }
 0x391   :  { %v4424_v43 = vcvt.s32.f32 %v856_v50 }
 0x392   :  { %v712_v16 = vpop.xlane.xlu0 %711  ;;  %v697_v7 = vpop.xlane.xlu1 %696  ;;  %v4427_v13 = vcvt.s32.f32 %v871_v1 }
 0x393   :  { %vm730_vm9 = vcmp.eq.f32.partialorder %v4244_v39, %v712_v16  ;;  %v700_v54 = vpop.xlane.xlu2 %699  ;;  %vm725_vm2 = vcmp.eq.f32.partialorder %v4170_v3, %v697_v7  ;;  %859 = vmin.xlane.f32.xlu2 %v4424_v43 }
 0x394   :  { %vm746_vm15 = vmand %vm250_vm10, %vm730_vm9  ;;  %vm726_vm1 = vcmp.eq.f32.partialorder %v4238_v61, %v700_v54  ;;  %874 = vmin.xlane.f32.xlu1 %v4427_v13 }
 0x395   :  { %v762_v14 = vsel %vm746_vm15, %v2942_v63, 8  ;;  %vm741_vm6 = vmand %vm250_vm10, %vm725_vm2 }
 0x396   :  { %vm742_vm12 = vmand %vm250_vm10, %vm726_vm1  ;;  %v757_v39 = vsel %vm741_vm6, %v2942_v63, 8  ;;  %v4442_v38 = vsel %vm267_vm4, %v762_v14, 2147483647 }
 0x397   :  { %v758_v3 = vsel %vm742_vm12, %v2942_v63, 8  ;;  %v976_v21 = vshra.s32 %v4442_v38, 16  ;;  %v4447_v15 = vsel %vm267_vm4, %v757_v39, 2147483647 }
 0x398   :  { %v4450_v61 = vsel %vm267_vm4, %v758_v3, 2147483647  ;;  %v901_v23 = vshra.s32 %v4447_v15, 16 }
 0x399   :  { %v4453_v46 = vcvt.s32.f32 %v976_v21  ;;  %v916_v49 = vshra.s32 %v4450_v61, 16 }
 0x39a   :  { %v703_v4 = vpop.xlane.xlu0 %702  ;;  %v4456_v41 = vcvt.s32.f32 %v901_v23  ;;  %v679_v51 = vpop.xlane.xlu1 %678 }
 0x39b   :  { %vm727_vm0 = vcmp.eq.f32.partialorder %v4300_v20, %v703_v4  ;;  %979 = vmin.xlane.f32.xlu0 %v4453_v46  ;;  %v4460_v57 = vcvt.s32.f32 %v916_v49  ;;  %vm719_vm7 = vcmp.eq.f32.partialorder %v4295_v56, %v679_v51  ;;  %v765_v49 = vand.u32 65535, %v4321_v6 }
 0x39c   :  { %vm743_vm8 = vmand %vm250_vm10, %vm727_vm0  ;;  %904 = vmin.xlane.f32.xlu2 %v4456_v41  ;;  %v840_v51 = vand.u32 65535, %v4333_v37 }
 0x39d   :  { %v759_v2 = vsel %vm743_vm8, %v2942_v63, 8  ;;  %vm735_vm3 = vmand %vm250_vm10, %vm719_vm7  ;;  %919 = vmin.xlane.f32.xlu1 %v4460_v57 }
 0x39e   :  { %v751_v20 = vsel %vm735_vm3, %v2942_v63, 8  ;;  %v4472_v50 = vsel %vm267_vm4, %v759_v2, 2147483647 }
 0x39f   :  { %v931_v1 = vshra.s32 %v4472_v50, 16  ;;  %v4476_v16 = vsel %vm267_vm4, %v751_v20, 2147483647  ;;  %v945_v20 = vand.u32 65535, %v4346_v45 }
 0x3a0   :  { %v811_v56 = vshra.s32 %v4476_v16, 16 }
 0x3a1   :  { %v4479_v7 = vcvt.s32.f32 %v931_v1 }
 0x3a2   :  { %v4481_v54 = vcvt.s32.f32 %v811_v56  ;;  %v715_v14 = vpop.xlane.xlu1 %714  ;;  %v842_v56 = vcvt.s32.f32 %v840_v51 }
 0x3a3   :  { %934 = vmin.xlane.f32.xlu0 %v4479_v7  ;;  %vm731_vm9 = vcmp.eq.f32.partialorder %v4312_v47, %v715_v14  ;;  %v767_v47 = vcvt.s32.f32 %v765_v49  ;;  %v825_v14 = vand.u32 65535, %v4349_v17  ;;  %v885_v49 = vand.u32 65535, %v4372_v9 }
 0x3a4   :  { %814 = vmin.xlane.f32.xlu2 %v4481_v54  ;;  %vm747_vm15 = vmand %vm250_vm10, %vm731_vm9  ;;  %v795_v9 = vand.u32 65535, %v4398_v26 }
 0x3a5   :  { %v763_v39 = vsel %vm747_vm15, %v2942_v63, 8  ;;  %v827_v37 = vcvt.s32.f32 %v825_v14 }
 0x3a6   :  { %v4490_v3 = vsel %vm267_vm4, %v763_v39, 2147483647 }
 0x3a7   :  { %v991_v21 = vshra.s32 %v4490_v3, 16 }
 0x3a9   :  { %v4493_v23 = vcvt.s32.f32 %v991_v21  ;;  %v947_v21 = vcvt.s32.f32 %v945_v20  ;;  %v887_v20 = vcvt.s32.f32 %v885_v49  ;;  %v915_v49 = vand.u32 65535, %v4450_v61 }
 0x3ac   :  { %994 = vmin.xlane.f32.xlu2 %v4493_v23 }
 0x3e6   :  { %v4497_v4 = vpop.xlane.xlu2 %769 }
 0x3e7   :  { %vm771_vm2 = vcmp.eq.f32.partialorder %v4327_v62, %v4497_v4 }
 0x3e8   :  { %v772_v2 = vsel %vm771_vm2, %v767_v47, inf }
 0x3e9   :  { %773 = vmin.xlane.f32.xlu0 %v772_v2 }
 0x3eb   :  { %v4503_v1 = vpop.xlane.xlu0 %844 }
 0x3ec   :  { %vm846_vm10 = vcmp.eq.f32.partialorder %v4343_v33, %v4503_v1  ;;  %v780_v33 = vand.u32 65535, %v4369_v42  ;;  %v960_v42 = vand.u32 65535, %v4395_v11  ;;  %v870_v11 = vand.u32 65535, %v4420_v5 }
 0x3ed   :  { %v847_v6 = vsel %vm846_vm10, %v842_v56, inf  ;;  %v900_v5 = vand.u32 65535, %v4447_v15 }
 0x3ee   :  { %848 = vmin.xlane.f32.xlu1 %v847_v6  ;;  %v4508_v39 = vpop.xlane.xlu2 %949  ;;  %v782_v51 = vcvt.s32.f32 %v780_v33  ;;  %v962_v14 = vcvt.s32.f32 %v960_v42 }
 0x3ef   :  { %v4510_v62 = vpop.xlane.xlu1 %829  ;;  %vm951_vm1 = vcmp.eq.f32.partialorder %v4354_v18, %v4508_v39 }
 0x3f0   :  { %v952_v45 = vsel %vm951_vm1, %v947_v21, inf  ;;  %vm831_vm6 = vcmp.eq.f32.partialorder %v4356_v24, %v4510_v62  ;;  %v797_v21 = vcvt.s32.f32 %v795_v9 }
 0x3f1   :  { %953 = vmin.xlane.f32.xlu0 %v952_v45  ;;  %v832_v17 = vsel %vm831_vm6, %v827_v37, inf  ;;  %v855_v37 = vand.u32 65535, %v4417_v55  ;;  %v975_v55 = vand.u32 65535, %v4442_v38  ;;  %v2501_v38 = vmul.f32 -1.442695, %v3006_v32 }
 0x3f2   :  { %833 = vmin.xlane.f32.xlu2 %v832_v17  ;;  %v810_v32 = vand.u32 65535, %v4476_v16 }
 0x3f3   :  { %v857_v45 = vcvt.s32.f32 %v855_v37 }
 0x3f7   :  { %v4518_v47 = vpop.xlane.xlu1 %784 }
 0x3f8   :  { %v4520_v2 = vpop.xlane.xlu0 %889  ;;  %vm786_vm12 = vcmp.eq.f32.partialorder %v4380_v10, %v4518_v47 }
 0x3f9   :  { %vm891_vm0 = vcmp.eq.f32.partialorder %v4382_v30, %v4520_v2  ;;  %v787_v18 = vsel %vm786_vm12, %v782_v51, inf  ;;  %v2500_v51 = vmul.f32 -1.442695, %v2977_v22  ;;  %v917_v22 = vcvt.s32.f32 %v915_v49 }
 0x3fa   :  { %v892_v24 = vsel %vm891_vm0, %v887_v20, inf  ;;  %788 = vmin.xlane.f32.xlu2 %v787_v18  ;;  %v977_v18 = vcvt.s32.f32 %v975_v55 }
 0x3fb   :  { %893 = vmin.xlane.f32.xlu1 %v892_v24  ;;  %2747 = vpow2.f32 %v2500_v51 }
 0x3ff   :  { %v4528_v56 = vpop.xlane.xlu1 %964 }
 0x400   :  { %5706 = vst [vmem:[#allocation33_spill] sm:$0xff] %v4528_v56  ;;  %v4530_v6 = vpop.xlane.xlu0 %799  ;;  %vm966_vm8 = vcmp.eq.f32.partialorder %v4402_v52, %v4528_v56  ;;  %v872_v52 = vcvt.s32.f32 %v870_v11  ;;  %v2505_v11 = vmul.f32 -1.442695, %v2991_v27 }
 0x401   :  { %5707 = vst [vmem:[#allocation34_spill] sm:$0xff] %v4530_v6  ;;  %vm801_vm7 = vcmp.eq.f32.partialorder %v4405_v19, %v4530_v6  ;;  %v967_v10 = vsel %vm966_vm8, %v962_v14, inf }
 0x402   :  { %v802_v30 = vsel %vm801_vm7, %v797_v21, inf  ;;  %968 = vmin.xlane.f32.xlu2 %v967_v10  ;;  %v812_v10 = vcvt.s32.f32 %v810_v32 }
 0x403   :  { %803 = vmin.xlane.f32.xlu1 %v802_v30 }
 0x406   :  { %v4538_v26 = vpop.xlane.xlu2 %859 }
 0x407   :  { %5708 = vst [vmem:[#allocation35_spill] sm:$0xff] %v4538_v26  ;;  %v4540_v17 = vpop.xlane.xlu1 %874  ;;  %vm861_vm3 = vcmp.eq.f32.partialorder %v4424_v43, %v4538_v26  ;;  %v2504_v43 = vmul.f32 -1.442695, %v2988_v25 }
 0x408   :  { %5709 = vst [vmem:[#allocation36_spill] sm:$0xff] %v4540_v17  ;;  %v862_v33 = vsel %vm861_vm3, %v857_v45, inf  ;;  %vm876_vm9 = vcmp.eq.f32.partialorder %v4427_v13, %v4540_v17  ;;  %v902_v13 = vcvt.s32.f32 %v900_v5  ;;  %v990_v45 = vand.u32 65535, %v4490_v3  ;;  %v5716_v5 = vld [vmem:[#allocation2_spill] sm:$0xff]  ;;  %v5717_v3 = vld [vmem:[#allocation3_spill] sm:$0xff] }
 0x409   :  { %863 = vmin.xlane.f32.xlu0 %v862_v33  ;;  %v877_v19 = vsel %vm876_vm9, %v872_v52, inf  ;;  %2749 = vpow2.f32 %v2504_v43  ;;  %v2502_v27 = vmul.f32 -1.442695, %v5716_v5  ;;  %v2506_v49 = vmul.f32 -1.442695, %v5717_v3 }
 0x40a   :  { %878 = vmin.xlane.f32.xlu2 %v877_v19  ;;  %2751 = vpow2.f32 %v2501_v38  ;;  %v992_v55 = vcvt.s32.f32 %v990_v45  ;;  %v5720_v38 = vld [vmem:[#allocation6_spill] sm:$0xff] }
 0x40e   :  { %v4550_v20 = vpop.xlane.xlu0 %979 }
 0x40f   :  { %5710 = vst [vmem:[#allocation37_spill] sm:$0xff] %v4550_v20  ;;  %v4553_v24 = vpop.xlane.xlu2 %904  ;;  %vm981_vm15 = vcmp.eq.f32.partialorder %v4453_v46, %v4550_v20  ;;  %v930_v46 = vand.u32 65535, %v4472_v50 }
 0x410   :  { %5711 = vst [vmem:[#allocation38_spill] sm:$0xff] %v4553_v24  ;;  %v4558_v42 = vpop.xlane.xlu1 %919  ;;  %v982_v15 = vsel %vm981_vm15, %v977_v18, inf  ;;  %vm906_vm2 = vcmp.eq.f32.partialorder %v4456_v41, %v4553_v24  ;;  %v2748_v41 = vpop.eup %2747 }
 0x411   :  { %5712 = vst [vmem:[#allocation39_spill] sm:$0xff] %v4558_v42  ;;  %983 = vmin.xlane.f32.xlu1 %v982_v15  ;;  %v907_v61 = vsel %vm906_vm2, %v902_v13, inf  ;;  %vm921_vm10 = vcmp.eq.f32.partialorder %v4460_v57, %v4558_v42  ;;  %v932_v14 = vcvt.s32.f32 %v930_v46  ;;  %v2750_v50 = vpop.eup %2749  ;;  %v4574_v16 = vadd.f32 1.0, %v2748_v41  ;;  %v5722_v46 = vld [vmem:[#allocation8_spill] sm:$0xff]  ;;  %v5723_v41 = vld [vmem:[#allocation10_spill] sm:$0xff] }
 0x412   :  { %908 = vmin.xlane.f32.xlu0 %v907_v61  ;;  %v922_v25 = vsel %vm921_vm10, %v917_v22, inf  ;;  %v2752_v37 = vpop.eup %2751  ;;  %v4578_v52 = vadd.f32 1.0, %v2750_v50  ;;  %v2503_v15 = vmul.f32 -1.442695, %v5720_v38  ;;  %v2510_v32 = vmul.f32 -1.442695, %v5722_v46 }
 0x413   :  { %923 = vmin.xlane.f32.xlu2 %v922_v25  ;;  %v4580_v33 = vadd.f32 1.0, %v2752_v37  ;;  %2753 = vrcp.f32 %v4574_v16  ;;  %v5724_v37 = vld [vmem:[#allocation9_spill] sm:$0xff]  ;;  %vm1089_vm8 = vweird.f32 %v4574_v16 }
 0x414   :  { %2755 = vpow2.f32 %v2505_v11  ;;  %v2511_v11 = vmul.f32 -1.442695, %v5724_v37 }
 0x415   :  { %2757 = vrcp.f32 %v4578_v52 }
 0x416   :  { %v4566_v9 = vpop.xlane.xlu0 %934  ;;  %2759 = vrcp.f32 %v4580_v33 }
 0x417   :  { %5713 = vst [vmem:[#allocation40_spill] sm:$0xff] %v4566_v9  ;;  %v4568_v21 = vpop.xlane.xlu2 %814  ;;  %vm936_vm1 = vcmp.eq.f32.partialorder %v4479_v7, %v4566_v9  ;;  %v2508_v7 = vmul.f32 -1.442695, %v3026_v48  ;;  %v5718_v48 = vld [vmem:[#allocation4_spill] sm:$0xff] }
 0x418   :  { %5714 = vst [vmem:[#allocation41_spill] sm:$0xff] %v4568_v21  ;;  %v937_v57 = vsel %vm936_vm1, %v932_v14, inf  ;;  %vm816_vm6 = vcmp.eq.f32.partialorder %v4481_v54, %v4568_v21  ;;  %v2512_v54 = vmul.f32 -1.442695, %v3029_v53  ;;  %v2509_v18 = vmul.f32 -1.442695, %v5718_v48 }
 0x419   :  { %938 = vmin.xlane.f32.xlu1 %v937_v57  ;;  %v817_v30 = vsel %vm816_vm6, %v812_v10, inf  ;;  %2761 = vpow2.f32 %v2508_v7  ;;  %v5719_v53 = vld [vmem:[#allocation5_spill] sm:$0xff]  ;;  %v4595_v13 = vpop.eup %2753  ;;  %v2514_v10 = vmul.f32 -1.442695, %v5723_v41  ;;  %v5725_v7 = vld [vmem:[#allocation11_spill] sm:$0xff] }
 0x41a   :  { %818 = vmin.xlane.f32.xlu0 %v817_v30  ;;  %2763 = vpow2.f32 %v2512_v54  ;;  %v2513_v43 = vmul.f32 -1.442695, %v5719_v53  ;;  %v2756_v22 = vpop.eup %2755  ;;  %v2515_v54 = vmul.f32 -1.442695, %v5725_v7  ;;  %v1085_v37 = vmul.f32 %v4595_v13, %v4574_v16 }
 0x41b   :  { %2765 = vpow2.f32 %v2502_v27  ;;  %v4599_v25 = vpop.eup %2757  ;;  %v4605_v50 = vadd.f32 1.0, %v2756_v22  ;;  %vm1090_vm0 = vweird.f32 %v4595_v13 }
 0x41c   :  { %2767 = vpow2.f32 %v2506_v49  ;;  %v4602_v14 = vpop.eup %2759  ;;  %vm4741_vm7 = vmor %vm1089_vm8, %vm1090_vm0  ;;  %vm1149_vm8 = vweird.f32 %v4578_v52 }
 0x41d   :  { %2769 = vpow2.f32 %v2509_v18  ;;  %vm1164_vm15 = vweird.f32 %v4605_v50  ;;  %vm1105_vm0 = vweird.f32 %v4602_v14 }
 0x41e   :  { %2771 = vpow2.f32 %v2513_v43 }
 0x41f   :  { %v4585_v19 = vpop.xlane.xlu2 %994  ;;  %v2762_v57 = vpop.eup %2761  ;;  %2773 = vpow2.f32 %v2503_v15 }
 0x420   :  { %5715 = vst [vmem:[#allocation42_spill] sm:$0xff] %v4585_v19  ;;  %vm996_vm12 = vcmp.eq.f32.partialorder %v4493_v23, %v4585_v19  ;;  %v5721_v23 = vld [vmem:[#allocation7_spill] sm:$0xff]  ;;  %v2764_v30 = vpop.eup %2763  ;;  %v4609_v5 = vadd.f32 1.0, %v2762_v57 }
 0x421   :  { %v997_v51 = vsel %vm996_vm12, %v992_v55, inf  ;;  %v2507_v61 = vmul.f32 -1.442695, %v5721_v23  ;;  %v2766_v45 = vpop.eup %2765  ;;  %v4612_v3 = vadd.f32 1.0, %v2764_v30  ;;  %vm1150_vm12 = vweird.f32 %v4599_v25 }
 0x422   :  { %998 = vmin.xlane.f32.xlu0 %v997_v51  ;;  %v2768_v55 = vpop.eup %2767  ;;  %v4614_v51 = vadd.f32 1.0, %v2766_v45 }
 0x423   :  { %2775 = vpow2.f32 %v2507_v61  ;;  %v2770_v27 = vpop.eup %2769  ;;  %v4616_v18 = vadd.f32 1.0, %v2768_v55  ;;  %vm1269_vm1 = vweird.f32 %v4612_v3 }
 0x424   :  { %2777 = vpow2.f32 %v2510_v32  ;;  %v2772_v49 = vpop.eup %2771  ;;  %v4619_v43 = vadd.f32 1.0, %v2770_v27 }
 0x425   :  { %2779 = vpow2.f32 %v2514_v10  ;;  %v2774_v48 = vpop.eup %2773  ;;  %v4622_v15 = vadd.f32 1.0, %v2772_v49  ;;  %v1086_v49 = vsub.f32 1.0, %v1085_v37 }
 0x426   :  { %2781 = vrcp.f32 %v4605_v50  ;;  %v4625_v23 = vadd.f32 1.0, %v2774_v48 }
 0x427   :  { %2783 = vpow2.f32 %v2511_v11  ;;  %v1087_v0 = vmul.f32 %v4595_v13, %v1086_v49 }
 0x428   :  { %2785 = vpow2.f32 %v2515_v54 }
 0x429   :  { %v2776_v53 = vpop.eup %2775  ;;  %2787 = vrcp.f32 %v4609_v5 }
 0x42a   :  { %v2778_v38 = vpop.eup %2777  ;;  %2789 = vrcp.f32 %v4612_v3  ;;  %v4630_v46 = vadd.f32 1.0, %v2776_v53 }
 0x42b   :  { %v2780_v22 = vpop.eup %2779  ;;  %2791 = vrcp.f32 %v4614_v51  ;;  %v4633_v41 = vadd.f32 1.0, %v2778_v38 }
 0x42c   :  { %v4627_v61 = vpop.eup %2781  ;;  %2793 = vrcp.f32 %v4616_v18  ;;  %v4636_v57 = vadd.f32 1.0, %v2780_v22 }
 0x42d   :  { %v2784_v32 = vpop.eup %2783  ;;  %2795 = vrcp.f32 %v4619_v43  ;;  %v1160_v53 = vmul.f32 %v4627_v61, %v4605_v50  ;;  %vm1165_vm3 = vweird.f32 %v4627_v61 }
 0x42e   :  { %v2786_v10 = vpop.eup %2785  ;;  %2797 = vrcp.f32 %v4622_v15  ;;  %v4646_v45 = vadd.f32 1.0, %v2784_v32  ;;  %v1145_v32 = vmul.f32 %v4599_v25, %v4578_v52  ;;  %vm4760_vm10 = vmor %vm1164_vm15, %vm1165_vm3  ;;  %vm1104_vm15 = vweird.f32 %v4580_v33 }
 0x42f   :  { %v4638_v30 = vpop.eup %2787  ;;  %2799 = vrcp.f32 %v4625_v23  ;;  %v4651_v54 = vadd.f32 1.0, %v2786_v10  ;;  %v1100_v10 = vmul.f32 %v4602_v14, %v4580_v33  ;;  %v1161_v58 = vsub.f32 1.0, %v1160_v53 }
 0x430   :  { %v4643_v11 = vpop.eup %2789  ;;  %2801 = vrcp.f32 %v4630_v46  ;;  %v4676_v31 = vmul.f32 %v4638_v30, %v4609_v5  ;;  %v1146_v12 = vsub.f32 1.0, %v1145_v32  ;;  %v1170_v53 = vand.u32 2147483648, %v4605_v50 }
 0x431   :  { %v4648_v7 = vpop.eup %2791  ;;  %2803 = vrcp.f32 %v4633_v41  ;;  %5726 = vst [vmem:[#allocation2_spill] sm:$0xff] %v4651_v54  ;;  %v1265_v38 = vmul.f32 %v4643_v11, %v4612_v3  ;;  %v1101_v8 = vsub.f32 1.0, %v1100_v10  ;;  %v1162_v42 = vmul.f32 %v4627_v61, %v1161_v58 }
 0x432   :  { %v4653_v55 = vpop.eup %2793  ;;  %2805 = vrcp.f32 %v4636_v57  ;;  %v4680_v59 = vmul.f32 %v4648_v7, %v4614_v51  ;;  %v1206_v49 = vsub.f32 1.0, %v4676_v31  ;;  %v1088_v31 = vadd.f32 %v4595_v13, %v1087_v0 }
 0x433   :  { %v4656_v27 = vpop.eup %2795  ;;  %2807 = vrcp.f32 %v4646_v45  ;;  %v4686_v60 = vmul.f32 %v4653_v55, %v4616_v18  ;;  %v1266_v28 = vsub.f32 1.0, %v1265_v38  ;;  %v1095_v0 = vand.u32 2147483648, %v4574_v16 }
 0x434   :  { %v4658_v48 = vpop.eup %2797  ;;  %2809 = vrcp.f32 %v4651_v54  ;;  %v4693_v40 = vmul.f32 %v4656_v27, %v4619_v43  ;;  %v1093_v58 = vand.u32 2147483647, %v4574_v16  ;;  %v1092_v26 = vsel %vm4741_vm7, %v4595_v13, %v1088_v31 }
 0x435   :  { %v4665_v22 = vpop.eup %2799  ;;  %v4697_v34 = vmul.f32 %v4658_v48, %v4622_v15  ;;  %v1267_v24 = vmul.f32 %v4643_v11, %v1266_v28  ;;  %v1163_v17 = vadd.f32 %v4627_v61, %v1162_v42  ;;  %vm1270_vm9 = vweird.f32 %v4643_v11 }
 0x436   :  { %v4672_v37 = vpop.eup %2801  ;;  %v4701_v36 = vmul.f32 %v4665_v22, %v4625_v23  ;;  %v1147_v56 = vmul.f32 %v4599_v25, %v1146_v12  ;;  %v1102_v28 = vmul.f32 %v4602_v14, %v1101_v8  ;;  %vm1094_vm2 = vcmp.eq.f32.partialorder %v1093_v58, 8.507059e+37  ;;  %vm4769_vm6 = vmor %vm1269_vm1, %vm1270_vm9 }
 0x437   :  { %v4682_v44 = vpop.eup %2803  ;;  %v4709_v38 = vmul.f32 %v4672_v37, %v4630_v46  ;;  %v1281_v9 = vsub.f32 1.0, %v4697_v34  ;;  %v1268_v6 = vadd.f32 %v4643_v11, %v1267_v24  ;;  %v1275_v24 = vand.u32 2147483648, %v4612_v3  ;;  %vm4789_vm9 = vmor %vm1149_vm8, %vm1150_vm12 }
 0x438   :  { %v4689_v35 = vpop.eup %2805  ;;  %v4713_v19 = vmul.f32 %v4682_v44, %v4633_v41  ;;  %v1168_v12 = vand.u32 2147483647, %v4605_v50  ;;  %v1273_v8 = vand.u32 2147483647, %v4612_v3  ;;  %v1167_v58 = vsel %vm4760_vm10, %v4627_v61, %v1163_v17 }
 0x439   :  { %v4703_v29 = vpop.eup %2807  ;;  %v4720_v21 = vmul.f32 %v4689_v35, %v4636_v57  ;;  %v1272_v13 = vsel %vm4769_vm6, %v4643_v11, %v1268_v6  ;;  %v1155_v50 = vand.u32 2147483648, %v4578_v52  ;;  %v1207_v3 = vmul.f32 %v4638_v30, %v1206_v49 }
 0x43a   :  { %v4715_v32 = vpop.eup %2809  ;;  %v4731_v10 = vmul.f32 %v4703_v29, %v4646_v45  ;;  %v1153_v17 = vand.u32 2147483647, %v4578_v52  ;;  %v1110_v61 = vand.u32 2147483648, %v4580_v33  ;;  %vm1169_vm7 = vcmp.eq.f32.partialorder %v1168_v12, 8.507059e+37 }
 0x43b   :  { %v4739_v34 = vmul.f32 %v4715_v32, %v4651_v54  ;;  %v1296_v20 = vsub.f32 1.0, %v4720_v21  ;;  %v1096_v54 = vor.u32 1.1754944e-38, %v1095_v0  ;;  %v1171_v0 = vor.u32 1.1754944e-38, %v1170_v53 }
 0x43c   :  { %v1276_v53 = vor.u32 1.1754944e-38, %v1275_v24  ;;  %vm1274_vm3 = vcmp.eq.f32.partialorder %v1273_v8, 8.507059e+37  ;;  %v1108_v6 = vand.u32 2147483647, %v4580_v33  ;;  %v1282_v16 = vmul.f32 %v4658_v48, %v1281_v9 }
 0x43d   :  { %v4766_v42 = vsel %vm1094_vm2, %v1096_v54, %v1092_v26  ;;  %v1148_v26 = vadd.f32 %v4599_v25, %v1147_v56  ;;  %v1103_v54 = vadd.f32 %v4602_v14, %v1102_v28  ;;  %v4795_v11 = vsel %vm1169_vm7, %v1171_v0, %v1167_v58  ;;  %vm1106_vm2 = vmor %vm1104_vm15, %vm1105_vm0 }
 0x43e   :  { %v4797_v49 = vsel %vm1274_vm3, %v1276_v53, %v1272_v13  ;;  %v1156_v28 = vor.u32 1.1754944e-38, %v1155_v50  ;;  %v1208_v24 = vadd.f32 %v4638_v30, %v1207_v3  ;;  %vm1210_vm10 = vweird.f32 %v4638_v30 }
 0x43f   :  { %v1152_v52 = vsel %vm4789_vm9, %v4599_v25, %v1148_v26  ;;  %v1107_v31 = vsel %vm1106_vm2, %v4602_v14, %v1103_v54  ;;  %vm1154_vm1 = vcmp.eq.f32.partialorder %v1153_v17, 8.507059e+37  ;;  %v1111_v33 = vor.u32 1.1754944e-38, %v1110_v61 }
 0x440   :  { %v1215_v12 = vand.u32 2147483648, %v4609_v5  ;;  %v5735_v13 = vsub.f32 1.0, %v4680_v59  ;;  %v4810_v8 = vsel %vm1154_vm1, %v1156_v28, %v1152_v52  ;;  %vm1109_vm6 = vcmp.eq.f32.partialorder %v1108_v6, 8.507059e+37 }
 0x441   :  { %vm1209_vm12 = vweird.f32 %v4609_v5  ;;  %v1213_v9 = vand.u32 2147483647, %v4609_v5  ;;  %v4814_v25 = vsel %vm1109_vm6, %v1111_v33, %v1107_v31  ;;  %v1283_v58 = vadd.f32 %v4658_v48, %v1282_v16 }
 0x442   :  { %v1117_v0 = vmul.f32 %v4648_v7, %v5735_v13  ;;  %vm4816_vm0 = vmor %vm1209_vm12, %vm1210_vm10  ;;  %vm1285_vm8 = vweird.f32 %v4658_v48  ;;  %v5738_v59 = vsub.f32 1.0, %v4686_v60  ;;  %vm1284_vm7 = vweird.f32 %v4622_v15 }
 0x443   :  { %v1212_v50 = vsel %vm4816_vm0, %v4638_v30, %v1208_v24  ;;  %v1288_v5 = vand.u32 2147483647, %v4622_v15  ;;  %v1290_v54 = vand.u32 2147483648, %v4622_v15  ;;  %v1216_v3 = vor.u32 1.1754944e-38, %v1215_v12  ;;  %vm4834_vm15 = vmor %vm1284_vm7, %vm1285_vm8 }
 0x444   :  { %v1177_v26 = vmul.f32 %v4653_v55, %v5738_v59  ;;  %v1118_v53 = vadd.f32 %v4648_v7, %v1117_v0  ;;  %vm1120_vm3 = vweird.f32 %v4648_v7  ;;  %v1123_v17 = vand.u32 2147483647, %v4614_v51 }
 0x445   :  { %vm1214_vm9 = vcmp.eq.f32.partialorder %v1213_v9, 8.507059e+37  ;;  %vm1119_vm2 = vweird.f32 %v4614_v51  ;;  %v1125_v30 = vand.u32 2147483648, %v4614_v51  ;;  %v5741_v61 = vsub.f32 1.0, %v4709_v38 }
 0x446   :  { %v4843_v56 = vsel %vm1214_vm9, %v1216_v3, %v1212_v50  ;;  %v1287_v6 = vsel %vm4834_vm15, %v4658_v48, %v1283_v58  ;;  %v1178_v52 = vadd.f32 %v4653_v55, %v1177_v26  ;;  %vm1180_vm10 = vweird.f32 %v4653_v55  ;;  %vm4854_vm6 = vmor %vm1119_vm2, %vm1120_vm3 }
 0x447   :  { %v1192_v15 = vmul.f32 %v4672_v37, %v5741_v61  ;;  %vm4850_vm1 = vcmp.eq.f32.partialorder %v1288_v5, 8.507059e+37  ;;  %v1291_v28 = vor.u32 1.1754944e-38, %v1290_v54  ;;  %v1185_v38 = vand.u32 2147483648, %v4616_v18 }
 0x448   :  { %v5746_v31 = vsub.f32 1.0, %v4693_v40  ;;  %v1122_v48 = vsel %vm4854_vm6, %v4648_v7, %v1118_v53  ;;  %vm4865_vm12 = vcmp.eq.f32.partialorder %v1123_v17, 8.507059e+37  ;;  %vm1179_vm0 = vweird.f32 %v4616_v18 }
 0x449   :  { %v1183_v12 = vand.u32 2147483647, %v4616_v18  ;;  %v1126_v13 = vor.u32 1.1754944e-38, %v1125_v30  ;;  %vm4871_vm8 = vmor %vm1179_vm0, %vm1180_vm10  ;;  %v1193_v40 = vadd.f32 %v4672_v37, %v1192_v15  ;;  %vm1194_vm7 = vweird.f32 %v4630_v46 }
 0x44a   :  { %v1222_v24 = vmul.f32 %v4656_v27, %v5746_v31  ;;  %vm1195_vm3 = vweird.f32 %v4672_v37  ;;  %v776_v7 = vcvt.f32.s32 %v4497_v4  ;;  %v1182_v9 = vsel %vm4871_vm8, %v4653_v55, %v1178_v52 }
 0x44b   :  { %v1198_v14 = vand.u32 2147483647, %v4630_v46  ;;  %v1200_v18 = vand.u32 2147483648, %v4630_v46  ;;  %v1186_v58 = vor.u32 1.1754944e-38, %v1185_v38  ;;  %vm1225_vm9 = vweird.f32 %v4656_v27  ;;  %vm4897_vm2 = vmor %vm1194_vm7, %vm1195_vm3 }
 0x44c   :  { %v1223_v59 = vadd.f32 %v4656_v27, %v1222_v24  ;;  %v5751_v26 = vsub.f32 1.0, %v4713_v19  ;;  %v4891_v4 = vsel %vm4850_vm1, %v1291_v28, %v1287_v6  ;;  %v4895_v55 = vsel %vm4865_vm12, %v1126_v13, %v1122_v48 }
 0x44d   :  { %vm1184_vm15 = vcmp.eq.f32.partialorder %v1183_v12, 8.507059e+37  ;;  %v1230_v5 = vand.u32 2147483648, %v4619_v43  ;;  %v1197_v19 = vsel %vm4897_vm2, %v4672_v37, %v1193_v40  ;;  %vm1224_vm10 = vweird.f32 %v4619_v43 }
 0x44e   :  { %v1237_v50 = vmul.f32 %v4682_v44, %v5751_v26  ;;  %v4902_v3 = vsel %vm1184_vm15, %v1186_v58, %v1182_v9  ;;  %v1228_v53 = vand.u32 2147483647, %v4619_v43  ;;  %v777_v17 = vshll.u32 %v776_v7, 16  ;;  %vm4915_vm6 = vmor %vm1224_vm10, %vm1225_vm9 }
 0x44f   :  { %vm4909_vm1 = vcmp.eq.f32.partialorder %v1198_v14, 8.507059e+37  ;;  %v1201_v61 = vor.u32 1.1754944e-38, %v1200_v18  ;;  %v851_v6 = vcvt.f32.s32 %v4503_v1  ;;  %v1227_v37 = vsel %vm4915_vm6, %v4656_v27, %v1223_v59 }
 0x450   :  { %v1238_v43 = vadd.f32 %v4682_v44, %v1237_v50  ;;  %vm1240_vm12 = vweird.f32 %v4682_v44  ;;  %v1231_v16 = vor.u32 1.1754944e-38, %v1230_v5  ;;  %v1243_v28 = vand.u32 2147483647, %v4633_v41 }
 0x451   :  { %v1245_v51 = vand.u32 2147483648, %v4633_v41  ;;  %vm1324_vm0 = vcmp.lt.s32.totalorder %v2942_v63, 15  ;;  %vm1229_vm8 = vcmp.eq.f32.partialorder %v1228_v53, 8.507059e+37  ;;  %vm1239_vm7 = vweird.f32 %v4633_v41 }
 0x452   :  { %v1297_v1 = vmul.f32 %v4689_v35, %v1296_v20  ;;  %v956_v27 = vcvt.f32.s32 %v4508_v39  ;;  %v4935_v24 = vsel %vm4909_vm1, %v1201_v61, %v1197_v19  ;;  %v4937_v48 = vsel %vm1229_vm8, %v1231_v16, %v1227_v37  ;;  %vm4939_vm3 = vmor %vm1239_vm7, %vm1240_vm12 }
 0x453   :  { %v852_v12 = vshll.u32 %v851_v6, 16  ;;  %v836_v41 = vcvt.f32.s32 %v4510_v62  ;;  %v1242_v39 = vsel %vm4939_vm3, %v4682_v44, %v1238_v43  ;;  %vm4952_vm9 = vcmp.eq.f32.partialorder %v1243_v28, 8.507059e+37  ;;  %v5786_v6 = vld [vmem:[#allocation39_spill] sm:$0xff] }
 0x454   :  { %v1246_v0 = vor.u32 1.1754944e-38, %v1245_v51  ;;  %vm1299_vm15 = vweird.f32 %v4636_v57  ;;  %v1298_v62 = vadd.f32 %v4689_v35, %v1297_v1  ;;  %vm1300_vm2 = vweird.f32 %v4689_v35  ;;  %v5787_v51 = vld [vmem:[#allocation40_spill] sm:$0xff] }
 0x455   :  { %v5762_v44 = vsub.f32 1.0, %v4701_v36  ;;  %v957_v14 = vshll.u32 %v956_v27, 16  ;;  %v1303_v58 = vand.u32 2147483647, %v4636_v57  ;;  %v1305_v59 = vand.u32 2147483648, %v4636_v57  ;;  %vm4980_vm6 = vmor %vm1299_vm15, %vm1300_vm2 }
 0x456   :  { %v837_v26 = vshll.u32 %v836_v41, 16  ;;  %vm1134_vm10 = vweird.f32 %v4625_v23  ;;  %vm1135_vm1 = vweird.f32 %v4665_v22  ;;  %v1138_v36 = vand.u32 2147483647, %v4625_v23  ;;  %v5773_v41 = vld [vmem:[#allocation2_spill] sm:$0xff] }
 0x457   :  { %v1132_v9 = vmul.f32 %v4665_v22, %v5762_v44  ;;  %v5765_v30 = vsub.f32 1.0, %v4731_v10  ;;  %vm4991_vm12 = vcmp.eq.f32.partialorder %v1303_v58, 8.507059e+37  ;;  %v1140_v57 = vand.u32 2147483648, %v4625_v23  ;;  %vm5010_vm8 = vmor %vm1134_vm10, %vm1135_vm1 }
 0x458   :  { %v791_v37 = vcvt.f32.s32 %v4518_v47  ;;  %v5768_v16 = vsub.f32 1.0, %v4739_v34  ;;  %v896_v28 = vcvt.f32.s32 %v4520_v2  ;;  %vm5014_vm7 = vcmp.eq.f32.partialorder %v1138_v36, 8.507059e+37  ;;  %v5783_v36 = vld [vmem:[#allocation36_spill] sm:$0xff] }
 0x459   :  { %v1252_v61 = vmul.f32 %v4703_v29, %v5765_v30  ;;  %vm1254_vm3 = vweird.f32 %v4646_v45  ;;  %v1141_v1 = vor.u32 1.1754944e-38, %v1140_v57  ;;  %v1258_v27 = vand.u32 2147483647, %v4646_v45  ;;  %v5784_v30 = vld [vmem:[#allocation37_spill] sm:$0xff] }
 0x45a   :  { %v1312_v10 = vmul.f32 %v4715_v32, %v5768_v16  ;;  %vm1315_vm15 = vweird.f32 %v4715_v32  ;;  %vm1314_vm10 = vweird.f32 %v5773_v41  ;;  %v926_v57 = vcvt.f32.s32 %v5786_v6 }
 0x45b   :  { %v1253_v23 = vadd.f32 %v4703_v29, %v1252_v61  ;;  %vm5052_vm1 = vcmp.eq.f32.partialorder %v1258_v27, 8.507059e+37  ;;  %v986_v61 = vcvt.f32.s32 %v5784_v30  ;;  %v941_v47 = vcvt.f32.s32 %v5787_v51 }
 0x45c   :  { %v774_v54 = vpop.xlane.xlu0 %773 }
 0x45d   :  { %v775_v60 = vcvt.f32.s32 %v774_v54  ;;  %v4967_v54 = vsel %vm4952_vm9, %v1246_v0, %v1242_v39  ;;  %vm1255_vm9 = vweird.f32 %v4703_v29 }
 0x45e   :  { %vm5038_vm2 = vmor %vm1254_vm3, %vm1255_vm9 }
 0x45f   :  { %v778_v52 = vadd.s32 %v777_v17, %v775_v60  ;;  %v1133_v60 = vadd.f32 %v4665_v22, %v1132_v9  ;;  %v1257_v44 = vsel %vm5038_vm2, %v4703_v29, %v1253_v23  ;;  %v5776_v9 = vld [vmem:[#allocation33_spill] sm:$0xff] }
 0x461   :  { %v1004_v38 = vcvt.s32.f32 %v778_v52  ;;  %v849_v31 = vpop.xlane.xlu1 %848  ;;  %v1306_v52 = vor.u32 1.1754944e-38, %v1305_v59  ;;  %v1137_v34 = vsel %vm5010_vm8, %v4665_v22, %v1133_v60  ;;  %v897_v22 = vshll.u32 %v896_v28, 16  ;;  %v5781_v59 = vld [vmem:[#allocation34_spill] sm:$0xff] }
 0x462   :  { %v850_v21 = vcvt.f32.s32 %v849_v31  ;;  %v792_v31 = vshll.u32 %v791_v37, 16  ;;  %vm5791_vm8 = vcmp.lt.s32.totalorder %v2942_v63, 9 }
 0x463   :  { %v4950_v20 = vsel %vm1324_vm0, %v4766_v42, %v1004_v38  ;;  %v1260_v38 = vand.u32 2147483648, %v4646_v45 }
 0x464   :  { %v853_v40 = vadd.s32 %v852_v12, %v850_v21  ;;  %v954_v7 = vpop.xlane.xlu0 %953  ;;  %v1318_v21 = vand.u32 2147483647, %v5773_v41 }
 0x465   :  { %v955_v42 = vcvt.f32.s32 %v954_v7  ;;  %v834_v18 = vpop.xlane.xlu2 %833 }
 0x466   :  { %v1009_v50 = vcvt.s32.f32 %v853_v40  ;;  %v835_v46 = vcvt.f32.s32 %v834_v18  ;;  %v1320_v40 = vand.u32 2147483648, %v5773_v41  ;;  %v1261_v18 = vor.u32 1.1754944e-38, %v1260_v38  ;;  %v5789_v38 = vld [vmem:[#allocation42_spill] sm:$0xff] }
 0x467   :  { %v958_v5 = vadd.s32 %v957_v14, %v955_v42  ;;  %v971_v14 = vcvt.f32.s32 %v5776_v9  ;;  %v5106_v9 = vshll.u32 %v941_v47, 16 }
 0x468   :  { %v4974_v19 = vsel %vm1324_vm0, %v4795_v11, %v1009_v50  ;;  %v838_v53 = vadd.s32 %v837_v26, %v835_v46  ;;  %v1302_v11 = vsel %vm4980_vm6, %v4689_v35, %v1298_v62  ;;  %v5045_v62 = vsel %vm5014_vm7, %v1141_v1, %v1137_v34  ;;  %vm5058_vm6 = vmor %vm1314_vm10, %vm1315_vm15  ;;  %v5782_v46 = vld [vmem:[#allocation35_spill] sm:$0xff]  ;;  %v5788_v34 = vld [vmem:[#allocation41_spill] sm:$0xff] }
 0x469   :  { %v1016_v15 = vcvt.s32.f32 %v958_v5  ;;  %v5034_v13 = vsel %vm4991_vm12, %v1306_v52, %v1302_v11  ;;  %v806_v26 = vcvt.f32.s32 %v5781_v59  ;;  %vm1319_vm12 = vcmp.eq.f32.partialorder %v1318_v21, 8.507059e+37  ;;  %v5790_v21 = vld [vmem:[#allocation16_spill] sm:$0xff]  ;;  %vm5793_vm7 = vmmov %vm5791_vm8 }
 0x46a   :  { %v1008_v43 = vcvt.s32.f32 %v838_v53  ;;  %v866_v5 = vcvt.f32.s32 %v5782_v46  ;;  %v881_v53 = vcvt.f32.s32 %v5783_v36  ;;  %v1321_v60 = vor.u32 1.1754944e-38, %v1320_v40  ;;  %v5794_v40 = vld [vmem:[#allocation19_spill] sm:$0xff]  ;;  %vm5795_vm3 = vmmov %vm5793_vm7  ;;  %v5800_v59 = vld [vmem:[#allocation20_spill] sm:$0xff] }
 0x46b   :  { %v5004_v35 = vsel %vm1324_vm0, %v4797_v49, %v1016_v15  ;;  %v5785_v15 = vld [vmem:[#allocation38_spill] sm:$0xff]  ;;  %v5079_v16 = vsel %vm5052_vm1, %v1261_v18, %v1257_v44  ;;  %v807_v28 = vshll.u32 %v806_v26, 16  ;;  %v821_v23 = vcvt.f32.s32 %v5788_v34  ;;  %vm5797_vm9 = vmmov %vm5795_vm3 }
 0x46c   :  { %v1329_v2 = vsel %vm1324_vm0, %v4810_v8, %v1008_v43  ;;  %v1313_v8 = vadd.f32 %v4715_v32, %v1312_v10  ;;  %v911_v11 = vcvt.f32.s32 %v5785_v15  ;;  %v972_v43 = vshll.u32 %v971_v14, 16  ;;  %vm5799_vm15 = vmmov %vm5795_vm3 }
 0x46d   :  { %v789_v49 = vpop.xlane.xlu2 %788  ;;  %v882_v27 = vshll.u32 %v881_v53, 16  ;;  %v5108_v14 = vshll.u32 %v821_v23, 16  ;;  %vm5801_vm2 = vmmov %vm5795_vm3  ;;  %v5802_v53 = vld [vmem:[#allocation21_spill] sm:$0xff] }
 0x46e   :  { %v790_v33 = vcvt.f32.s32 %v789_v49  ;;  %v894_v12 = vpop.xlane.xlu1 %893  ;;  %v1317_v29 = vsel %vm5058_vm6, %v4715_v32, %v1313_v8  ;;  %v5088_v8 = vshll.u32 %v926_v57, 16  ;;  %vm5803_vm10 = vmmov %vm5801_vm2  ;;  %vm5806_vm6 = vcmask 1041409  }
 0x46f   :  { %v895_v39 = vcvt.f32.s32 %v894_v12  ;;  %v5081_v10 = vsel %vm1319_vm12, %v1321_v60, %v1317_v29  ;;  %v5086_v12 = vshll.u32 %v911_v11, 16  ;;  %vm5805_vm1 = vmmov %vm5801_vm2 }
 0x470   :  { %v793_v7 = vadd.s32 %v792_v31, %v790_v33  ;;  %v1001_v31 = vcvt.f32.s32 %v5789_v38  ;;  %vm5807_vm12 = vmmov %vm5806_vm6 }
 0x471   :  { %v898_v45 = vadd.s32 %v897_v22, %v895_v39  ;;  %v5094_v22 = vsel %vm5791_vm8, %v5790_v21, %v4950_v20  ;;  %v5792_v39 = vld [vmem:[#allocation18_spill] sm:$0xff]  ;;  %vm5808_vm8 = vmmov %vm5806_vm6 }
 0x472   :  { %v1005_v50 = vcvt.s32.f32 %v793_v7  ;;  %v5099_v0 = vsel %vm5793_vm7, %v5792_v39, %v1329_v2  ;;  %v5116_v18 = vshll.u32 %v1001_v31, 16  ;;  %v5798_v2 = vld [vmem:[#allocation15_spill] sm:$0xff]  ;;  %v1478_v46 = vrot.slane %v5094_v22, 3  ;;  %vm5810_vm7 = vmmov %vm5805_vm1 }
 0x473   :  { %v1012_v17 = vcvt.s32.f32 %v898_v45  ;;  %v5796_v45 = vld [vmem:[#allocation17_spill] sm:$0xff]  ;;  %v5122_v58 = vsel %vm5799_vm15, %v5798_v2, %v5004_v35  ;;  %v1484_v36 = vrot.slane %v5099_v0, 7  ;;  %v1444_v57 = vrot.slane %v5094_v22, 2  ;;  %vm5815_vm15 = vmmov %vm5805_vm1 }
 0x474   :  { %v1326_v37 = vsel %vm1324_vm0, %v4814_v25, %v1005_v50  ;;  %v867_v25 = vshll.u32 %v866_v5, 16  ;;  %v5114_v20 = vsel %vm5797_vm9, %v5796_v45, %v4974_v19  ;;  %v1410_v51 = vrot.slane %v5094_v22, 1  ;;  %vm5813_vm9 = vmmov %vm5806_vm6 }
 0x475   :  { %v1333_v32 = vsel %vm1324_vm0, %v4843_v56, %v1012_v17  ;;  %v969_v52 = vpop.xlane.xlu2 %968  ;;  %v987_v56 = vshll.u32 %v986_v61, 16  ;;  %v5104_v7 = vsel %vm5795_vm3, %v5794_v40, %v1326_v37  ;;  %v5804_v61 = vld [vmem:[#allocation22_spill] sm:$0xff]  ;;  %v1418_v31 = vrot.slane %v5114_v20, 4  ;;  %vm5812_vm3 = vmmov %vm5805_vm1 }
 0x476   :  { %v970_v49 = vcvt.f32.s32 %v969_v52  ;;  %v804_v1 = vpop.xlane.xlu1 %803  ;;  %v5127_v26 = vsel %vm5801_vm2, %v5800_v59, %v1333_v32  ;;  %v1479_v5 = vrot.slane %v5104_v7, 2  ;;  %v1445_v32 = vrot.slane %v5104_v7, 1  ;;  %vm5817_vm2 = vmmov %vm5805_vm1 }
 0x477   :  { %v805_v33 = vcvt.f32.s32 %v804_v1  ;;  %v1416_v1 = vrot.slane %v5099_v0, 5  ;;  %v1580_v39 = vrot.slane %v5094_v22, 6  ;;  %v1581_v40 = vrot.slane %v5104_v7, 5 }
 0x478   :  { %v973_v41 = vadd.s32 %v972_v43, %v970_v49  ;;  %v1480_v6 = vsel %vm5806_vm6, %v1479_v5, %v1478_v46  ;;  %v1446_v49 = vsel %vm5807_vm12, %v1445_v32, %v1444_v57  ;;  %vm5820_vm12 = vmmov %vm5806_vm6 }
 0x479   :  { %v808_v44 = vadd.s32 %v807_v28, %v805_v33  ;;  %v1452_v28 = vrot.slane %v5114_v20, 5  ;;  %v1582_v57 = vsel %vm5813_vm9, %v1581_v40, %v1580_v39  ;;  %v1520_v40 = vrot.slane %v5114_v20, 7 }
 0x47a   :  { %v1017_v42 = vcvt.s32.f32 %v973_v41  ;;  %vm5826_vm9 = vcmask 1045509  }
 0x47b   :  { %v1006_v50 = vcvt.s32.f32 %v808_v44  ;;  %v5809_v44 = vld [vmem:[#allocation25_spill] sm:$0xff] }
 0x47c   :  { %v1338_v19 = vsel %vm1324_vm0, %v4891_v4, %v1017_v42  ;;  %v864_v29 = vpop.xlane.xlu0 %863  ;;  %v1486_v4 = vrot.slane %v5114_v20, 6 }
 0x47d   :  { %v5138_v35 = vsel %vm5803_vm10, %v5802_v53, %v1338_v19  ;;  %v1327_v17 = vsel %vm1324_vm0, %v4895_v55, %v1006_v50  ;;  %v865_v60 = vcvt.f32.s32 %v864_v29  ;;  %v879_v30 = vpop.xlane.xlu2 %878  ;;  %v1450_v55 = vrot.slane %v5099_v0, 6  ;;  %v5811_v50 = vld [vmem:[#allocation24_spill] sm:$0xff]  ;;  %vm5818_vm10 = vmmov %vm5806_vm6 }
 0x47e   :  { %v5147_v15 = vsel %vm5805_vm1, %v5804_v61, %v1327_v17  ;;  %v880_v11 = vcvt.f32.s32 %v879_v30 }
 0x47f   :  { %v868_v37 = vadd.s32 %v867_v25, %v865_v60  ;;  %v1481_v43 = vrot.slane %v5147_v15, 1  ;;  %v1412_v47 = vrot.slane %v5147_v15, 7  ;;  %v5164_v38 = vsel %vm1377_vm13, %v5147_v15, %v1446_v49 }
 0x480   :  { %v883_v52 = vadd.s32 %v882_v27, %v880_v11  ;;  %v1411_v27 = vsel %vm5808_vm8, %v5104_v7, %v1410_v51  ;;  %v1589_v51 = vrot.slane %v5114_v20, 1  ;;  %vm5822_vm8 = vmmov %vm5805_vm1 }
 0x481   :  { %v1010_v34 = vcvt.s32.f32 %v868_v37  ;;  %v5158_v23 = vsel %vm1377_vm13, %v1481_v43, %v1480_v6  ;;  %v5173_v21 = vsel %vm1377_vm13, %v1412_v47, %v1411_v27 }
 0x482   :  { %v1011_v25 = vcvt.s32.f32 %v883_v52 }
 0x483   :  { %v1331_v33 = vsel %vm1324_vm0, %v4902_v3, %v1010_v34  ;;  %v1583_v3 = vrot.slane %v5147_v15, 4 }
 0x484   :  { %v984_v41 = vpop.xlane.xlu1 %983  ;;  %v5180_v45 = vsel %vm5810_vm7, %v5809_v44, %v1331_v33  ;;  %v1332_v42 = vsel %vm1324_vm0, %v4935_v24, %v1011_v25  ;;  %v1515_v25 = vrot.slane %v5147_v15, 2  ;;  %v5814_v33 = vld [vmem:[#allocation27_spill] sm:$0xff]  ;;  %vm5824_vm7 = vmmov %vm5805_vm1 }
 0x485   :  { %v909_v2 = vpop.xlane.xlu0 %908  ;;  %v985_v59 = vcvt.f32.s32 %v984_v41  ;;  %v5189_v19 = vsel %vm5812_vm3, %v5811_v50, %v1332_v42  ;;  %v1488_v5 = vrot.slane %v5180_v45, 5  ;;  %v1454_v53 = vrot.slane %v5180_v45, 4  ;;  %v5816_v42 = vld [vmem:[#allocation23_spill] sm:$0xff]  ;;  %v5819_v50 = vld [vmem:[#allocation26_spill] sm:$0xff] }
 0x486   :  { %v910_v29 = vcvt.f32.s32 %v909_v2  ;;  %v924_v46 = vpop.xlane.xlu2 %923  ;;  %v1490_v30 = vrot.slane %v5189_v19, 4  ;;  %v1456_v24 = vrot.slane %v5189_v19, 3  ;;  %v1420_v11 = vrot.slane %v5180_v45, 3 }
 0x487   :  { %v925_v17 = vcvt.f32.s32 %v924_v46  ;;  %v988_v60 = vadd.s32 %v987_v56, %v985_v59  ;;  %v1422_v6 = vrot.slane %v5189_v19, 2  ;;  %v5201_v32 = vsel %vm1377_vm13, %v1583_v3, %v1582_v57 }
 0x488   :  { %v913_v61 = vadd.s32 %v5086_v12, %v910_v29  ;;  %v1587_v56 = vrot.slane %v5099_v0, 2  ;;  %v1592_v47 = vrot.slane %v5189_v19, 7  ;;  %v1512_v12 = vrot.slane %v5094_v22, 4 }
 0x489   :  { %v928_v37 = vadd.s32 %v5088_v8, %v925_v17  ;;  %v1018_v43 = vcvt.s32.f32 %v988_v60  ;;  %v1513_v8 = vrot.slane %v5104_v7, 3  ;;  %v1522_v44 = vrot.slane %v5180_v45, 6 }
 0x48a   :  { %v1013_v52 = vcvt.s32.f32 %v913_v61  ;;  %v1524_v60 = vrot.slane %v5189_v19, 5  ;;  %v1546_v57 = vrot.slane %v5094_v22, 5  ;;  %vm5825_vm3 = vcmask 1044484  }
 0x48b   :  { %v1014_v34 = vcvt.s32.f32 %v928_v37  ;;  %v1339_v49 = vsel %vm1324_vm0, %v5034_v13, %v1018_v43  ;;  %v1514_v3 = vsel %vm5818_vm10, %v1513_v8, %v1512_v12  ;;  %v1549_v37 = vrot.slane %v5147_v15, 3 }
 0x48c   :  { %v1334_v27 = vsel %vm1324_vm0, %v4937_v48, %v1013_v52  ;;  %v5218_v41 = vsel %vm5815_vm15, %v5814_v33, %v1339_v49  ;;  %v939_v39 = vpop.xlane.xlu1 %938  ;;  %v1516_v17 = vsel %vm1377_vm13, %v1515_v25, %v1514_v3  ;;  %v1553_v52 = vrot.slane %v5099_v0, 1 }
 0x48d   :  { %v5225_v13 = vsel %vm5817_vm2, %v5816_v42, %v1334_v27  ;;  %v1335_v2 = vsel %vm1324_vm0, %v4967_v54, %v1014_v34  ;;  %v819_v48 = vpop.xlane.xlu0 %818  ;;  %v940_v59 = vcvt.f32.s32 %v939_v39  ;;  %v1547_v54 = vrot.slane %v5104_v7, 4  ;;  %vm5828_vm2 = vmmov %vm5825_vm3 }
 0x48e   :  { %v5234_v29 = vsel %vm5805_vm1, %v5819_v50, %v1335_v2  ;;  %v820_v46 = vcvt.f32.s32 %v819_v48  ;;  %v1556_v12 = vrot.slane %v5180_v45, 7  ;;  %v1424_v25 = vrot.slane %v5127_v26, 1  ;;  %v5821_v50 = vld [vmem:[#allocation30_spill] sm:$0xff]  ;;  %vm5829_vm10 = vmmov %vm5828_vm2 }
 0x48f   :  { %v943_v61 = vadd.s32 %v5106_v9, %v940_v59  ;;  %v1548_v8 = vsel %vm5806_vm6, %v1547_v54, %v1546_v57  ;;  %v1426_v9 = vrot.slane %v5234_v29, 7  ;;  %v1430_v39 = vrot.slane %v5122_v58, 5  ;;  %v5823_v57 = vld [vmem:[#allocation28_spill] sm:$0xff]  ;;  %vm5830_vm1 = vmmov %vm5826_vm9 }
 0x490   :  { %v823_v43 = vadd.s32 %v5108_v14, %v820_v46  ;;  %v1550_v33 = vsel %vm1377_vm13, %v1549_v37, %v1548_v8  ;;  %v1432_v14 = vrot.slane %v5138_v35, 4  ;;  %v1425_v2 = vsel %vm5820_vm12, %v5225_v13, %v1424_v25  ;;  %vm5831_vm6 = vmmov %vm5830_vm1 }
 0x491   :  { %v1015_v49 = vcvt.s32.f32 %v943_v61  ;;  %v1434_v48 = vrot.slane %v5218_v41, 3  ;;  %v1614_v59 = vrot.slane %v5094_v22, 7  ;;  %v1427_v61 = vsel %vm1377_vm13, %v1426_v9, %v1425_v2 }
 0x492   :  { %v1007_v27 = vcvt.s32.f32 %v823_v43  ;;  %vm5827_vm15 = vcmask 1046534  }
 0x493   :  { %v1336_v42 = vsel %vm1324_vm0, %v5079_v16, %v1015_v49  ;;  %v1615_v16 = vrot.slane %v5104_v7, 6  ;;  %v1617_v49 = vrot.slane %v5147_v15, 5  ;;  %vm5832_vm12 = vmmov %vm5827_vm15 }
 0x494   :  { %v1328_v3 = vsel %vm1324_vm0, %v5045_v62, %v1007_v27  ;;  %v5265_v46 = vsel %vm5822_vm8, %v5821_v50, %v1336_v42  ;;  %v1621_v62 = vrot.slane %v5099_v0, 3  ;;  %vm5833_vm8 = vmmov %vm5832_vm12 }
 0x495   :  { %v5272_v54 = vsel %vm5824_vm7, %v5823_v57, %v1328_v3  ;;  %v999_v37 = vpop.xlane.xlu0 %998  ;;  %v1428_v43 = vrot.slane %v5265_v46, 6  ;;  %vm5834_vm7 = vmmov %vm5828_vm2 }
 0x496   :  { %v1000_v8 = vcvt.f32.s32 %v999_v37  ;;  %v1483_v25 = vsel %vm1380_vm14, %v5272_v54, %v5158_v23  ;;  %v1448_v9 = vrot.slane %v5272_v54, 7  ;;  %v1414_v27 = vrot.slane %v5272_v54, 6 }
 0x497   :  { %v1485_v42 = vsel %vm5825_vm3, %v1484_v36, %v1483_v25  ;;  %v1585_v2 = vrot.slane %v5272_v54, 3  ;;  %v1517_v3 = vrot.slane %v5272_v54, 1  ;;  %v1551_v50 = vrot.slane %v5272_v54, 2  ;;  %vm5835_vm3 = vmmov %vm5830_vm1 }
 0x498   :  { %v1003_v57 = vadd.s32 %v5116_v18, %v1000_v8  ;;  %v1487_v23 = vsel %vm5826_vm9, %v1486_v4, %v1485_v42  ;;  %v1449_v37 = vsel %vm1380_vm14, %v1448_v9, %v5164_v38  ;;  %v1415_v34 = vsel %vm1380_vm14, %v1414_v27, %v5173_v21 }
 0x499   :  { %v1489_v36 = vsel %vm5827_vm15, %v1488_v5, %v1487_v23  ;;  %v1451_v25 = vsel %vm5828_vm2, %v1450_v55, %v1449_v37  ;;  %v1417_v18 = vsel %vm5829_vm10, %v1416_v1, %v1415_v34  ;;  %v1586_v4 = vsel %vm1380_vm14, %v1585_v2, %v5201_v32  ;;  %v5836_v34 = vld [vmem:[#allocation31_spill] sm:$0xff]  ;;  %vm5839_vm15 = vmmov %vm5828_vm2 }
 0x49a   :  { %v1019_v8 = vcvt.s32.f32 %v1003_v57  ;;  %v1491_v38 = vsel %vm1392_vm5, %v1490_v30, %v1489_v36  ;;  %v1453_v21 = vsel %vm5830_vm1, %v1452_v28, %v1451_v25  ;;  %v1419_v55 = vsel %vm5831_vm6, %v1418_v31, %v1417_v18  ;;  %vm5840_vm2 = vmmov %vm5830_vm1 }
 0x49b   :  { %1506 = vrot.lane.b32.xlu2 %v1491_v38, %s2816_s10  ;;  %v1455_v1 = vsel %vm5832_vm12, %v1454_v53, %v1453_v21  ;;  %v1421_v5 = vsel %vm5833_vm8, %v1420_v11, %v1419_v55  ;;  %v1588_v30 = vsel %vm5834_vm7, %v1587_v56, %v1586_v4  ;;  %v1518_v28 = vsel %vm1380_vm14, %v1517_v3, %v1516_v17  ;;  %vm5842_vm1 = vmmov %vm5834_vm7 }
 0x49c   :  { %v1340_v31 = vsel %vm1324_vm0, %v5081_v10, %v1019_v8  ;;  %v1457_v32 = vsel %vm1392_vm5, %v1456_v24, %v1455_v1  ;;  %v1423_v53 = vsel %vm1392_vm5, %v1422_v6, %v1421_v5  ;;  %v1590_v11 = vsel %vm5835_vm3, %v1589_v51, %v1588_v30  ;;  %vm5838_vm0 = vmmov %vm5833_vm8 }
 0x49d   :  { %vm5837_vm9 = vcmp.lt.s32.totalorder %v2942_v63, 9  ;;  %1472 = vrot.lane.b32.xlu0 %v1457_v32, %s2817_s1  ;;  %1438 = vrot.lane.b32.xlu1 %v1423_v53, %s2818_s2  ;;  %v1591_v10 = vsel %vm5838_vm0, %v5180_v45, %v1590_v11  ;;  %v1519_v24 = vsel %vm5839_vm15, %v5099_v0, %v1518_v28  ;;  %v1619_v6 = vrot.slane %v5272_v54, 4  ;;  %vm5841_vm10 = vmmov %vm5838_vm0 }
 0x49e   :  { %v5342_v56 = vsel %vm5837_vm9, %v5836_v34, %v1340_v31  ;;  %v1593_v51 = vsel %vm1392_vm5, %v1592_v47, %v1591_v10  ;;  %v1521_v17 = vsel %vm5840_vm2, %v1520_v40, %v1519_v24  ;;  %v1552_v9 = vsel %vm1380_vm14, %v1551_v50, %v1550_v33  ;;  %vm5843_vm6 = vmmov %vm5842_vm1 }
 0x49f   :  { %v1429_v27 = vsel %vm1380_vm14, %v1428_v43, %v1427_v61  ;;  %v1523_v42 = vsel %vm5841_vm10, %v1522_v44, %v1521_v17  ;;  %v1554_v2 = vsel %vm5842_vm1, %v1553_v52, %v1552_v9  ;;  %v1436_v47 = vrot.slane %v5342_v56, 2  ;;  %vm5844_vm12 = vmmov %vm5840_vm2 }
 0x4a0   :  { %v1431_v3 = vsel %vm5843_vm6, %v1430_v39, %v1429_v27  ;;  %v1525_v40 = vsel %vm1392_vm5, %v1524_v60, %v1523_v42  ;;  %v1555_v33 = vsel %vm5844_vm12, %v5114_v20, %v1554_v2  ;;  %vm5845_vm8 = vmmov %vm5840_vm2  ;;  %vm5846_vm7 = vcmask 1041409  }
 0x4a1   :  { %v1433_v61 = vsel %vm5845_vm8, %v1432_v14, %v1431_v3  ;;  %v1616_v44 = vsel %vm5846_vm7, %v1615_v16, %v1614_v59  ;;  %vm5847_vm3 = vmmov %vm5838_vm0  ;;  %v1623_v60 = vrot.slane %v5114_v20, 2  ;;  %v5849_v50 = vrot.slane %v5189_v19, 6 }
 0x4a2   :  { %v1557_v52 = vsel %vm5847_vm3, %v1556_v12, %v1555_v33  ;;  %vm5848_vm9 = vmmov %vm5838_vm0  ;;  %v1618_v43 = vsel %vm1377_vm13, %v1617_v49, %v1616_v44  ;;  %v1625_v16 = vrot.slane %v5180_v45, 1  ;;  %v1493_v49 = vrot.slane %v5225_v13, 2 }
 0x4a3   :  { %v1435_v39 = vsel %vm5848_vm9, %v1434_v48, %v1433_v61  ;;  %v1559_v57 = vsel %vm1392_vm5, %v5849_v50, %v1557_v52  ;;  %v1620_v59 = vsel %vm1380_vm14, %v1619_v6, %v1618_v43  ;;  %1608 = vrot.lane.b32.xlu2 %v1593_v51, %s2819_s11  ;;  %vm5850_vm0 = vmmov %vm5842_vm1  ;;  %v1492_v48 = vrot.slane %v5127_v26, 3 }
 0x4a4   :  { %v1437_v14 = vsel %vm1392_vm5, %v1436_v47, %v1435_v39  ;;  %v1622_v12 = vsel %vm5850_vm0, %v1621_v62, %v1620_v59  ;;  %v1495_v23 = vrot.slane %v5234_v29, 1  ;;  %vm5851_vm15 = vmmov %vm5840_vm2  ;;  %v1498_v36 = vrot.slane %v5122_v58, 7 }
 0x4a5   :  { %v1624_v37 = vsel %vm5851_vm15, %v1623_v60, %v1622_v12  ;;  %v1500_v25 = vrot.slane %v5138_v35, 6  ;;  %v1502_v18 = vrot.slane %v5218_v41, 5  ;;  %1540 = vrot.lane.b32.xlu0 %v1525_v40, %s2820_s12  ;;  %1574 = vrot.lane.b32.xlu1 %v1559_v57, %s2821_s13  ;;  %vm5852_vm2 = vmmov %vm5847_vm3  ;;  %v1504_v8 = vrot.slane %v5342_v56, 4 }
 0x4a6   :  { %v1626_v62 = vsel %vm5852_vm2, %v1625_v16, %v1624_v37  ;;  %vm5853_vm10 = vmmov %vm5846_vm7  ;;  %v1526_v38 = vrot.slane %v5127_v26, 4  ;;  %v1527_v1 = vrot.slane %v5225_v13, 3  ;;  %v1529_v5 = vrot.slane %v5234_v29, 2 }
 0x4a7   :  { %v1494_v4 = vsel %vm5853_vm10, %v1493_v49, %v1492_v48  ;;  %v1627_v21 = vsel %vm1392_vm5, %v5189_v19, %v1626_v62  ;;  %v1531_v28 = vrot.slane %v5265_v46, 1  ;;  %v1534_v31 = vrot.slane %v5138_v35, 7  ;;  %vm5854_vm1 = vmmov %vm5850_vm0 }
 0x4a8   :  { %v1496_v55 = vsel %vm1377_vm13, %v1495_v23, %v1494_v4  ;;  %v1536_v32 = vrot.slane %v5218_v41, 6  ;;  %vm5855_vm6 = vmmov %vm5846_vm7  ;;  %v1538_v34 = vrot.slane %v5342_v56, 5  ;;  %v1594_v10 = vrot.slane %v5127_v26, 6 }
 0x4a9   :  { %v1497_v30 = vsel %vm1380_vm14, %v5265_v46, %v1496_v55  ;;  %v1528_v11 = vsel %vm5855_vm6, %v1527_v1, %v1526_v38  ;;  %vm5856_vm12 = vmmov %vm5845_vm8  ;;  %v1595_v51 = vrot.slane %v5225_v13, 5  ;;  %v1597_v17 = vrot.slane %v5234_v29, 4 }
 0x4aa   :  { %v1499_v53 = vsel %vm5854_vm1, %v1498_v36, %v1497_v30  ;;  %v1530_v6 = vsel %vm1377_vm13, %v1529_v5, %v1528_v11  ;;  %vm5857_vm8 = vmmov %vm5852_vm2  ;;  %v1599_v42 = vrot.slane %v5265_v46, 3  ;;  %v1601_v2 = vrot.slane %v5122_v58, 2 }
 0x4ab   :  { %v1501_v24 = vsel %vm5856_vm12, %v1500_v25, %v1499_v53  ;;  %v1532_v27 = vsel %vm1380_vm14, %v1531_v28, %v1530_v6  ;;  %1440 = vrot.lane.b32.xlu2 %v1437_v14, %s2818_s2  ;;  %vm5858_vm7 = vmmov %vm5850_vm0  ;;  %v1603_v33 = vrot.slane %v5138_v35, 1  ;;  %v1606_v52 = vrot.slane %v5342_v56, 7 }
 0x4ac   :  { %v1503_v9 = vsel %vm5857_vm8, %v1502_v18, %v1501_v24  ;;  %v1533_v47 = vsel %vm5858_vm7, %v5122_v58, %v1532_v27  ;;  %vm5859_vm3 = vmmov %vm5855_vm6  ;;  %v1458_v39 = vrot.slane %v5127_v26, 2  ;;  %v1459_v50 = vrot.slane %v5225_v13, 1 }
 0x4ad   :  { %v1505_v3 = vsel %vm1392_vm5, %v1504_v8, %v1503_v9  ;;  %v1596_v40 = vsel %vm5859_vm3, %v1595_v51, %v1594_v10  ;;  %vm5860_vm9 = vmmov %vm5856_vm12  ;;  %1642 = vrot.lane.b32.xlu0 %v1627_v21, %s2822_s14  ;;  %v1462_v57 = vrot.slane %v5265_v46, 7  ;;  %v1464_v16 = vrot.slane %v5122_v58, 6 }
 0x4ae   :  { %v1535_v61 = vsel %vm5860_vm9, %v1534_v31, %v1533_v47  ;;  %v1598_v44 = vsel %vm1377_vm13, %v1597_v17, %v1596_v40  ;;  %1508 = vrot.lane.b32.xlu1 %v1505_v3, %s2816_s10  ;;  %vm5861_vm0 = vmmov %vm5852_vm2  ;;  %v1466_v49 = vrot.slane %v5138_v35, 5  ;;  %v1470_v23 = vrot.slane %v5342_v56, 3 }
 0x4af   :  { %v1537_v43 = vsel %vm5861_vm0, %v1536_v32, %v1535_v61  ;;  %v1600_v60 = vsel %vm1380_vm14, %v1599_v42, %v1598_v44  ;;  %vm5862_vm15 = vmmov %vm5854_vm1  ;;  %v1628_v25 = vrot.slane %v5127_v26, 7  ;;  %v1629_v18 = vrot.slane %v5225_v13, 6 }
 0x4b0   :  { %v1539_v14 = vsel %vm1392_vm5, %v1538_v34, %v1537_v43  ;;  %v1602_v59 = vsel %vm5862_vm15, %v1601_v2, %v1600_v60  ;;  %vm5863_vm2 = vmmov %vm5860_vm9  ;;  %v1631_v8 = vrot.slane %v5234_v29, 5  ;;  %v1633_v38 = vrot.slane %v5265_v46, 4  ;;  %v5876_v60 = vld [vmem:[#allocation12_spill] sm:$0xff] }
 0x4b1   :  { %v1604_v12 = vsel %vm5863_vm2, %v1603_v33, %v1602_v59  ;;  %vm5864_vm10 = vmmov %vm5859_vm3  ;;  %v1468_v55 = vrot.slane %v5218_v41, 4  ;;  %v1635_v5 = vrot.slane %v5122_v58, 3  ;;  %v1637_v31 = vrot.slane %v5138_v35, 2 }
 0x4b2   :  { %v1460_v48 = vsel %vm5864_vm10, %v1459_v50, %v1458_v39  ;;  %vm5865_vm1 = vmmov %vm5861_vm0  ;;  %v1560_v32 = vrot.slane %v5127_v26, 5  ;;  %v1561_v34 = vrot.slane %v5225_v13, 4  ;;  %v1563_v10 = vrot.slane %v5234_v29, 3  ;;  %v5877_v50 = vld [vmem:[#allocation13_spill] sm:$0xff] }
 0x4b3   :  { %v1605_v37 = vsel %vm5865_vm1, %v5218_v41, %v1604_v12  ;;  %v1461_v36 = vsel %vm1377_vm13, %v5234_v29, %v1460_v48  ;;  %vm5866_vm6 = vmmov %vm5858_vm7  ;;  %1542 = vrot.lane.b32.xlu2 %v1539_v14, %s2820_s12  ;;  %v1639_v51 = vrot.slane %v5218_v41, 1  ;;  %v1565_v17 = vrot.slane %v5265_v46, 2 }
 0x4b4   :  { %v1607_v62 = vsel %vm1392_vm5, %v1606_v52, %v1605_v37  ;;  %v1463_v4 = vsel %vm1380_vm14, %v1462_v57, %v1461_v36  ;;  %vm5867_vm12 = vmmov %vm5859_vm3  ;;  %v1567_v3 = vrot.slane %v5122_v58, 1  ;;  %v1572_v33 = vrot.slane %v5342_v56, 6  ;;  %v5878_v57 = vld [vmem:[#allocation14_spill] sm:$0xff] }
 0x4b5   :  { %v1465_v21 = vsel %vm5866_vm6, %v1464_v16, %v1463_v4  ;;  %v1630_v1 = vsel %vm5867_vm12, %v1629_v18, %v1628_v25  ;;  %vm5868_vm8 = vmmov %vm5863_vm2  ;;  %v1570_v44 = vrot.slane %v5218_v41, 7  ;;  %v1394_v14 = vrot.slane %v5225_v13, 7 }
 0x4b6   :  { %v1467_v30 = vsel %vm5868_vm8, %v1466_v49, %v1465_v21  ;;  %v1632_v28 = vsel %vm1377_vm13, %v1631_v8, %v1630_v1  ;;  %vm5869_vm7 = vmmov %vm5861_vm0  ;;  %1610 = vrot.lane.b32.xlu1 %v1607_v62, %s2819_s11  ;;  %v1396_v59 = vrot.slane %v5234_v29, 6  ;;  %v1398_v12 = vrot.slane %v5265_v46, 5 }
 0x4b7   :  { %v1469_v53 = vsel %vm5869_vm7, %v1468_v55, %v1467_v30  ;;  %v1634_v11 = vsel %vm1380_vm14, %v1633_v38, %v1632_v28  ;;  %vm5870_vm3 = vmmov %vm5866_vm6  ;;  %v1400_v49 = vrot.slane %v5122_v58, 4  ;;  %v1406_v37 = vrot.slane %v5342_v56, 1 }
 0x4b8   :  { %v1471_v24 = vsel %vm1392_vm5, %v1470_v23, %v1469_v53  ;;  %v1636_v6 = vsel %vm5870_vm3, %v1635_v5, %v1634_v11  ;;  %vm5871_vm9 = vmmov %vm5863_vm2  ;;  %v1402_v23 = vrot.slane %v5138_v35, 3  ;;  %v1404_v25 = vrot.slane %v5218_v41, 2  ;;  %v1667_v11 = vld [vmem:[%s5573_s7] sm:$0xff] }
 0x4b9   :  { %1474 = vrot.lane.b32.xlu0 %v1471_v24, %s2817_s1  ;;  %v1638_v9 = vsel %vm5871_vm9, %v1637_v31, %v1636_v6  ;;  %vm5872_vm0 = vmmov %vm5864_vm10  ;;  %v1373_v18 = vrot.slane %v5104_v7, 7  ;;  %v1376_v58 = vrot.slane %v5147_v15, 6  ;;  %v1382_v4 = vrot.slane %v5099_v0, 4 }
 0x4ba   :  { %v1562_v27 = vsel %vm5872_vm0, %v1561_v34, %v1560_v32  ;;  %vm5873_vm15 = vmmov %vm5865_vm1  ;;  %v1385_v21 = vrot.slane %v5114_v20, 3  ;;  %v1388_v15 = vrot.slane %v5180_v45, 2 }
 0x4bb   :  { %v1640_v42 = vsel %vm5873_vm15, %v1639_v51, %v1638_v9  ;;  %v1564_v2 = vsel %vm1377_vm13, %v1563_v10, %v1562_v27  ;;  %vm5874_vm2 = vmmov %vm5870_vm3 }
 0x4bc   :  { %v1641_v47 = vsel %vm1392_vm5, %v5342_v56, %v1640_v42  ;;  %v1566_v40 = vsel %vm1380_vm14, %v1565_v17, %v1564_v2  ;;  %vm5875_vm10 = vmmov %vm5868_vm8 }
 0x4bd   :  { %v1568_v61 = vsel %vm5874_vm2, %v1567_v3, %v1566_v40  ;;  %1644 = vrot.lane.b32.xlu2 %v1641_v47, %s2822_s14  ;;  %vm5879_vm6 = vmmov %vm5872_vm0 }
 0x4be   :  { %v1569_v52 = vsel %vm5875_vm10, %v5138_v35, %v1568_v61  ;;  %2446 = vperm.xlu1 %2574, %v5876_v60   ;;  %v1395_v16 = vsel %vm5879_vm6, %v1394_v14, %v5127_v26  ;;  %vm5880_vm12 = vmmov %vm5874_vm2  ;;  %v1379_v35 = vrot.slane %v5272_v54, 5  ;;  %vm1658_vm10 = vcmask 654336   ;;  %v1668_v61 = vld [vmem:[%s5573_s7 + $0x8] sm:$0xff] }
 0x4bf   :  { %v1571_v39 = vsel %vm5865_vm1, %v1570_v44, %v1569_v52  ;;  %v1397_v48 = vsel %vm1377_vm13, %v1396_v59, %v1395_v16  ;;  %vm5881_vm7 = vmmov %vm5865_vm1  ;;  %vm1664_vm6 = vcmask 916480  }
 0x4c0   :  { %v1573_v43 = vsel %vm1392_vm5, %v1572_v33, %v1571_v39  ;;  %v1399_v36 = vsel %vm1380_vm14, %v1398_v12, %v1397_v48  ;;  %vm5882_vm3 = vmmov %vm5872_vm0  ;;  %v5891_v48 = vld [vmem:[#allocation29_spill] sm:$0xff] }
 0x4c1   :  { %1576 = vrot.lane.b32.xlu0 %v1573_v43, %s2821_s13  ;;  %v1401_v13 = vsel %vm5880_vm12, %v1400_v49, %v1399_v36  ;;  %v1375_v56 = vsel %vm5882_vm3, %v1373_v18, %v5094_v22  ;;  %vm5883_vm9 = vmmov %vm5874_vm2  ;;  %v1391_v22 = vrot.slane %v5189_v19, 1  ;;  %vm1655_vm2 = vcmask 523264  }
 0x4c2   :  { %v1403_v29 = vsel %vm5868_vm8, %v1402_v23, %v1401_v13  ;;  %v1378_v62 = vsel %vm1377_vm13, %v1376_v58, %v1375_v56  ;;  %vm5884_vm0 = vmmov %vm5868_vm8  ;;  %vm5886_vm13 = vcmask 261120  }
 0x4c3   :  { %v1405_v26 = vsel %vm5881_vm7, %v1404_v25, %v1403_v29  ;;  %v1381_v41 = vsel %vm1380_vm14, %v1379_v35, %v1378_v62  ;;  %vm5885_vm15 = vmmov %vm5865_vm1  ;;  %vm1652_vm14 = vcmask 392192   ;;  %vm1661_vm1 = vcmask 785408  }
 0x4c4   :  { %v1407_v46 = vsel %vm1392_vm5, %v1406_v37, %v1405_v26  ;;  %v1384_v38 = vsel %vm5883_vm9, %v1382_v4, %v1381_v41  ;;  %vm5887_vm12 = vmmov %vm5886_vm13 }
 0x4c5   :  { %2454 = vperm.xlu2 %2573, %v5877_v50   ;;  %v1387_v7 = vsel %vm5884_vm0, %v1385_v21, %v1384_v38  ;;  %v5888_v50 = vld [vmem:[#allocation32_spill] sm:$0xff]  ;;  %vm5890_vm8 = vmmov %vm5881_vm7 }
 0x4c6   :  { %v1390_v54 = vsel %vm5885_vm15, %v1388_v15, %v1387_v7 }
 0x4c7   :  { %v1393_v30 = vsel %vm1392_vm5, %v1391_v22, %v1390_v54 }
 0x4c9   :  { %2450 = vperm.xlu0 %2575, %v5878_v57  }
 0x4f5   :  { %v1507_v8 = vpop.permute.xlu2 %1506 }
 0x4fd   :  { %v1609_v5 = vpop.permute.xlu2 %1608 }
 0x505   :  { %v1441_v53 = vpop.permute.xlu2 %1440 }
 0x506   :  { %v1649_v27 = vsel %vm267_vm4, %v1407_v46, %v1441_v53 }
 0x50d   :  { %v1543_v17 = vpop.permute.xlu2 %1542 }
 0x50f   :  { %v1473_v55 = vpop.permute.xlu0 %1472  ;;  %v1439_v1 = vpop.permute.xlu1 %1438 }
 0x510   :  { %v1648_v0 = vsel %vm267_vm4, %v1393_v30, %v1439_v1  ;;  %vm5889_vm4 = vmmov %vm5884_vm0 }
 0x511   :  { %v1650_v28 = vsel %vm5886_vm13, %v1648_v0, %v1473_v55 }
 0x512   :  { %v1653_v32 = vsel %vm1652_vm14, %v1650_v28, %v1507_v8 }
 0x517   :  { %v1541_v20 = vpop.permute.xlu0 %1540  ;;  %v1575_v31 = vpop.permute.xlu1 %1574 }
 0x518   :  { %v1656_v45 = vsel %vm1655_vm2, %v1653_v32, %v1541_v20  ;;  %v1645_v47 = vpop.permute.xlu2 %1644 }
 0x519   :  { %v1659_v19 = vsel %vm1658_vm10, %v1656_v45, %v1575_v31 }
 0x51a   :  { %v1662_v10 = vsel %vm1661_vm1, %v1659_v19, %v1609_v5 }
 0x51f   :  { %v1643_v34 = vpop.permute.xlu0 %1642 }
 0x520   :  { %v1665_v24 = vsel %vm1664_vm6, %v1662_v10, %v1643_v34  ;;  %v1509_v51 = vpop.permute.xlu1 %1508  ;;  %v2455_v59 = vpop.permute.xlu2 %2454 }
 0x521   :  { %v1669_v6 = vmul.f32 %v1667_v11, %v1665_v24 }
 0x523   :  { %1671 = vst [vmem:[%s5574_s8] sm:$0xff] %v1669_v6 }
 0x528   :  { %v1611_v2 = vpop.permute.xlu1 %1610 }
 0x52b   :  { %v1475_v9 = vpop.permute.xlu0 %1474 }
 0x52c   :  { %v1651_v42 = vsel %vm5887_vm12, %v1649_v27, %v1475_v9 }
 0x52d   :  { %v1654_v3 = vsel %vm1652_vm14, %v1651_v42, %v1509_v51 }
 0x52e   :  { %v1657_v33 = vsel %vm1655_vm2, %v1654_v3, %v1543_v17 }
 0x530   :  { %v2447_v60 = vpop.permute.xlu1 %2446 }
 0x531   :  { %v2467_v57 = vsel %vm5889_vm4, %v2447_v60, %v5888_v50 }
 0x533   :  { %v1577_v40 = vpop.permute.xlu0 %1576 }
 0x534   :  { %v1660_v44 = vsel %vm1658_vm10, %v1657_v33, %v1577_v40 }
 0x535   :  { %v1663_v52 = vsel %vm1661_vm1, %v1660_v44, %v1611_v2 }
 0x536   :  { %v1666_v39 = vsel %vm1664_vm6, %v1663_v52, %v1645_v47 }
 0x537   :  { %v1670_v43 = vmul.f32 %v1668_v61, %v1666_v39 }
 0x539   :  { %1672 = vst [vmem:[%s5574_s8 + $0x8] sm:$0xff] %v1670_v43 }
 0x53b   :  { %v2451_v14 = vpop.permute.xlu0 %2450 }
 0x53c   :  { %v2468_v16 = vsel %vm5890_vm8, %v2451_v14, %v2467_v57 }
 0x53d   :  { %v2469_v12 = vsel %vm1392_vm5, %v2455_v59, %v2468_v16 }
 0x53e   :  { %v2473_v49 = vsel %vm2211_vm11, %v2469_v12, %v5891_v48 }
 0x53f   :  { %2475 = vst [vmem:[%s5572_s9 + $0x8] sm:$0xff] %v2473_v49 }

</bundles_post_ra>
